<compile_context>
chip_gen: v7x
topology: tpu7x:2x2x1
jax: 0.10.0
libtpu: 0.0.40
codegen_flags: <defaults>
</compile_context>

<pallas_src>
import functools

import jax
import jax.numpy as jnp
from jax import lax
from jax.experimental import pallas as pl
from jax.experimental.pallas import tpu as pltpu

KSIZE = 7
PAD = 3                      # padding = 3 for kernel_size = 7 (as in the module)
N_IN = 2                     # conv input channels: [avg, max]
N_TAPS = N_IN * KSIZE * KSIZE
N_PARTS = 4                  # independent partial accumulators in the tap loop


# --------------------------------------------------------------------------- #
# Shared conv helper (runs inside the kernels)
# --------------------------------------------------------------------------- #
def _conv7x7_sigmoid(avg, mx, wmask_ref, *, H, W):
    """7x7, 2->1 channel conv (zero padding folded into wmask) + sigmoid.

    avg, mx  : (bt, H*W) float32 lane-dense planes.
    wmask_ref: (98, H*W) float32 VMEM ref; row (c*49 + ky*7 + kx) holds
               weight[0, c, ky, kx] where the tap is in-bounds and 0 in the
               padding region, so the circular lane roll is exact.
    """
    HW = H * W
    bt = avg.shape[0]
    planes = (avg, mx)
    parts = [jnp.zeros((bt, HW), jnp.float32) for _ in range(N_PARTS)]
    t = 0
    for c in range(N_IN):
        p = planes[c]
        for ky in range(KSIZE):
            dy = ky - PAD
            for kx in range(KSIZE):
                dx = kx - PAD
                sh = (-(dy * W + dx)) % HW           # flat circular source shift
                shifted = p if sh == 0 else pltpu.roll(p, shift=sh, axis=1)
                wm = wmask_ref[t, :]                 # (HW,) masked weight row
                parts[t % N_PARTS] = parts[t % N_PARTS] + shifted * wm[None, :]
                t += 1
    acc = (parts[0] + parts[1]) + (parts[2] + parts[3])
    return jax.nn.sigmoid(acc)                       # (bt, HW) float32


# --------------------------------------------------------------------------- #
# Kernels
# --------------------------------------------------------------------------- #
def _fused_kernel(wmask_ref, x_ref, o_ref, *, H, W):
    """One grid step: full (bt, C, H*W) slab -> stats -> conv -> gate."""
    x = x_ref[...]                                       # (bt, C, HW)
    avg = jnp.mean(x, axis=1, dtype=jnp.float32)         # f32 accumulation
    mx = jnp.max(x, axis=1).astype(jnp.float32)
    attn = _conv7x7_sigmoid(avg, mx, wmask_ref, H=H, W=W)
    o_ref[...] = x * attn[:, None, :].astype(x.dtype)


def _attn_kernel(wmask_ref, x_ref, attn_ref, sum_sc, max_sc, *, H, W, C):
    """Capacity path, pass 1: accumulate channel sum/max over C-tiles, then
    finish the conv + sigmoid on the last C step."""
    ci = pl.program_id(1)

    @pl.when(ci == 0)
    def _():
        sum_sc[...] = jnp.zeros_like(sum_sc)
        max_sc[...] = jnp.full_like(max_sc, -jnp.inf)

    x = x_ref[...]                                       # (1, ct, HW)
    sum_sc[...] += jnp.sum(x, axis=1, dtype=jnp.float32)
    max_sc[...] = jnp.maximum(max_sc[...], jnp.max(x, axis=1).astype(jnp.float32))

    @pl.when(ci == pl.num_programs(1) - 1)
    def _():
        avg = sum_sc[...] * (1.0 / C)
        attn = _conv7x7_sigmoid(avg, max_sc[...], wmask_ref, H=H, W=W)
        attn_ref[...] = attn[:, None, :]


def _gate_kernel(attn_ref, x_ref, o_ref):
    """Capacity path, pass 2: gate each (1, ct, HW) block with the attn map."""
    x = x_ref[...]                                       # (1, ct, HW)
    attn = attn_ref[...]                                 # (1, 1, HW) f32
    o_ref[...] = x * attn.astype(x.dtype)


# --------------------------------------------------------------------------- #
# Wrapper helpers
# --------------------------------------------------------------------------- #
def _physical_vmem_bytes():
    try:
        cap = getattr(pltpu.get_tpu_info(), "vmem_capacity_bytes", None)
        if cap:
            return int(cap)
    except Exception:
        pass
    return 64 * 1024 * 1024          # conservative default (v7x = 64 MiB/core)


def _build_masked_weights(weight, H, W):
    """(1, 2, 7, 7) OIHW conv weight -> (98, H*W) f32 masked-weight table.

    Row (c*49 + ky*7 + kx) is weight[0, c, ky, kx] broadcast over the flat
    output positions whose (row+dy, col+dx) tap lies inside the image, and 0
    where the tap falls in the zero padding.  Tiny wrapper-side op, computed
    once per call regardless of batch / grid size.
    """
    HW = H * W
    flat = jnp.arange(HW, dtype=jnp.int32)
    row = flat // W
    col = flat % W
    w = weight.astype(jnp.float32).reshape(N_IN, KSIZE, KSIZE)
    rows = []
    for c in range(N_IN):
        for ky in range(KSIZE):
            dy = ky - PAD
            rmask = (row + dy >= 0) & (row + dy < H)
            for kx in range(KSIZE):
                dx = kx - PAD
                ok = rmask & ((col + dx >= 0) & (col + dx < W))
                rows.append(jnp.where(ok, w[c, ky, kx], 0.0))
    return jnp.stack(rows, axis=0)                       # (98, HW)


def _pick_batch_tile(batch, per_batch_bytes, target_bytes):
    """Largest divisor of `batch` near `target_bytes`, keeping >= 2 grid steps
    when batch >= 2 so a v7x megacore has parallel work."""
    bt = int(max(1, min(batch, target_bytes // max(per_batch_bytes, 1))))
    while batch % bt:
        bt -= 1
    if batch >= 2 and batch // bt < 2:
        bt2 = batch // 2
        while bt2 >= 1 and batch % bt2:
            bt2 -= 1
        bt = max(bt2, 1)
    return bt


def _pick_channel_tile(C, max_ct):
    """Largest divisor of C <= max_ct that is a multiple of 8 (or C itself),
    so the (ct, HW) block trailing dims stay TPU-tileable."""
    max_ct = int(max(1, min(C, max_ct)))
    for cand in range(max_ct, 0, -1):
        if C % cand == 0 and (cand % 8 == 0 or cand == C):
            return cand
    return C


# --------------------------------------------------------------------------- #
# Public entry point
# --------------------------------------------------------------------------- #
def spatial_attention(x, weight, *, _force_split=False, _max_channel_tile=None):
    """x: (B, C, H, W); weight: (1, 2, 7, 7) float (PyTorch OIHW, no bias)."""
    B, C, H, W = x.shape
    HW = H * W

    # Lane-dense layout: fold (H, W) into the last (lane) axis in the wrapper
    # (a free, contiguous reshape handled by XLA, not in-kernel).
    x_flat = x.reshape(B, C, HW)
    wmask = _build_masked_weights(weight, H, W)          # (98, HW) f32

    itemsize = jnp.dtype(x.dtype).itemsize
    per_batch_bytes = C * HW * itemsize
    wmask_bytes = N_TAPS * HW * 4

    physical = _physical_vmem_bytes()
    vmem_limit = int(min(100 * 1024 * 1024, (physical * 3) // 4))
    # slab ~ limit/6 leaves room for double-buffered input + output, the
    # resident masked-weight table and f32 temporaries.
    slab_budget = max((vmem_limit - 4 * wmask_bytes) // 6, 512 * 1024)

    if not _force_split and per_batch_bytes <= slab_budget:
        # ---------------- fused single-kernel path ---------------- #
        bt = _pick_batch_tile(B, per_batch_bytes, slab_budget)
        kernel = functools.partial(_fused_kernel, H=H, W=W)
        out_flat = pl.pallas_call(
            kernel,
            out_shape=jax.ShapeDtypeStruct((B, C, HW), x.dtype),
            grid_spec=pltpu.PrefetchScalarGridSpec(
                num_scalar_prefetch=0,
                grid=(B // bt,),
                in_specs=[
                    pl.BlockSpec((N_TAPS, HW), lambda b: (0, 0)),   # resident
                    pl.BlockSpec((bt, C, HW), lambda b: (b, 0, 0)),
                ],
                out_specs=pl.BlockSpec((bt, C, HW), lambda b: (b, 0, 0)),
            ),
            compiler_params=pltpu.CompilerParams(
                dimension_semantics=("parallel",),
                vmem_limit_bytes=vmem_limit,
            ),
        )(wmask, x_flat)
        return out_flat.reshape(B, C, H, W)

    # ---------------- capacity fallback: C-reduction + gate ---------------- #
    # TODO(synk): halo-tile H into an extra *parallel* grid axis so a B==1
    # input still fills both v7x TensorCores and huge H*W planes can be split;
    # today only the channel axis is tiled here.
    max_ct = max(vmem_limit // 8, 256 * 1024) // max(HW * itemsize, 1)
    if _max_channel_tile is not None:
        max_ct = min(max_ct, _max_channel_tile)
    ct = _pick_channel_tile(C, max_ct)

    attn_kernel = functools.partial(_attn_kernel, H=H, W=W, C=C)
    attn = pl.pallas_call(
        attn_kernel,
        out_shape=jax.ShapeDtypeStruct((B, 1, HW), jnp.float32),
        grid_spec=pltpu.PrefetchScalarGridSpec(
            num_scalar_prefetch=0,
            grid=(B, C // ct),
            in_specs=[
                pl.BlockSpec((N_TAPS, HW), lambda b, c: (0, 0)),    # resident
                pl.BlockSpec((1, ct, HW), lambda b, c: (b, c, 0)),
            ],
            out_specs=pl.BlockSpec((1, 1, HW), lambda b, c: (b, 0, 0)),
            scratch_shapes=[pltpu.VMEM((1, HW), jnp.float32),
                            pltpu.VMEM((1, HW), jnp.float32)],
        ),
        compiler_params=pltpu.CompilerParams(
            dimension_semantics=("parallel", "arbitrary"),
            vmem_limit_bytes=vmem_limit,
        ),
    )(wmask, x_flat)

    out_flat = pl.pallas_call(
        _gate_kernel,
        out_shape=jax.ShapeDtypeStruct((B, C, HW), x.dtype),
        grid_spec=pltpu.PrefetchScalarGridSpec(
            num_scalar_prefetch=0,
            grid=(B, C // ct),
            in_specs=[
                pl.BlockSpec((1, 1, HW), lambda b, c: (b, 0, 0)),
                pl.BlockSpec((1, ct, HW), lambda b, c: (b, c, 0)),
            ],
            out_specs=pl.BlockSpec((1, ct, HW), lambda b, c: (b, c, 0)),
        ),
        compiler_params=pltpu.CompilerParams(
            dimension_semantics=("parallel", "parallel"),
            vmem_limit_bytes=vmem_limit,
        ),
    )(attn, x_flat)
    return out_flat.reshape(B, C, H, W)


# --------------------------------------------------------------------------- #
# Pure-JAX reference (mirrors the PyTorch forward)
# --------------------------------------------------------------------------- #
def _reference(x, weight):
    avg = jnp.mean(x, axis=1, keepdims=True)
    mx = jnp.max(x, axis=1, keepdims=True)
    cat = jnp.concatenate([avg, mx], axis=1)
    out = lax.conv_general_dilated(
        cat, weight.astype(x.dtype), window_strides=(1, 1),
        padding=((PAD, PAD), (PAD, PAD)),
        dimension_numbers=("NCHW", "OIHW", "NCHW"))
    return x * jax.nn.sigmoid(out)


if __name__ == "__main__":
    key = jax.random.PRNGKey(0)
    k_x, k_w, k_x2 = jax.random.split(key, 3)

    # Deterministic synthetic init for conv1.weight: (1, 2, 7, 7), no bias.
    fan_in = N_IN * KSIZE * KSIZE
    weight = jax.random.normal(k_w, (1, N_IN, KSIZE, KSIZE), jnp.float32) \
        * (2.0 / fan_in) ** 0.5

    # 1) Fused single-kernel path at the module's typical small shape.
    B, C, H, W = 2, 4, 16, 16
    x = jax.random.normal(k_x, (B, C, H, W), dtype=jnp.float32)
    out = jax.block_until_ready(spatial_attention(x, weight))
    ref = _reference(x, weight)
    assert out.shape == (B, C, H, W)
    err = float(jnp.max(jnp.abs(out - ref)))
    assert jnp.allclose(out, ref, atol=1e-3, rtol=1e-3), err

    # 2) Capacity-fallback path (channel reduction + gate kernels), forced at a
    #    small shape so the multi-step C accumulation is exercised and checked.
    B2, C2, H2, W2 = 2, 16, 8, 16
    x2 = jax.random.normal(k_x2, (B2, C2, H2, W2), dtype=jnp.float32)
    out2 = jax.block_until_ready(
        spatial_attention(x2, weight, _force_split=True, _max_channel_tile=8))
    ref2 = _reference(x2, weight)
    err2 = float(jnp.max(jnp.abs(out2 - ref2)))
    assert jnp.allclose(out2, ref2, atol=1e-3, rtol=1e-3), err2

    print("KERNEL_OK")
</pallas_src>

<mosaic_0001>
module attributes {stable_mosaic.version = 11 : i64} {
  func.func @_fused_kernel(%arg0: i32, %arg1: memref<98x256xf32, #tpu.memory_space<vmem>>, %arg2: memref<1x4x256xf32, #tpu.memory_space<vmem>>, %arg3: memref<1x4x256xf32, #tpu.memory_space<vmem>>) attributes {dimension_semantics = [#tpu.dimension_semantics<parallel>], iteration_bounds = array<i64: 2>, scalar_prefetch = 0 : i64, scratch_operands = 0 : i64, tpu.core_type = #tpu.core_type<tc>, window_params = [{pipeline_mode = #tpu.pipeline_mode<synchronous>, transform_indices = @transform_0, window_bounds = array<i64: 98, 256>}, {transform_indices = @transform_1, window_bounds = array<i64: 1, 4, 256>}, {transform_indices = @transform_2, window_bounds = array<i64: 1, 4, 256>}]} {
    %c0 = arith.constant 0 : index
    %c0_0 = arith.constant 0 : index
    %c0_1 = arith.constant 0 : index
    %0 = vector.load %arg2[%c0, %c0_0, %c0_1] : memref<1x4x256xf32, #tpu.memory_space<vmem>>, vector<1x4x256xf32>
    %cst = arith.constant dense<0.000000e+00> : vector<1x256xf32>
    %1 = vector.multi_reduction <add>, %0, %cst [1] : vector<1x4x256xf32> to vector<1x256xf32>
    %cst_2 = arith.constant 4.000000e+00 : f32
    %2 = vector.broadcast %cst_2 : f32 to vector<1x256xf32>
    %3 = arith.divf %1, %2 : vector<1x256xf32>
    %cst_3 = arith.constant dense<0xFF800000> : vector<1x256xf32>
    %4 = vector.multi_reduction <maximumf>, %0, %cst_3 [1] : vector<1x4x256xf32> to vector<1x256xf32>
    %cst_4 = arith.constant 0.000000e+00 : f32
    %5 = vector.broadcast %cst_4 : f32 to vector<1x256xf32>
    %cst_5 = arith.constant 0.000000e+00 : f32
    %6 = vector.broadcast %cst_5 : f32 to vector<1x256xf32>
    %cst_6 = arith.constant 0.000000e+00 : f32
    %7 = vector.broadcast %cst_6 : f32 to vector<1x256xf32>
    %cst_7 = arith.constant 0.000000e+00 : f32
    %8 = vector.broadcast %cst_7 : f32 to vector<1x256xf32>
    %c51_i32 = arith.constant 51 : i32
    %9 = tpu.dynamic_rotate %3 by %c51_i32 dim 1 : vector<1x256xf32>, i32 -> vector<1x256xf32>
    %c0_8 = arith.constant 0 : index
    %c0_9 = arith.constant 0 : index
    %10 = vector.load %arg1[%c0_8, %c0_9] : memref<98x256xf32, #tpu.memory_space<vmem>>, vector<1x256xf32>
    %11 = vector.shape_cast %10 : vector<1x256xf32> to vector<256xf32>
    %12 = vector.shape_cast %11 : vector<256xf32> to vector<1x256xf32>
    %13 = arith.mulf %9, %12 : vector<1x256xf32>
    %14 = arith.addf %5, %13 : vector<1x256xf32>
    %c50_i32 = arith.constant 50 : i32
    %15 = tpu.dynamic_rotate %3 by %c50_i32 dim 1 : vector<1x256xf32>, i32 -> vector<1x256xf32>
    %c1 = arith.constant 1 : index
    %c0_10 = arith.constant 0 : index
    %16 = vector.load %arg1[%c1, %c0_10] : memref<98x256xf32, #tpu.memory_space<vmem>>, vector<1x256xf32>
    %17 = vector.shape_cast %16 : vector<1x256xf32> to vector<256xf32>
    %18 = vector.shape_cast %17 : vector<256xf32> to vector<1x256xf32>
    %19 = arith.mulf %15, %18 : vector<1x256xf32>
    %20 = arith.addf %6, %19 : vector<1x256xf32>
    %c49_i32 = arith.constant 49 : i32
    %21 = tpu.dynamic_rotate %3 by %c49_i32 dim 1 : vector<1x256xf32>, i32 -> vector<1x256xf32>
    %c2 = arith.constant 2 : index
    %c0_11 = arith.constant 0 : index
    %22 = vector.load %arg1[%c2, %c0_11] : memref<98x256xf32, #tpu.memory_space<vmem>>, vector<1x256xf32>
    %23 = vector.shape_cast %22 : vector<1x256xf32> to vector<256xf32>
    %24 = vector.shape_cast %23 : vector<256xf32> to vector<1x256xf32>
    %25 = arith.mulf %21, %24 : vector<1x256xf32>
    %26 = arith.addf %7, %25 : vector<1x256xf32>
    %c48_i32 = arith.constant 48 : i32
    %27 = tpu.dynamic_rotate %3 by %c48_i32 dim 1 : vector<1x256xf32>, i32 -> vector<1x256xf32>
    %c3 = arith.constant 3 : index
    %c0_12 = arith.constant 0 : index
    %28 = vector.load %arg1[%c3, %c0_12] : memref<98x256xf32, #tpu.memory_space<vmem>>, vector<1x256xf32>
    %29 = vector.shape_cast %28 : vector<1x256xf32> to vector<256xf32>
    %30 = vector.shape_cast %29 : vector<256xf32> to vector<1x256xf32>
    %31 = arith.mulf %27, %30 : vector<1x256xf32>
    %32 = arith.addf %8, %31 : vector<1x256xf32>
    %c47_i32 = arith.constant 47 : i32
    %33 = tpu.dynamic_rotate %3 by %c47_i32 dim 1 : vector<1x256xf32>, i32 -> vector<1x256xf32>
    %c4 = arith.constant 4 : index
    %c0_13 = arith.constant 0 : index
    %34 = vector.load %arg1[%c4, %c0_13] : memref<98x256xf32, #tpu.memory_space<vmem>>, vector<1x256xf32>
    %35 = vector.shape_cast %34 : vector<1x256xf32> to vector<256xf32>
    %36 = vector.shape_cast %35 : vector<256xf32> to vector<1x256xf32>
    %37 = arith.mulf %33, %36 : vector<1x256xf32>
    %38 = arith.addf %14, %37 : vector<1x256xf32>
    %c46_i32 = arith.constant 46 : i32
    %39 = tpu.dynamic_rotate %3 by %c46_i32 dim 1 : vector<1x256xf32>, i32 -> vector<1x256xf32>
    %c5 = arith.constant 5 : index
    %c0_14 = arith.constant 0 : index
    %40 = vector.load %arg1[%c5, %c0_14] : memref<98x256xf32, #tpu.memory_space<vmem>>, vector<1x256xf32>
    %41 = vector.shape_cast %40 : vector<1x256xf32> to vector<256xf32>
    %42 = vector.shape_cast %41 : vector<256xf32> to vector<1x256xf32>
    %43 = arith.mulf %39, %42 : vector<1x256xf32>
    %44 = arith.addf %20, %43 : vector<1x256xf32>
    %c45_i32 = arith.constant 45 : i32
    %45 = tpu.dynamic_rotate %3 by %c45_i32 dim 1 : vector<1x256xf32>, i32 -> vector<1x256xf32>
    %c6 = arith.constant 6 : index
    %c0_15 = arith.constant 0 : index
    %46 = vector.load %arg1[%c6, %c0_15] : memref<98x256xf32, #tpu.memory_space<vmem>>, vector<1x256xf32>
    %47 = vector.shape_cast %46 : vector<1x256xf32> to vector<256xf32>
    %48 = vector.shape_cast %47 : vector<256xf32> to vector<1x256xf32>
    %49 = arith.mulf %45, %48 : vector<1x256xf32>
    %50 = arith.addf %26, %49 : vector<1x256xf32>
    %c35_i32 = arith.constant 35 : i32
    %51 = tpu.dynamic_rotate %3 by %c35_i32 dim 1 : vector<1x256xf32>, i32 -> vector<1x256xf32>
    %c7 = arith.constant 7 : index
    %c0_16 = arith.constant 0 : index
    %52 = vector.load %arg1[%c7, %c0_16] : memref<98x256xf32, #tpu.memory_space<vmem>>, vector<1x256xf32>
    %53 = vector.shape_cast %52 : vector<1x256xf32> to vector<256xf32>
    %54 = vector.shape_cast %53 : vector<256xf32> to vector<1x256xf32>
    %55 = arith.mulf %51, %54 : vector<1x256xf32>
    %56 = arith.addf %32, %55 : vector<1x256xf32>
    %c34_i32 = arith.constant 34 : i32
    %57 = tpu.dynamic_rotate %3 by %c34_i32 dim 1 : vector<1x256xf32>, i32 -> vector<1x256xf32>
    %c8 = arith.constant 8 : index
    %c0_17 = arith.constant 0 : index
    %58 = vector.load %arg1[%c8, %c0_17] : memref<98x256xf32, #tpu.memory_space<vmem>>, vector<1x256xf32>
    %59 = vector.shape_cast %58 : vector<1x256xf32> to vector<256xf32>
    %60 = vector.shape_cast %59 : vector<256xf32> to vector<1x256xf32>
    %61 = arith.mulf %57, %60 : vector<1x256xf32>
    %62 = arith.addf %38, %61 : vector<1x256xf32>
    %c33_i32 = arith.constant 33 : i32
    %63 = tpu.dynamic_rotate %3 by %c33_i32 dim 1 : vector<1x256xf32>, i32 -> vector<1x256xf32>
    %c9 = arith.constant 9 : index
    %c0_18 = arith.constant 0 : index
    %64 = vector.load %arg1[%c9, %c0_18] : memref<98x256xf32, #tpu.memory_space<vmem>>, vector<1x256xf32>
    %65 = vector.shape_cast %64 : vector<1x256xf32> to vector<256xf32>
    %66 = vector.shape_cast %65 : vector<256xf32> to vector<1x256xf32>
    %67 = arith.mulf %63, %66 : vector<1x256xf32>
    %68 = arith.addf %44, %67 : vector<1x256xf32>
    %c32_i32 = arith.constant 32 : i32
    %69 = tpu.dynamic_rotate %3 by %c32_i32 dim 1 : vector<1x256xf32>, i32 -> vector<1x256xf32>
    %c10 = arith.constant 10 : index
    %c0_19 = arith.constant 0 : index
    %70 = vector.load %arg1[%c10, %c0_19] : memref<98x256xf32, #tpu.memory_space<vmem>>, vector<1x256xf32>
    %71 = vector.shape_cast %70 : vector<1x256xf32> to vector<256xf32>
    %72 = vector.shape_cast %71 : vector<256xf32> to vector<1x256xf32>
    %73 = arith.mulf %69, %72 : vector<1x256xf32>
    %74 = arith.addf %50, %73 : vector<1x256xf32>
    %c31_i32 = arith.constant 31 : i32
    %75 = tpu.dynamic_rotate %3 by %c31_i32 dim 1 : vector<1x256xf32>, i32 -> vector<1x256xf32>
    %c11 = arith.constant 11 : index
    %c0_20 = arith.constant 0 : index
    %76 = vector.load %arg1[%c11, %c0_20] : memref<98x256xf32, #tpu.memory_space<vmem>>, vector<1x256xf32>
    %77 = vector.shape_cast %76 : vector<1x256xf32> to vector<256xf32>
    %78 = vector.shape_cast %77 : vector<256xf32> to vector<1x256xf32>
    %79 = arith.mulf %75, %78 : vector<1x256xf32>
    %80 = arith.addf %56, %79 : vector<1x256xf32>
    %c30_i32 = arith.constant 30 : i32
    %81 = tpu.dynamic_rotate %3 by %c30_i32 dim 1 : vector<1x256xf32>, i32 -> vector<1x256xf32>
    %c12 = arith.constant 12 : index
    %c0_21 = arith.constant 0 : index
    %82 = vector.load %arg1[%c12, %c0_21] : memref<98x256xf32, #tpu.memory_space<vmem>>, vector<1x256xf32>
    %83 = vector.shape_cast %82 : vector<1x256xf32> to vector<256xf32>
    %84 = vector.shape_cast %83 : vector<256xf32> to vector<1x256xf32>
    %85 = arith.mulf %81, %84 : vector<1x256xf32>
    %86 = arith.addf %62, %85 : vector<1x256xf32>
    %c29_i32 = arith.constant 29 : i32
    %87 = tpu.dynamic_rotate %3 by %c29_i32 dim 1 : vector<1x256xf32>, i32 -> vector<1x256xf32>
    %c13 = arith.constant 13 : index
    %c0_22 = arith.constant 0 : index
    %88 = vector.load %arg1[%c13, %c0_22] : memref<98x256xf32, #tpu.memory_space<vmem>>, vector<1x256xf32>
    %89 = vector.shape_cast %88 : vector<1x256xf32> to vector<256xf32>
    %90 = vector.shape_cast %89 : vector<256xf32> to vector<1x256xf32>
    %91 = arith.mulf %87, %90 : vector<1x256xf32>
    %92 = arith.addf %68, %91 : vector<1x256xf32>
    %c19_i32 = arith.constant 19 : i32
    %93 = tpu.dynamic_rotate %3 by %c19_i32 dim 1 : vector<1x256xf32>, i32 -> vector<1x256xf32>
    %c14 = arith.constant 14 : index
    %c0_23 = arith.constant 0 : index
    %94 = vector.load %arg1[%c14, %c0_23] : memref<98x256xf32, #tpu.memory_space<vmem>>, vector<1x256xf32>
    %95 = vector.shape_cast %94 : vector<1x256xf32> to vector<256xf32>
    %96 = vector.shape_cast %95 : vector<256xf32> to vector<1x256xf32>
    %97 = arith.mulf %93, %96 : vector<1x256xf32>
    %98 = arith.addf %74, %97 : vector<1x256xf32>
    %c18_i32 = arith.constant 18 : i32
    %99 = tpu.dynamic_rotate %3 by %c18_i32 dim 1 : vector<1x256xf32>, i32 -> vector<1x256xf32>
    %c15 = arith.constant 15 : index
    %c0_24 = arith.constant 0 : index
    %100 = vector.load %arg1[%c15, %c0_24] : memref<98x256xf32, #tpu.memory_space<vmem>>, vector<1x256xf32>
    %101 = vector.shape_cast %100 : vector<1x256xf32> to vector<256xf32>
    %102 = vector.shape_cast %101 : vector<256xf32> to vector<1x256xf32>
    %103 = arith.mulf %99, %102 : vector<1x256xf32>
    %104 = arith.addf %80, %103 : vector<1x256xf32>
    %c17_i32 = arith.constant 17 : i32
    %105 = tpu.dynamic_rotate %3 by %c17_i32 dim 1 : vector<1x256xf32>, i32 -> vector<1x256xf32>
    %c16 = arith.constant 16 : index
    %c0_25 = arith.constant 0 : index
    %106 = vector.load %arg1[%c16, %c0_25] : memref<98x256xf32, #tpu.memory_space<vmem>>, vector<1x256xf32>
    %107 = vector.shape_cast %106 : vector<1x256xf32> to vector<256xf32>
    %108 = vector.shape_cast %107 : vector<256xf32> to vector<1x256xf32>
    %109 = arith.mulf %105, %108 : vector<1x256xf32>
    %110 = arith.addf %86, %109 : vector<1x256xf32>
    %c16_i32 = arith.constant 16 : i32
    %111 = tpu.dynamic_rotate %3 by %c16_i32 dim 1 : vector<1x256xf32>, i32 -> vector<1x256xf32>
    %c17 = arith.constant 17 : index
    %c0_26 = arith.constant 0 : index
    %112 = vector.load %arg1[%c17, %c0_26] : memref<98x256xf32, #tpu.memory_space<vmem>>, vector<1x256xf32>
    %113 = vector.shape_cast %112 : vector<1x256xf32> to vector<256xf32>
    %114 = vector.shape_cast %113 : vector<256xf32> to vector<1x256xf32>
    %115 = arith.mulf %111, %114 : vector<1x256xf32>
    %116 = arith.addf %92, %115 : vector<1x256xf32>
    %c15_i32 = arith.constant 15 : i32
    %117 = tpu.dynamic_rotate %3 by %c15_i32 dim 1 : vector<1x256xf32>, i32 -> vector<1x256xf32>
    %c18 = arith.constant 18 : index
    %c0_27 = arith.constant 0 : index
    %118 = vector.load %arg1[%c18, %c0_27] : memref<98x256xf32, #tpu.memory_space<vmem>>, vector<1x256xf32>
    %119 = vector.shape_cast %118 : vector<1x256xf32> to vector<256xf32>
    %120 = vector.shape_cast %119 : vector<256xf32> to vector<1x256xf32>
    %121 = arith.mulf %117, %120 : vector<1x256xf32>
    %122 = arith.addf %98, %121 : vector<1x256xf32>
    %c14_i32 = arith.constant 14 : i32
    %123 = tpu.dynamic_rotate %3 by %c14_i32 dim 1 : vector<1x256xf32>, i32 -> vector<1x256xf32>
    %c19 = arith.constant 19 : index
    %c0_28 = arith.constant 0 : index
    %124 = vector.load %arg1[%c19, %c0_28] : memref<98x256xf32, #tpu.memory_space<vmem>>, vector<1x256xf32>
    %125 = vector.shape_cast %124 : vector<1x256xf32> to vector<256xf32>
    %126 = vector.shape_cast %125 : vector<256xf32> to vector<1x256xf32>
    %127 = arith.mulf %123, %126 : vector<1x256xf32>
    %128 = arith.addf %104, %127 : vector<1x256xf32>
    %c13_i32 = arith.constant 13 : i32
    %129 = tpu.dynamic_rotate %3 by %c13_i32 dim 1 : vector<1x256xf32>, i32 -> vector<1x256xf32>
    %c20 = arith.constant 20 : index
    %c0_29 = arith.constant 0 : index
    %130 = vector.load %arg1[%c20, %c0_29] : memref<98x256xf32, #tpu.memory_space<vmem>>, vector<1x256xf32>
    %131 = vector.shape_cast %130 : vector<1x256xf32> to vector<256xf32>
    %132 = vector.shape_cast %131 : vector<256xf32> to vector<1x256xf32>
    %133 = arith.mulf %129, %132 : vector<1x256xf32>
    %134 = arith.addf %110, %133 : vector<1x256xf32>
    %c3_i32 = arith.constant 3 : i32
    %135 = tpu.dynamic_rotate %3 by %c3_i32 dim 1 : vector<1x256xf32>, i32 -> vector<1x256xf32>
    %c21 = arith.constant 21 : index
    %c0_30 = arith.constant 0 : index
    %136 = vector.load %arg1[%c21, %c0_30] : memref<98x256xf32, #tpu.memory_space<vmem>>, vector<1x256xf32>
    %137 = vector.shape_cast %136 : vector<1x256xf32> to vector<256xf32>
    %138 = vector.shape_cast %137 : vector<256xf32> to vector<1x256xf32>
    %139 = arith.mulf %135, %138 : vector<1x256xf32>
    %140 = arith.addf %116, %139 : vector<1x256xf32>
    %c2_i32 = arith.constant 2 : i32
    %141 = tpu.dynamic_rotate %3 by %c2_i32 dim 1 : vector<1x256xf32>, i32 -> vector<1x256xf32>
    %c22 = arith.constant 22 : index
    %c0_31 = arith.constant 0 : index
    %142 = vector.load %arg1[%c22, %c0_31] : memref<98x256xf32, #tpu.memory_space<vmem>>, vector<1x256xf32>
    %143 = vector.shape_cast %142 : vector<1x256xf32> to vector<256xf32>
    %144 = vector.shape_cast %143 : vector<256xf32> to vector<1x256xf32>
    %145 = arith.mulf %141, %144 : vector<1x256xf32>
    %146 = arith.addf %122, %145 : vector<1x256xf32>
    %c1_i32 = arith.constant 1 : i32
    %147 = tpu.dynamic_rotate %3 by %c1_i32 dim 1 : vector<1x256xf32>, i32 -> vector<1x256xf32>
    %c23 = arith.constant 23 : index
    %c0_32 = arith.constant 0 : index
    %148 = vector.load %arg1[%c23, %c0_32] : memref<98x256xf32, #tpu.memory_space<vmem>>, vector<1x256xf32>
    %149 = vector.shape_cast %148 : vector<1x256xf32> to vector<256xf32>
    %150 = vector.shape_cast %149 : vector<256xf32> to vector<1x256xf32>
    %151 = arith.mulf %147, %150 : vector<1x256xf32>
    %152 = arith.addf %128, %151 : vector<1x256xf32>
    %c24 = arith.constant 24 : index
    %c0_33 = arith.constant 0 : index
    %153 = vector.load %arg1[%c24, %c0_33] : memref<98x256xf32, #tpu.memory_space<vmem>>, vector<1x256xf32>
    %154 = vector.shape_cast %153 : vector<1x256xf32> to vector<256xf32>
    %155 = vector.shape_cast %154 : vector<256xf32> to vector<1x256xf32>
    %156 = arith.mulf %3, %155 : vector<1x256xf32>
    %157 = arith.addf %134, %156 : vector<1x256xf32>
    %c255_i32 = arith.constant 255 : i32
    %158 = tpu.dynamic_rotate %3 by %c255_i32 dim 1 : vector<1x256xf32>, i32 -> vector<1x256xf32>
    %c25 = arith.constant 25 : index
    %c0_34 = arith.constant 0 : index
    %159 = vector.load %arg1[%c25, %c0_34] : memref<98x256xf32, #tpu.memory_space<vmem>>, vector<1x256xf32>
    %160 = vector.shape_cast %159 : vector<1x256xf32> to vector<256xf32>
    %161 = vector.shape_cast %160 : vector<256xf32> to vector<1x256xf32>
    %162 = arith.mulf %158, %161 : vector<1x256xf32>
    %163 = arith.addf %140, %162 : vector<1x256xf32>
    %c254_i32 = arith.constant 254 : i32
    %164 = tpu.dynamic_rotate %3 by %c254_i32 dim 1 : vector<1x256xf32>, i32 -> vector<1x256xf32>
    %c26 = arith.constant 26 : index
    %c0_35 = arith.constant 0 : index
    %165 = vector.load %arg1[%c26, %c0_35] : memref<98x256xf32, #tpu.memory_space<vmem>>, vector<1x256xf32>
    %166 = vector.shape_cast %165 : vector<1x256xf32> to vector<256xf32>
    %167 = vector.shape_cast %166 : vector<256xf32> to vector<1x256xf32>
    %168 = arith.mulf %164, %167 : vector<1x256xf32>
    %169 = arith.addf %146, %168 : vector<1x256xf32>
    %c253_i32 = arith.constant 253 : i32
    %170 = tpu.dynamic_rotate %3 by %c253_i32 dim 1 : vector<1x256xf32>, i32 -> vector<1x256xf32>
    %c27 = arith.constant 27 : index
    %c0_36 = arith.constant 0 : index
    %171 = vector.load %arg1[%c27, %c0_36] : memref<98x256xf32, #tpu.memory_space<vmem>>, vector<1x256xf32>
    %172 = vector.shape_cast %171 : vector<1x256xf32> to vector<256xf32>
    %173 = vector.shape_cast %172 : vector<256xf32> to vector<1x256xf32>
    %174 = arith.mulf %170, %173 : vector<1x256xf32>
    %175 = arith.addf %152, %174 : vector<1x256xf32>
    %c243_i32 = arith.constant 243 : i32
    %176 = tpu.dynamic_rotate %3 by %c243_i32 dim 1 : vector<1x256xf32>, i32 -> vector<1x256xf32>
    %c28 = arith.constant 28 : index
    %c0_37 = arith.constant 0 : index
    %177 = vector.load %arg1[%c28, %c0_37] : memref<98x256xf32, #tpu.memory_space<vmem>>, vector<1x256xf32>
    %178 = vector.shape_cast %177 : vector<1x256xf32> to vector<256xf32>
    %179 = vector.shape_cast %178 : vector<256xf32> to vector<1x256xf32>
    %180 = arith.mulf %176, %179 : vector<1x256xf32>
    %181 = arith.addf %157, %180 : vector<1x256xf32>
    %c242_i32 = arith.constant 242 : i32
    %182 = tpu.dynamic_rotate %3 by %c242_i32 dim 1 : vector<1x256xf32>, i32 -> vector<1x256xf32>
    %c29 = arith.constant 29 : index
    %c0_38 = arith.constant 0 : index
    %183 = vector.load %arg1[%c29, %c0_38] : memref<98x256xf32, #tpu.memory_space<vmem>>, vector<1x256xf32>
    %184 = vector.shape_cast %183 : vector<1x256xf32> to vector<256xf32>
    %185 = vector.shape_cast %184 : vector<256xf32> to vector<1x256xf32>
    %186 = arith.mulf %182, %185 : vector<1x256xf32>
    %187 = arith.addf %163, %186 : vector<1x256xf32>
    %c241_i32 = arith.constant 241 : i32
    %188 = tpu.dynamic_rotate %3 by %c241_i32 dim 1 : vector<1x256xf32>, i32 -> vector<1x256xf32>
    %c30 = arith.constant 30 : index
    %c0_39 = arith.constant 0 : index
    %189 = vector.load %arg1[%c30, %c0_39] : memref<98x256xf32, #tpu.memory_space<vmem>>, vector<1x256xf32>
    %190 = vector.shape_cast %189 : vector<1x256xf32> to vector<256xf32>
    %191 = vector.shape_cast %190 : vector<256xf32> to vector<1x256xf32>
    %192 = arith.mulf %188, %191 : vector<1x256xf32>
    %193 = arith.addf %169, %192 : vector<1x256xf32>
    %c240_i32 = arith.constant 240 : i32
    %194 = tpu.dynamic_rotate %3 by %c240_i32 dim 1 : vector<1x256xf32>, i32 -> vector<1x256xf32>
    %c31 = arith.constant 31 : index
    %c0_40 = arith.constant 0 : index
    %195 = vector.load %arg1[%c31, %c0_40] : memref<98x256xf32, #tpu.memory_space<vmem>>, vector<1x256xf32>
    %196 = vector.shape_cast %195 : vector<1x256xf32> to vector<256xf32>
    %197 = vector.shape_cast %196 : vector<256xf32> to vector<1x256xf32>
    %198 = arith.mulf %194, %197 : vector<1x256xf32>
    %199 = arith.addf %175, %198 : vector<1x256xf32>
    %c239_i32 = arith.constant 239 : i32
    %200 = tpu.dynamic_rotate %3 by %c239_i32 dim 1 : vector<1x256xf32>, i32 -> vector<1x256xf32>
    %c32 = arith.constant 32 : index
    %c0_41 = arith.constant 0 : index
    %201 = vector.load %arg1[%c32, %c0_41] : memref<98x256xf32, #tpu.memory_space<vmem>>, vector<1x256xf32>
    %202 = vector.shape_cast %201 : vector<1x256xf32> to vector<256xf32>
    %203 = vector.shape_cast %202 : vector<256xf32> to vector<1x256xf32>
    %204 = arith.mulf %200, %203 : vector<1x256xf32>
    %205 = arith.addf %181, %204 : vector<1x256xf32>
    %c238_i32 = arith.constant 238 : i32
    %206 = tpu.dynamic_rotate %3 by %c238_i32 dim 1 : vector<1x256xf32>, i32 -> vector<1x256xf32>
    %c33 = arith.constant 33 : index
    %c0_42 = arith.constant 0 : index
    %207 = vector.load %arg1[%c33, %c0_42] : memref<98x256xf32, #tpu.memory_space<vmem>>, vector<1x256xf32>
    %208 = vector.shape_cast %207 : vector<1x256xf32> to vector<256xf32>
    %209 = vector.shape_cast %208 : vector<256xf32> to vector<1x256xf32>
    %210 = arith.mulf %206, %209 : vector<1x256xf32>
    %211 = arith.addf %187, %210 : vector<1x256xf32>
    %c237_i32 = arith.constant 237 : i32
    %212 = tpu.dynamic_rotate %3 by %c237_i32 dim 1 : vector<1x256xf32>, i32 -> vector<1x256xf32>
    %c34 = arith.constant 34 : index
    %c0_43 = arith.constant 0 : index
    %213 = vector.load %arg1[%c34, %c0_43] : memref<98x256xf32, #tpu.memory_space<vmem>>, vector<1x256xf32>
    %214 = vector.shape_cast %213 : vector<1x256xf32> to vector<256xf32>
    %215 = vector.shape_cast %214 : vector<256xf32> to vector<1x256xf32>
    %216 = arith.mulf %212, %215 : vector<1x256xf32>
    %217 = arith.addf %193, %216 : vector<1x256xf32>
    %c227_i32 = arith.constant 227 : i32
    %218 = tpu.dynamic_rotate %3 by %c227_i32 dim 1 : vector<1x256xf32>, i32 -> vector<1x256xf32>
    %c35 = arith.constant 35 : index
    %c0_44 = arith.constant 0 : index
    %219 = vector.load %arg1[%c35, %c0_44] : memref<98x256xf32, #tpu.memory_space<vmem>>, vector<1x256xf32>
    %220 = vector.shape_cast %219 : vector<1x256xf32> to vector<256xf32>
    %221 = vector.shape_cast %220 : vector<256xf32> to vector<1x256xf32>
    %222 = arith.mulf %218, %221 : vector<1x256xf32>
    %223 = arith.addf %199, %222 : vector<1x256xf32>
    %c226_i32 = arith.constant 226 : i32
    %224 = tpu.dynamic_rotate %3 by %c226_i32 dim 1 : vector<1x256xf32>, i32 -> vector<1x256xf32>
    %c36 = arith.constant 36 : index
    %c0_45 = arith.constant 0 : index
    %225 = vector.load %arg1[%c36, %c0_45] : memref<98x256xf32, #tpu.memory_space<vmem>>, vector<1x256xf32>
    %226 = vector.shape_cast %225 : vector<1x256xf32> to vector<256xf32>
    %227 = vector.shape_cast %226 : vector<256xf32> to vector<1x256xf32>
    %228 = arith.mulf %224, %227 : vector<1x256xf32>
    %229 = arith.addf %205, %228 : vector<1x256xf32>
    %c225_i32 = arith.constant 225 : i32
    %230 = tpu.dynamic_rotate %3 by %c225_i32 dim 1 : vector<1x256xf32>, i32 -> vector<1x256xf32>
    %c37 = arith.constant 37 : index
    %c0_46 = arith.constant 0 : index
    %231 = vector.load %arg1[%c37, %c0_46] : memref<98x256xf32, #tpu.memory_space<vmem>>, vector<1x256xf32>
    %232 = vector.shape_cast %231 : vector<1x256xf32> to vector<256xf32>
    %233 = vector.shape_cast %232 : vector<256xf32> to vector<1x256xf32>
    %234 = arith.mulf %230, %233 : vector<1x256xf32>
    %235 = arith.addf %211, %234 : vector<1x256xf32>
    %c224_i32 = arith.constant 224 : i32
    %236 = tpu.dynamic_rotate %3 by %c224_i32 dim 1 : vector<1x256xf32>, i32 -> vector<1x256xf32>
    %c38 = arith.constant 38 : index
    %c0_47 = arith.constant 0 : index
    %237 = vector.load %arg1[%c38, %c0_47] : memref<98x256xf32, #tpu.memory_space<vmem>>, vector<1x256xf32>
    %238 = vector.shape_cast %237 : vector<1x256xf32> to vector<256xf32>
    %239 = vector.shape_cast %238 : vector<256xf32> to vector<1x256xf32>
    %240 = arith.mulf %236, %239 : vector<1x256xf32>
    %241 = arith.addf %217, %240 : vector<1x256xf32>
    %c223_i32 = arith.constant 223 : i32
    %242 = tpu.dynamic_rotate %3 by %c223_i32 dim 1 : vector<1x256xf32>, i32 -> vector<1x256xf32>
    %c39 = arith.constant 39 : index
    %c0_48 = arith.constant 0 : index
    %243 = vector.load %arg1[%c39, %c0_48] : memref<98x256xf32, #tpu.memory_space<vmem>>, vector<1x256xf32>
    %244 = vector.shape_cast %243 : vector<1x256xf32> to vector<256xf32>
    %245 = vector.shape_cast %244 : vector<256xf32> to vector<1x256xf32>
    %246 = arith.mulf %242, %245 : vector<1x256xf32>
    %247 = arith.addf %223, %246 : vector<1x256xf32>
    %c222_i32 = arith.constant 222 : i32
    %248 = tpu.dynamic_rotate %3 by %c222_i32 dim 1 : vector<1x256xf32>, i32 -> vector<1x256xf32>
    %c40 = arith.constant 40 : index
    %c0_49 = arith.constant 0 : index
    %249 = vector.load %arg1[%c40, %c0_49] : memref<98x256xf32, #tpu.memory_space<vmem>>, vector<1x256xf32>
    %250 = vector.shape_cast %249 : vector<1x256xf32> to vector<256xf32>
    %251 = vector.shape_cast %250 : vector<256xf32> to vector<1x256xf32>
    %252 = arith.mulf %248, %251 : vector<1x256xf32>
    %253 = arith.addf %229, %252 : vector<1x256xf32>
    %c221_i32 = arith.constant 221 : i32
    %254 = tpu.dynamic_rotate %3 by %c221_i32 dim 1 : vector<1x256xf32>, i32 -> vector<1x256xf32>
    %c41 = arith.constant 41 : index
    %c0_50 = arith.constant 0 : index
    %255 = vector.load %arg1[%c41, %c0_50] : memref<98x256xf32, #tpu.memory_space<vmem>>, vector<1x256xf32>
    %256 = vector.shape_cast %255 : vector<1x256xf32> to vector<256xf32>
    %257 = vector.shape_cast %256 : vector<256xf32> to vector<1x256xf32>
    %258 = arith.mulf %254, %257 : vector<1x256xf32>
    %259 = arith.addf %235, %258 : vector<1x256xf32>
    %c211_i32 = arith.constant 211 : i32
    %260 = tpu.dynamic_rotate %3 by %c211_i32 dim 1 : vector<1x256xf32>, i32 -> vector<1x256xf32>
    %c42 = arith.constant 42 : index
    %c0_51 = arith.constant 0 : index
    %261 = vector.load %arg1[%c42, %c0_51] : memref<98x256xf32, #tpu.memory_space<vmem>>, vector<1x256xf32>
    %262 = vector.shape_cast %261 : vector<1x256xf32> to vector<256xf32>
    %263 = vector.shape_cast %262 : vector<256xf32> to vector<1x256xf32>
    %264 = arith.mulf %260, %263 : vector<1x256xf32>
    %265 = arith.addf %241, %264 : vector<1x256xf32>
    %c210_i32 = arith.constant 210 : i32
    %266 = tpu.dynamic_rotate %3 by %c210_i32 dim 1 : vector<1x256xf32>, i32 -> vector<1x256xf32>
    %c43 = arith.constant 43 : index
    %c0_52 = arith.constant 0 : index
    %267 = vector.load %arg1[%c43, %c0_52] : memref<98x256xf32, #tpu.memory_space<vmem>>, vector<1x256xf32>
    %268 = vector.shape_cast %267 : vector<1x256xf32> to vector<256xf32>
    %269 = vector.shape_cast %268 : vector<256xf32> to vector<1x256xf32>
    %270 = arith.mulf %266, %269 : vector<1x256xf32>
    %271 = arith.addf %247, %270 : vector<1x256xf32>
    %c209_i32 = arith.constant 209 : i32
    %272 = tpu.dynamic_rotate %3 by %c209_i32 dim 1 : vector<1x256xf32>, i32 -> vector<1x256xf32>
    %c44 = arith.constant 44 : index
    %c0_53 = arith.constant 0 : index
    %273 = vector.load %arg1[%c44, %c0_53] : memref<98x256xf32, #tpu.memory_space<vmem>>, vector<1x256xf32>
    %274 = vector.shape_cast %273 : vector<1x256xf32> to vector<256xf32>
    %275 = vector.shape_cast %274 : vector<256xf32> to vector<1x256xf32>
    %276 = arith.mulf %272, %275 : vector<1x256xf32>
    %277 = arith.addf %253, %276 : vector<1x256xf32>
    %c208_i32 = arith.constant 208 : i32
    %278 = tpu.dynamic_rotate %3 by %c208_i32 dim 1 : vector<1x256xf32>, i32 -> vector<1x256xf32>
    %c45 = arith.constant 45 : index
    %c0_54 = arith.constant 0 : index
    %279 = vector.load %arg1[%c45, %c0_54] : memref<98x256xf32, #tpu.memory_space<vmem>>, vector<1x256xf32>
    %280 = vector.shape_cast %279 : vector<1x256xf32> to vector<256xf32>
    %281 = vector.shape_cast %280 : vector<256xf32> to vector<1x256xf32>
    %282 = arith.mulf %278, %281 : vector<1x256xf32>
    %283 = arith.addf %259, %282 : vector<1x256xf32>
    %c207_i32 = arith.constant 207 : i32
    %284 = tpu.dynamic_rotate %3 by %c207_i32 dim 1 : vector<1x256xf32>, i32 -> vector<1x256xf32>
    %c46 = arith.constant 46 : index
    %c0_55 = arith.constant 0 : index
    %285 = vector.load %arg1[%c46, %c0_55] : memref<98x256xf32, #tpu.memory_space<vmem>>, vector<1x256xf32>
    %286 = vector.shape_cast %285 : vector<1x256xf32> to vector<256xf32>
    %287 = vector.shape_cast %286 : vector<256xf32> to vector<1x256xf32>
    %288 = arith.mulf %284, %287 : vector<1x256xf32>
    %289 = arith.addf %265, %288 : vector<1x256xf32>
    %c206_i32 = arith.constant 206 : i32
    %290 = tpu.dynamic_rotate %3 by %c206_i32 dim 1 : vector<1x256xf32>, i32 -> vector<1x256xf32>
    %c47 = arith.constant 47 : index
    %c0_56 = arith.constant 0 : index
    %291 = vector.load %arg1[%c47, %c0_56] : memref<98x256xf32, #tpu.memory_space<vmem>>, vector<1x256xf32>
    %292 = vector.shape_cast %291 : vector<1x256xf32> to vector<256xf32>
    %293 = vector.shape_cast %292 : vector<256xf32> to vector<1x256xf32>
    %294 = arith.mulf %290, %293 : vector<1x256xf32>
    %295 = arith.addf %271, %294 : vector<1x256xf32>
    %c205_i32 = arith.constant 205 : i32
    %296 = tpu.dynamic_rotate %3 by %c205_i32 dim 1 : vector<1x256xf32>, i32 -> vector<1x256xf32>
    %c48 = arith.constant 48 : index
    %c0_57 = arith.constant 0 : index
    %297 = vector.load %arg1[%c48, %c0_57] : memref<98x256xf32, #tpu.memory_space<vmem>>, vector<1x256xf32>
    %298 = vector.shape_cast %297 : vector<1x256xf32> to vector<256xf32>
    %299 = vector.shape_cast %298 : vector<256xf32> to vector<1x256xf32>
    %300 = arith.mulf %296, %299 : vector<1x256xf32>
    %301 = arith.addf %277, %300 : vector<1x256xf32>
    %c51_i32_58 = arith.constant 51 : i32
    %302 = tpu.dynamic_rotate %4 by %c51_i32_58 dim 1 : vector<1x256xf32>, i32 -> vector<1x256xf32>
    %c49 = arith.constant 49 : index
    %c0_59 = arith.constant 0 : index
    %303 = vector.load %arg1[%c49, %c0_59] : memref<98x256xf32, #tpu.memory_space<vmem>>, vector<1x256xf32>
    %304 = vector.shape_cast %303 : vector<1x256xf32> to vector<256xf32>
    %305 = vector.shape_cast %304 : vector<256xf32> to vector<1x256xf32>
    %306 = arith.mulf %302, %305 : vector<1x256xf32>
    %307 = arith.addf %283, %306 : vector<1x256xf32>
    %c50_i32_60 = arith.constant 50 : i32
    %308 = tpu.dynamic_rotate %4 by %c50_i32_60 dim 1 : vector<1x256xf32>, i32 -> vector<1x256xf32>
    %c50 = arith.constant 50 : index
    %c0_61 = arith.constant 0 : index
    %309 = vector.load %arg1[%c50, %c0_61] : memref<98x256xf32, #tpu.memory_space<vmem>>, vector<1x256xf32>
    %310 = vector.shape_cast %309 : vector<1x256xf32> to vector<256xf32>
    %311 = vector.shape_cast %310 : vector<256xf32> to vector<1x256xf32>
    %312 = arith.mulf %308, %311 : vector<1x256xf32>
    %313 = arith.addf %289, %312 : vector<1x256xf32>
    %c49_i32_62 = arith.constant 49 : i32
    %314 = tpu.dynamic_rotate %4 by %c49_i32_62 dim 1 : vector<1x256xf32>, i32 -> vector<1x256xf32>
    %c51 = arith.constant 51 : index
    %c0_63 = arith.constant 0 : index
    %315 = vector.load %arg1[%c51, %c0_63] : memref<98x256xf32, #tpu.memory_space<vmem>>, vector<1x256xf32>
    %316 = vector.shape_cast %315 : vector<1x256xf32> to vector<256xf32>
    %317 = vector.shape_cast %316 : vector<256xf32> to vector<1x256xf32>
    %318 = arith.mulf %314, %317 : vector<1x256xf32>
    %319 = arith.addf %295, %318 : vector<1x256xf32>
    %c48_i32_64 = arith.constant 48 : i32
    %320 = tpu.dynamic_rotate %4 by %c48_i32_64 dim 1 : vector<1x256xf32>, i32 -> vector<1x256xf32>
    %c52 = arith.constant 52 : index
    %c0_65 = arith.constant 0 : index
    %321 = vector.load %arg1[%c52, %c0_65] : memref<98x256xf32, #tpu.memory_space<vmem>>, vector<1x256xf32>
    %322 = vector.shape_cast %321 : vector<1x256xf32> to vector<256xf32>
    %323 = vector.shape_cast %322 : vector<256xf32> to vector<1x256xf32>
    %324 = arith.mulf %320, %323 : vector<1x256xf32>
    %325 = arith.addf %301, %324 : vector<1x256xf32>
    %c47_i32_66 = arith.constant 47 : i32
    %326 = tpu.dynamic_rotate %4 by %c47_i32_66 dim 1 : vector<1x256xf32>, i32 -> vector<1x256xf32>
    %c53 = arith.constant 53 : index
    %c0_67 = arith.constant 0 : index
    %327 = vector.load %arg1[%c53, %c0_67] : memref<98x256xf32, #tpu.memory_space<vmem>>, vector<1x256xf32>
    %328 = vector.shape_cast %327 : vector<1x256xf32> to vector<256xf32>
    %329 = vector.shape_cast %328 : vector<256xf32> to vector<1x256xf32>
    %330 = arith.mulf %326, %329 : vector<1x256xf32>
    %331 = arith.addf %307, %330 : vector<1x256xf32>
    %c46_i32_68 = arith.constant 46 : i32
    %332 = tpu.dynamic_rotate %4 by %c46_i32_68 dim 1 : vector<1x256xf32>, i32 -> vector<1x256xf32>
    %c54 = arith.constant 54 : index
    %c0_69 = arith.constant 0 : index
    %333 = vector.load %arg1[%c54, %c0_69] : memref<98x256xf32, #tpu.memory_space<vmem>>, vector<1x256xf32>
    %334 = vector.shape_cast %333 : vector<1x256xf32> to vector<256xf32>
    %335 = vector.shape_cast %334 : vector<256xf32> to vector<1x256xf32>
    %336 = arith.mulf %332, %335 : vector<1x256xf32>
    %337 = arith.addf %313, %336 : vector<1x256xf32>
    %c45_i32_70 = arith.constant 45 : i32
    %338 = tpu.dynamic_rotate %4 by %c45_i32_70 dim 1 : vector<1x256xf32>, i32 -> vector<1x256xf32>
    %c55 = arith.constant 55 : index
    %c0_71 = arith.constant 0 : index
    %339 = vector.load %arg1[%c55, %c0_71] : memref<98x256xf32, #tpu.memory_space<vmem>>, vector<1x256xf32>
    %340 = vector.shape_cast %339 : vector<1x256xf32> to vector<256xf32>
    %341 = vector.shape_cast %340 : vector<256xf32> to vector<1x256xf32>
    %342 = arith.mulf %338, %341 : vector<1x256xf32>
    %343 = arith.addf %319, %342 : vector<1x256xf32>
    %c35_i32_72 = arith.constant 35 : i32
    %344 = tpu.dynamic_rotate %4 by %c35_i32_72 dim 1 : vector<1x256xf32>, i32 -> vector<1x256xf32>
    %c56 = arith.constant 56 : index
    %c0_73 = arith.constant 0 : index
    %345 = vector.load %arg1[%c56, %c0_73] : memref<98x256xf32, #tpu.memory_space<vmem>>, vector<1x256xf32>
    %346 = vector.shape_cast %345 : vector<1x256xf32> to vector<256xf32>
    %347 = vector.shape_cast %346 : vector<256xf32> to vector<1x256xf32>
    %348 = arith.mulf %344, %347 : vector<1x256xf32>
    %349 = arith.addf %325, %348 : vector<1x256xf32>
    %c34_i32_74 = arith.constant 34 : i32
    %350 = tpu.dynamic_rotate %4 by %c34_i32_74 dim 1 : vector<1x256xf32>, i32 -> vector<1x256xf32>
    %c57 = arith.constant 57 : index
    %c0_75 = arith.constant 0 : index
    %351 = vector.load %arg1[%c57, %c0_75] : memref<98x256xf32, #tpu.memory_space<vmem>>, vector<1x256xf32>
    %352 = vector.shape_cast %351 : vector<1x256xf32> to vector<256xf32>
    %353 = vector.shape_cast %352 : vector<256xf32> to vector<1x256xf32>
    %354 = arith.mulf %350, %353 : vector<1x256xf32>
    %355 = arith.addf %331, %354 : vector<1x256xf32>
    %c33_i32_76 = arith.constant 33 : i32
    %356 = tpu.dynamic_rotate %4 by %c33_i32_76 dim 1 : vector<1x256xf32>, i32 -> vector<1x256xf32>
    %c58 = arith.constant 58 : index
    %c0_77 = arith.constant 0 : index
    %357 = vector.load %arg1[%c58, %c0_77] : memref<98x256xf32, #tpu.memory_space<vmem>>, vector<1x256xf32>
    %358 = vector.shape_cast %357 : vector<1x256xf32> to vector<256xf32>
    %359 = vector.shape_cast %358 : vector<256xf32> to vector<1x256xf32>
    %360 = arith.mulf %356, %359 : vector<1x256xf32>
    %361 = arith.addf %337, %360 : vector<1x256xf32>
    %c32_i32_78 = arith.constant 32 : i32
    %362 = tpu.dynamic_rotate %4 by %c32_i32_78 dim 1 : vector<1x256xf32>, i32 -> vector<1x256xf32>
    %c59 = arith.constant 59 : index
    %c0_79 = arith.constant 0 : index
    %363 = vector.load %arg1[%c59, %c0_79] : memref<98x256xf32, #tpu.memory_space<vmem>>, vector<1x256xf32>
    %364 = vector.shape_cast %363 : vector<1x256xf32> to vector<256xf32>
    %365 = vector.shape_cast %364 : vector<256xf32> to vector<1x256xf32>
    %366 = arith.mulf %362, %365 : vector<1x256xf32>
    %367 = arith.addf %343, %366 : vector<1x256xf32>
    %c31_i32_80 = arith.constant 31 : i32
    %368 = tpu.dynamic_rotate %4 by %c31_i32_80 dim 1 : vector<1x256xf32>, i32 -> vector<1x256xf32>
    %c60 = arith.constant 60 : index
    %c0_81 = arith.constant 0 : index
    %369 = vector.load %arg1[%c60, %c0_81] : memref<98x256xf32, #tpu.memory_space<vmem>>, vector<1x256xf32>
    %370 = vector.shape_cast %369 : vector<1x256xf32> to vector<256xf32>
    %371 = vector.shape_cast %370 : vector<256xf32> to vector<1x256xf32>
    %372 = arith.mulf %368, %371 : vector<1x256xf32>
    %373 = arith.addf %349, %372 : vector<1x256xf32>
    %c30_i32_82 = arith.constant 30 : i32
    %374 = tpu.dynamic_rotate %4 by %c30_i32_82 dim 1 : vector<1x256xf32>, i32 -> vector<1x256xf32>
    %c61 = arith.constant 61 : index
    %c0_83 = arith.constant 0 : index
    %375 = vector.load %arg1[%c61, %c0_83] : memref<98x256xf32, #tpu.memory_space<vmem>>, vector<1x256xf32>
    %376 = vector.shape_cast %375 : vector<1x256xf32> to vector<256xf32>
    %377 = vector.shape_cast %376 : vector<256xf32> to vector<1x256xf32>
    %378 = arith.mulf %374, %377 : vector<1x256xf32>
    %379 = arith.addf %355, %378 : vector<1x256xf32>
    %c29_i32_84 = arith.constant 29 : i32
    %380 = tpu.dynamic_rotate %4 by %c29_i32_84 dim 1 : vector<1x256xf32>, i32 -> vector<1x256xf32>
    %c62 = arith.constant 62 : index
    %c0_85 = arith.constant 0 : index
    %381 = vector.load %arg1[%c62, %c0_85] : memref<98x256xf32, #tpu.memory_space<vmem>>, vector<1x256xf32>
    %382 = vector.shape_cast %381 : vector<1x256xf32> to vector<256xf32>
    %383 = vector.shape_cast %382 : vector<256xf32> to vector<1x256xf32>
    %384 = arith.mulf %380, %383 : vector<1x256xf32>
    %385 = arith.addf %361, %384 : vector<1x256xf32>
    %c19_i32_86 = arith.constant 19 : i32
    %386 = tpu.dynamic_rotate %4 by %c19_i32_86 dim 1 : vector<1x256xf32>, i32 -> vector<1x256xf32>
    %c63 = arith.constant 63 : index
    %c0_87 = arith.constant 0 : index
    %387 = vector.load %arg1[%c63, %c0_87] : memref<98x256xf32, #tpu.memory_space<vmem>>, vector<1x256xf32>
    %388 = vector.shape_cast %387 : vector<1x256xf32> to vector<256xf32>
    %389 = vector.shape_cast %388 : vector<256xf32> to vector<1x256xf32>
    %390 = arith.mulf %386, %389 : vector<1x256xf32>
    %391 = arith.addf %367, %390 : vector<1x256xf32>
    %c18_i32_88 = arith.constant 18 : i32
    %392 = tpu.dynamic_rotate %4 by %c18_i32_88 dim 1 : vector<1x256xf32>, i32 -> vector<1x256xf32>
    %c64 = arith.constant 64 : index
    %c0_89 = arith.constant 0 : index
    %393 = vector.load %arg1[%c64, %c0_89] : memref<98x256xf32, #tpu.memory_space<vmem>>, vector<1x256xf32>
    %394 = vector.shape_cast %393 : vector<1x256xf32> to vector<256xf32>
    %395 = vector.shape_cast %394 : vector<256xf32> to vector<1x256xf32>
    %396 = arith.mulf %392, %395 : vector<1x256xf32>
    %397 = arith.addf %373, %396 : vector<1x256xf32>
    %c17_i32_90 = arith.constant 17 : i32
    %398 = tpu.dynamic_rotate %4 by %c17_i32_90 dim 1 : vector<1x256xf32>, i32 -> vector<1x256xf32>
    %c65 = arith.constant 65 : index
    %c0_91 = arith.constant 0 : index
    %399 = vector.load %arg1[%c65, %c0_91] : memref<98x256xf32, #tpu.memory_space<vmem>>, vector<1x256xf32>
    %400 = vector.shape_cast %399 : vector<1x256xf32> to vector<256xf32>
    %401 = vector.shape_cast %400 : vector<256xf32> to vector<1x256xf32>
    %402 = arith.mulf %398, %401 : vector<1x256xf32>
    %403 = arith.addf %379, %402 : vector<1x256xf32>
    %c16_i32_92 = arith.constant 16 : i32
    %404 = tpu.dynamic_rotate %4 by %c16_i32_92 dim 1 : vector<1x256xf32>, i32 -> vector<1x256xf32>
    %c66 = arith.constant 66 : index
    %c0_93 = arith.constant 0 : index
    %405 = vector.load %arg1[%c66, %c0_93] : memref<98x256xf32, #tpu.memory_space<vmem>>, vector<1x256xf32>
    %406 = vector.shape_cast %405 : vector<1x256xf32> to vector<256xf32>
    %407 = vector.shape_cast %406 : vector<256xf32> to vector<1x256xf32>
    %408 = arith.mulf %404, %407 : vector<1x256xf32>
    %409 = arith.addf %385, %408 : vector<1x256xf32>
    %c15_i32_94 = arith.constant 15 : i32
    %410 = tpu.dynamic_rotate %4 by %c15_i32_94 dim 1 : vector<1x256xf32>, i32 -> vector<1x256xf32>
    %c67 = arith.constant 67 : index
    %c0_95 = arith.constant 0 : index
    %411 = vector.load %arg1[%c67, %c0_95] : memref<98x256xf32, #tpu.memory_space<vmem>>, vector<1x256xf32>
    %412 = vector.shape_cast %411 : vector<1x256xf32> to vector<256xf32>
    %413 = vector.shape_cast %412 : vector<256xf32> to vector<1x256xf32>
    %414 = arith.mulf %410, %413 : vector<1x256xf32>
    %415 = arith.addf %391, %414 : vector<1x256xf32>
    %c14_i32_96 = arith.constant 14 : i32
    %416 = tpu.dynamic_rotate %4 by %c14_i32_96 dim 1 : vector<1x256xf32>, i32 -> vector<1x256xf32>
    %c68 = arith.constant 68 : index
    %c0_97 = arith.constant 0 : index
    %417 = vector.load %arg1[%c68, %c0_97] : memref<98x256xf32, #tpu.memory_space<vmem>>, vector<1x256xf32>
    %418 = vector.shape_cast %417 : vector<1x256xf32> to vector<256xf32>
    %419 = vector.shape_cast %418 : vector<256xf32> to vector<1x256xf32>
    %420 = arith.mulf %416, %419 : vector<1x256xf32>
    %421 = arith.addf %397, %420 : vector<1x256xf32>
    %c13_i32_98 = arith.constant 13 : i32
    %422 = tpu.dynamic_rotate %4 by %c13_i32_98 dim 1 : vector<1x256xf32>, i32 -> vector<1x256xf32>
    %c69 = arith.constant 69 : index
    %c0_99 = arith.constant 0 : index
    %423 = vector.load %arg1[%c69, %c0_99] : memref<98x256xf32, #tpu.memory_space<vmem>>, vector<1x256xf32>
    %424 = vector.shape_cast %423 : vector<1x256xf32> to vector<256xf32>
    %425 = vector.shape_cast %424 : vector<256xf32> to vector<1x256xf32>
    %426 = arith.mulf %422, %425 : vector<1x256xf32>
    %427 = arith.addf %403, %426 : vector<1x256xf32>
    %c3_i32_100 = arith.constant 3 : i32
    %428 = tpu.dynamic_rotate %4 by %c3_i32_100 dim 1 : vector<1x256xf32>, i32 -> vector<1x256xf32>
    %c70 = arith.constant 70 : index
    %c0_101 = arith.constant 0 : index
    %429 = vector.load %arg1[%c70, %c0_101] : memref<98x256xf32, #tpu.memory_space<vmem>>, vector<1x256xf32>
    %430 = vector.shape_cast %429 : vector<1x256xf32> to vector<256xf32>
    %431 = vector.shape_cast %430 : vector<256xf32> to vector<1x256xf32>
    %432 = arith.mulf %428, %431 : vector<1x256xf32>
    %433 = arith.addf %409, %432 : vector<1x256xf32>
    %c2_i32_102 = arith.constant 2 : i32
    %434 = tpu.dynamic_rotate %4 by %c2_i32_102 dim 1 : vector<1x256xf32>, i32 -> vector<1x256xf32>
    %c71 = arith.constant 71 : index
    %c0_103 = arith.constant 0 : index
    %435 = vector.load %arg1[%c71, %c0_103] : memref<98x256xf32, #tpu.memory_space<vmem>>, vector<1x256xf32>
    %436 = vector.shape_cast %435 : vector<1x256xf32> to vector<256xf32>
    %437 = vector.shape_cast %436 : vector<256xf32> to vector<1x256xf32>
    %438 = arith.mulf %434, %437 : vector<1x256xf32>
    %439 = arith.addf %415, %438 : vector<1x256xf32>
    %c1_i32_104 = arith.constant 1 : i32
    %440 = tpu.dynamic_rotate %4 by %c1_i32_104 dim 1 : vector<1x256xf32>, i32 -> vector<1x256xf32>
    %c72 = arith.constant 72 : index
    %c0_105 = arith.constant 0 : index
    %441 = vector.load %arg1[%c72, %c0_105] : memref<98x256xf32, #tpu.memory_space<vmem>>, vector<1x256xf32>
    %442 = vector.shape_cast %441 : vector<1x256xf32> to vector<256xf32>
    %443 = vector.shape_cast %442 : vector<256xf32> to vector<1x256xf32>
    %444 = arith.mulf %440, %443 : vector<1x256xf32>
    %445 = arith.addf %421, %444 : vector<1x256xf32>
    %c73 = arith.constant 73 : index
    %c0_106 = arith.constant 0 : index
    %446 = vector.load %arg1[%c73, %c0_106] : memref<98x256xf32, #tpu.memory_space<vmem>>, vector<1x256xf32>
    %447 = vector.shape_cast %446 : vector<1x256xf32> to vector<256xf32>
    %448 = vector.shape_cast %447 : vector<256xf32> to vector<1x256xf32>
    %449 = arith.mulf %4, %448 : vector<1x256xf32>
    %450 = arith.addf %427, %449 : vector<1x256xf32>
    %c255_i32_107 = arith.constant 255 : i32
    %451 = tpu.dynamic_rotate %4 by %c255_i32_107 dim 1 : vector<1x256xf32>, i32 -> vector<1x256xf32>
    %c74 = arith.constant 74 : index
    %c0_108 = arith.constant 0 : index
    %452 = vector.load %arg1[%c74, %c0_108] : memref<98x256xf32, #tpu.memory_space<vmem>>, vector<1x256xf32>
    %453 = vector.shape_cast %452 : vector<1x256xf32> to vector<256xf32>
    %454 = vector.shape_cast %453 : vector<256xf32> to vector<1x256xf32>
    %455 = arith.mulf %451, %454 : vector<1x256xf32>
    %456 = arith.addf %433, %455 : vector<1x256xf32>
    %c254_i32_109 = arith.constant 254 : i32
    %457 = tpu.dynamic_rotate %4 by %c254_i32_109 dim 1 : vector<1x256xf32>, i32 -> vector<1x256xf32>
    %c75 = arith.constant 75 : index
    %c0_110 = arith.constant 0 : index
    %458 = vector.load %arg1[%c75, %c0_110] : memref<98x256xf32, #tpu.memory_space<vmem>>, vector<1x256xf32>
    %459 = vector.shape_cast %458 : vector<1x256xf32> to vector<256xf32>
    %460 = vector.shape_cast %459 : vector<256xf32> to vector<1x256xf32>
    %461 = arith.mulf %457, %460 : vector<1x256xf32>
    %462 = arith.addf %439, %461 : vector<1x256xf32>
    %c253_i32_111 = arith.constant 253 : i32
    %463 = tpu.dynamic_rotate %4 by %c253_i32_111 dim 1 : vector<1x256xf32>, i32 -> vector<1x256xf32>
    %c76 = arith.constant 76 : index
    %c0_112 = arith.constant 0 : index
    %464 = vector.load %arg1[%c76, %c0_112] : memref<98x256xf32, #tpu.memory_space<vmem>>, vector<1x256xf32>
    %465 = vector.shape_cast %464 : vector<1x256xf32> to vector<256xf32>
    %466 = vector.shape_cast %465 : vector<256xf32> to vector<1x256xf32>
    %467 = arith.mulf %463, %466 : vector<1x256xf32>
    %468 = arith.addf %445, %467 : vector<1x256xf32>
    %c243_i32_113 = arith.constant 243 : i32
    %469 = tpu.dynamic_rotate %4 by %c243_i32_113 dim 1 : vector<1x256xf32>, i32 -> vector<1x256xf32>
    %c77 = arith.constant 77 : index
    %c0_114 = arith.constant 0 : index
    %470 = vector.load %arg1[%c77, %c0_114] : memref<98x256xf32, #tpu.memory_space<vmem>>, vector<1x256xf32>
    %471 = vector.shape_cast %470 : vector<1x256xf32> to vector<256xf32>
    %472 = vector.shape_cast %471 : vector<256xf32> to vector<1x256xf32>
    %473 = arith.mulf %469, %472 : vector<1x256xf32>
    %474 = arith.addf %450, %473 : vector<1x256xf32>
    %c242_i32_115 = arith.constant 242 : i32
    %475 = tpu.dynamic_rotate %4 by %c242_i32_115 dim 1 : vector<1x256xf32>, i32 -> vector<1x256xf32>
    %c78 = arith.constant 78 : index
    %c0_116 = arith.constant 0 : index
    %476 = vector.load %arg1[%c78, %c0_116] : memref<98x256xf32, #tpu.memory_space<vmem>>, vector<1x256xf32>
    %477 = vector.shape_cast %476 : vector<1x256xf32> to vector<256xf32>
    %478 = vector.shape_cast %477 : vector<256xf32> to vector<1x256xf32>
    %479 = arith.mulf %475, %478 : vector<1x256xf32>
    %480 = arith.addf %456, %479 : vector<1x256xf32>
    %c241_i32_117 = arith.constant 241 : i32
    %481 = tpu.dynamic_rotate %4 by %c241_i32_117 dim 1 : vector<1x256xf32>, i32 -> vector<1x256xf32>
    %c79 = arith.constant 79 : index
    %c0_118 = arith.constant 0 : index
    %482 = vector.load %arg1[%c79, %c0_118] : memref<98x256xf32, #tpu.memory_space<vmem>>, vector<1x256xf32>
    %483 = vector.shape_cast %482 : vector<1x256xf32> to vector<256xf32>
    %484 = vector.shape_cast %483 : vector<256xf32> to vector<1x256xf32>
    %485 = arith.mulf %481, %484 : vector<1x256xf32>
    %486 = arith.addf %462, %485 : vector<1x256xf32>
    %c240_i32_119 = arith.constant 240 : i32
    %487 = tpu.dynamic_rotate %4 by %c240_i32_119 dim 1 : vector<1x256xf32>, i32 -> vector<1x256xf32>
    %c80 = arith.constant 80 : index
    %c0_120 = arith.constant 0 : index
    %488 = vector.load %arg1[%c80, %c0_120] : memref<98x256xf32, #tpu.memory_space<vmem>>, vector<1x256xf32>
    %489 = vector.shape_cast %488 : vector<1x256xf32> to vector<256xf32>
    %490 = vector.shape_cast %489 : vector<256xf32> to vector<1x256xf32>
    %491 = arith.mulf %487, %490 : vector<1x256xf32>
    %492 = arith.addf %468, %491 : vector<1x256xf32>
    %c239_i32_121 = arith.constant 239 : i32
    %493 = tpu.dynamic_rotate %4 by %c239_i32_121 dim 1 : vector<1x256xf32>, i32 -> vector<1x256xf32>
    %c81 = arith.constant 81 : index
    %c0_122 = arith.constant 0 : index
    %494 = vector.load %arg1[%c81, %c0_122] : memref<98x256xf32, #tpu.memory_space<vmem>>, vector<1x256xf32>
    %495 = vector.shape_cast %494 : vector<1x256xf32> to vector<256xf32>
    %496 = vector.shape_cast %495 : vector<256xf32> to vector<1x256xf32>
    %497 = arith.mulf %493, %496 : vector<1x256xf32>
    %498 = arith.addf %474, %497 : vector<1x256xf32>
    %c238_i32_123 = arith.constant 238 : i32
    %499 = tpu.dynamic_rotate %4 by %c238_i32_123 dim 1 : vector<1x256xf32>, i32 -> vector<1x256xf32>
    %c82 = arith.constant 82 : index
    %c0_124 = arith.constant 0 : index
    %500 = vector.load %arg1[%c82, %c0_124] : memref<98x256xf32, #tpu.memory_space<vmem>>, vector<1x256xf32>
    %501 = vector.shape_cast %500 : vector<1x256xf32> to vector<256xf32>
    %502 = vector.shape_cast %501 : vector<256xf32> to vector<1x256xf32>
    %503 = arith.mulf %499, %502 : vector<1x256xf32>
    %504 = arith.addf %480, %503 : vector<1x256xf32>
    %c237_i32_125 = arith.constant 237 : i32
    %505 = tpu.dynamic_rotate %4 by %c237_i32_125 dim 1 : vector<1x256xf32>, i32 -> vector<1x256xf32>
    %c83 = arith.constant 83 : index
    %c0_126 = arith.constant 0 : index
    %506 = vector.load %arg1[%c83, %c0_126] : memref<98x256xf32, #tpu.memory_space<vmem>>, vector<1x256xf32>
    %507 = vector.shape_cast %506 : vector<1x256xf32> to vector<256xf32>
    %508 = vector.shape_cast %507 : vector<256xf32> to vector<1x256xf32>
    %509 = arith.mulf %505, %508 : vector<1x256xf32>
    %510 = arith.addf %486, %509 : vector<1x256xf32>
    %c227_i32_127 = arith.constant 227 : i32
    %511 = tpu.dynamic_rotate %4 by %c227_i32_127 dim 1 : vector<1x256xf32>, i32 -> vector<1x256xf32>
    %c84 = arith.constant 84 : index
    %c0_128 = arith.constant 0 : index
    %512 = vector.load %arg1[%c84, %c0_128] : memref<98x256xf32, #tpu.memory_space<vmem>>, vector<1x256xf32>
    %513 = vector.shape_cast %512 : vector<1x256xf32> to vector<256xf32>
    %514 = vector.shape_cast %513 : vector<256xf32> to vector<1x256xf32>
    %515 = arith.mulf %511, %514 : vector<1x256xf32>
    %516 = arith.addf %492, %515 : vector<1x256xf32>
    %c226_i32_129 = arith.constant 226 : i32
    %517 = tpu.dynamic_rotate %4 by %c226_i32_129 dim 1 : vector<1x256xf32>, i32 -> vector<1x256xf32>
    %c85 = arith.constant 85 : index
    %c0_130 = arith.constant 0 : index
    %518 = vector.load %arg1[%c85, %c0_130] : memref<98x256xf32, #tpu.memory_space<vmem>>, vector<1x256xf32>
    %519 = vector.shape_cast %518 : vector<1x256xf32> to vector<256xf32>
    %520 = vector.shape_cast %519 : vector<256xf32> to vector<1x256xf32>
    %521 = arith.mulf %517, %520 : vector<1x256xf32>
    %522 = arith.addf %498, %521 : vector<1x256xf32>
    %c225_i32_131 = arith.constant 225 : i32
    %523 = tpu.dynamic_rotate %4 by %c225_i32_131 dim 1 : vector<1x256xf32>, i32 -> vector<1x256xf32>
    %c86 = arith.constant 86 : index
    %c0_132 = arith.constant 0 : index
    %524 = vector.load %arg1[%c86, %c0_132] : memref<98x256xf32, #tpu.memory_space<vmem>>, vector<1x256xf32>
    %525 = vector.shape_cast %524 : vector<1x256xf32> to vector<256xf32>
    %526 = vector.shape_cast %525 : vector<256xf32> to vector<1x256xf32>
    %527 = arith.mulf %523, %526 : vector<1x256xf32>
    %528 = arith.addf %504, %527 : vector<1x256xf32>
    %c224_i32_133 = arith.constant 224 : i32
    %529 = tpu.dynamic_rotate %4 by %c224_i32_133 dim 1 : vector<1x256xf32>, i32 -> vector<1x256xf32>
    %c87 = arith.constant 87 : index
    %c0_134 = arith.constant 0 : index
    %530 = vector.load %arg1[%c87, %c0_134] : memref<98x256xf32, #tpu.memory_space<vmem>>, vector<1x256xf32>
    %531 = vector.shape_cast %530 : vector<1x256xf32> to vector<256xf32>
    %532 = vector.shape_cast %531 : vector<256xf32> to vector<1x256xf32>
    %533 = arith.mulf %529, %532 : vector<1x256xf32>
    %534 = arith.addf %510, %533 : vector<1x256xf32>
    %c223_i32_135 = arith.constant 223 : i32
    %535 = tpu.dynamic_rotate %4 by %c223_i32_135 dim 1 : vector<1x256xf32>, i32 -> vector<1x256xf32>
    %c88 = arith.constant 88 : index
    %c0_136 = arith.constant 0 : index
    %536 = vector.load %arg1[%c88, %c0_136] : memref<98x256xf32, #tpu.memory_space<vmem>>, vector<1x256xf32>
    %537 = vector.shape_cast %536 : vector<1x256xf32> to vector<256xf32>
    %538 = vector.shape_cast %537 : vector<256xf32> to vector<1x256xf32>
    %539 = arith.mulf %535, %538 : vector<1x256xf32>
    %540 = arith.addf %516, %539 : vector<1x256xf32>
    %c222_i32_137 = arith.constant 222 : i32
    %541 = tpu.dynamic_rotate %4 by %c222_i32_137 dim 1 : vector<1x256xf32>, i32 -> vector<1x256xf32>
    %c89 = arith.constant 89 : index
    %c0_138 = arith.constant 0 : index
    %542 = vector.load %arg1[%c89, %c0_138] : memref<98x256xf32, #tpu.memory_space<vmem>>, vector<1x256xf32>
    %543 = vector.shape_cast %542 : vector<1x256xf32> to vector<256xf32>
    %544 = vector.shape_cast %543 : vector<256xf32> to vector<1x256xf32>
    %545 = arith.mulf %541, %544 : vector<1x256xf32>
    %546 = arith.addf %522, %545 : vector<1x256xf32>
    %c221_i32_139 = arith.constant 221 : i32
    %547 = tpu.dynamic_rotate %4 by %c221_i32_139 dim 1 : vector<1x256xf32>, i32 -> vector<1x256xf32>
    %c90 = arith.constant 90 : index
    %c0_140 = arith.constant 0 : index
    %548 = vector.load %arg1[%c90, %c0_140] : memref<98x256xf32, #tpu.memory_space<vmem>>, vector<1x256xf32>
    %549 = vector.shape_cast %548 : vector<1x256xf32> to vector<256xf32>
    %550 = vector.shape_cast %549 : vector<256xf32> to vector<1x256xf32>
    %551 = arith.mulf %547, %550 : vector<1x256xf32>
    %552 = arith.addf %528, %551 : vector<1x256xf32>
    %c211_i32_141 = arith.constant 211 : i32
    %553 = tpu.dynamic_rotate %4 by %c211_i32_141 dim 1 : vector<1x256xf32>, i32 -> vector<1x256xf32>
    %c91 = arith.constant 91 : index
    %c0_142 = arith.constant 0 : index
    %554 = vector.load %arg1[%c91, %c0_142] : memref<98x256xf32, #tpu.memory_space<vmem>>, vector<1x256xf32>
    %555 = vector.shape_cast %554 : vector<1x256xf32> to vector<256xf32>
    %556 = vector.shape_cast %555 : vector<256xf32> to vector<1x256xf32>
    %557 = arith.mulf %553, %556 : vector<1x256xf32>
    %558 = arith.addf %534, %557 : vector<1x256xf32>
    %c210_i32_143 = arith.constant 210 : i32
    %559 = tpu.dynamic_rotate %4 by %c210_i32_143 dim 1 : vector<1x256xf32>, i32 -> vector<1x256xf32>
    %c92 = arith.constant 92 : index
    %c0_144 = arith.constant 0 : index
    %560 = vector.load %arg1[%c92, %c0_144] : memref<98x256xf32, #tpu.memory_space<vmem>>, vector<1x256xf32>
    %561 = vector.shape_cast %560 : vector<1x256xf32> to vector<256xf32>
    %562 = vector.shape_cast %561 : vector<256xf32> to vector<1x256xf32>
    %563 = arith.mulf %559, %562 : vector<1x256xf32>
    %564 = arith.addf %540, %563 : vector<1x256xf32>
    %c209_i32_145 = arith.constant 209 : i32
    %565 = tpu.dynamic_rotate %4 by %c209_i32_145 dim 1 : vector<1x256xf32>, i32 -> vector<1x256xf32>
    %c93 = arith.constant 93 : index
    %c0_146 = arith.constant 0 : index
    %566 = vector.load %arg1[%c93, %c0_146] : memref<98x256xf32, #tpu.memory_space<vmem>>, vector<1x256xf32>
    %567 = vector.shape_cast %566 : vector<1x256xf32> to vector<256xf32>
    %568 = vector.shape_cast %567 : vector<256xf32> to vector<1x256xf32>
    %569 = arith.mulf %565, %568 : vector<1x256xf32>
    %570 = arith.addf %546, %569 : vector<1x256xf32>
    %c208_i32_147 = arith.constant 208 : i32
    %571 = tpu.dynamic_rotate %4 by %c208_i32_147 dim 1 : vector<1x256xf32>, i32 -> vector<1x256xf32>
    %c94 = arith.constant 94 : index
    %c0_148 = arith.constant 0 : index
    %572 = vector.load %arg1[%c94, %c0_148] : memref<98x256xf32, #tpu.memory_space<vmem>>, vector<1x256xf32>
    %573 = vector.shape_cast %572 : vector<1x256xf32> to vector<256xf32>
    %574 = vector.shape_cast %573 : vector<256xf32> to vector<1x256xf32>
    %575 = arith.mulf %571, %574 : vector<1x256xf32>
    %576 = arith.addf %552, %575 : vector<1x256xf32>
    %c207_i32_149 = arith.constant 207 : i32
    %577 = tpu.dynamic_rotate %4 by %c207_i32_149 dim 1 : vector<1x256xf32>, i32 -> vector<1x256xf32>
    %c95 = arith.constant 95 : index
    %c0_150 = arith.constant 0 : index
    %578 = vector.load %arg1[%c95, %c0_150] : memref<98x256xf32, #tpu.memory_space<vmem>>, vector<1x256xf32>
    %579 = vector.shape_cast %578 : vector<1x256xf32> to vector<256xf32>
    %580 = vector.shape_cast %579 : vector<256xf32> to vector<1x256xf32>
    %581 = arith.mulf %577, %580 : vector<1x256xf32>
    %582 = arith.addf %558, %581 : vector<1x256xf32>
    %c206_i32_151 = arith.constant 206 : i32
    %583 = tpu.dynamic_rotate %4 by %c206_i32_151 dim 1 : vector<1x256xf32>, i32 -> vector<1x256xf32>
    %c96 = arith.constant 96 : index
    %c0_152 = arith.constant 0 : index
    %584 = vector.load %arg1[%c96, %c0_152] : memref<98x256xf32, #tpu.memory_space<vmem>>, vector<1x256xf32>
    %585 = vector.shape_cast %584 : vector<1x256xf32> to vector<256xf32>
    %586 = vector.shape_cast %585 : vector<256xf32> to vector<1x256xf32>
    %587 = arith.mulf %583, %586 : vector<1x256xf32>
    %588 = arith.addf %564, %587 : vector<1x256xf32>
    %c205_i32_153 = arith.constant 205 : i32
    %589 = tpu.dynamic_rotate %4 by %c205_i32_153 dim 1 : vector<1x256xf32>, i32 -> vector<1x256xf32>
    %c97 = arith.constant 97 : index
    %c0_154 = arith.constant 0 : index
    %590 = vector.load %arg1[%c97, %c0_154] : memref<98x256xf32, #tpu.memory_space<vmem>>, vector<1x256xf32>
    %591 = vector.shape_cast %590 : vector<1x256xf32> to vector<256xf32>
    %592 = vector.shape_cast %591 : vector<256xf32> to vector<1x256xf32>
    %593 = arith.mulf %589, %592 : vector<1x256xf32>
    %594 = arith.addf %570, %593 : vector<1x256xf32>
    %595 = arith.addf %588, %594 : vector<1x256xf32>
    %596 = arith.addf %576, %582 : vector<1x256xf32>
    %597 = arith.addf %595, %596 : vector<1x256xf32>
    %598 = arith.negf %597 : vector<1x256xf32>
    %599 = math.exp %598 : vector<1x256xf32>
    %cst_155 = arith.constant 1.000000e+00 : f32
    %600 = vector.broadcast %cst_155 : f32 to vector<1x256xf32>
    %601 = arith.addf %600, %599 : vector<1x256xf32>
    %602 = arith.divf %600, %601 : vector<1x256xf32>
    %603 = vector.shape_cast %602 : vector<1x256xf32> to vector<1x1x256xf32>
    %604 = vector.broadcast %603 : vector<1x1x256xf32> to vector<1x4x256xf32>
    %605 = arith.mulf %0, %604 : vector<1x4x256xf32>
    %c0_156 = arith.constant 0 : index
    %c0_157 = arith.constant 0 : index
    %c0_158 = arith.constant 0 : index
    %606 = vector.load %arg3[%c0_156, %c0_157, %c0_158] : memref<1x4x256xf32, #tpu.memory_space<vmem>>, vector<1x4x256xf32>
    tpu.vector_store %arg3[%c0_156, %c0_157, %c0_158], %605 {strides = array<i32>} : memref<1x4x256xf32, #tpu.memory_space<vmem>>, vector<1x4x256xf32>,
    return
  }
  func.func @transform_0(%arg0: i32) -> (i32, i32) {
    %c0_i32 = arith.constant 0 : i32
    %c0_i32_0 = arith.constant 0 : i32
    %c0_i32_1 = arith.constant 0 : i32
    return %c0_i32, %c0_i32_0 : i32, i32
  }
  func.func @transform_1(%arg0: i32) -> (i32, i32, i32) {
    %c0_i32 = arith.constant 0 : i32
    %c0_i32_0 = arith.constant 0 : i32
    %c0_i32_1 = arith.constant 0 : i32
    return %arg0, %c0_i32, %c0_i32_0 : i32, i32, i32
  }
  func.func @transform_2(%arg0: i32) -> (i32, i32, i32) {
    %c0_i32 = arith.constant 0 : i32
    %c0_i32_0 = arith.constant 0 : i32
    %c0_i32_1 = arith.constant 0 : i32
    return %arg0, %c0_i32, %c0_i32_0 : i32, i32, i32
  }
}

</mosaic_0001>

<bundles_post_ra>
// kernel: tpu_custom_call.1
= control target key start
LH: loop header
LB: loop body
LE: loop exit
PB: predicated region body
PF: predicated region fallthrough
CT: control target
= control target key end

     0   :  { %7 = vsyncpa [#allocation3], 0  ;;  %s5443_s0 = inlined_call_operand.hbm [shape: f32[98,256], index: 0, kind: input, shape index: {}]   ;;  %s5444_s1 = inlined_call_operand.hbm [shape: f32[2,4,256], index: 1, kind: input, shape index: {}]   ;;  %s5445_s2 = inlined_call_operand.hbm [shape: f32[2,4,256], index: 2, kind: output, shape index: {}]  }
   0x1   :  { %8 = vsyncpa [#allocation6], 0 }
   0x2   :  { %10 = vsyncpa [#allocation6 + $0x1], 0 }
   0x3   :  { %11 = vsyncpa [#allocation4], 0 }
   0x4   :  { %13 = vsyncpa [#allocation4 + $0x1], 0  ;;  %s2966_s9 = smov 0   ;;  %s2968_s10 = smov 0  }
   0x5   :  { %s2970_s11 = smov 0   ;;  %s2972_s12 = smov 0  }
   0x6 LB: > { %s2987_s13 = sadd.s32 4294967295, %s2896_s12   ;;  %s2631_s14 = sadd.s32 4294967294, %s2896_s12   ;;  %s2896_s12 = sphi %s2972_s12, %s6047_s12   ;;  %s2892_s11 = sphi %s2970_s11, %s6046_s11   ;;  %s2888_s10 = sphi %s2968_s10, %s6045_s10   ;;  %s2884_s9 = sphi %s2966_s9, %s6044_s9  }
   0x7   : > { %p60_p0 = scmp.ne.s32.totalorder %s2888_s10, %s2884_s9  ;;  %p5446_p1 = scmp.eq.s32.totalorder %s2987_s13, 0 }
   0x8   : > { %p90_p3 = scmp.eq.s32.totalorder %s2631_s14, 1  ;;  %p2632_p5 = scmp.ge.s32.totalorder %s2896_s12, 1 }
   0x9   : > { %p2996_p4 = por %p5446_p1, %p60_p0  ;;  %p97_p7 = scmp.lt.s32.totalorder %s2896_s12, 3 }
   0xa   : > { %p3001_p6 = por %p90_p3, %p60_p0  ;;  %s2898_s18 = smov [#allocation2]  }
   0xb   : > { %s5652_s15 = scalar_select %p2996_p4, 1, 0 }
   0xc   : > { %s5653_s16 = scalar_select %p3001_p6, 1, 0 }
   0xd   : > { %p3006_p8 = pnand %p2632_p5, %p97_p7  ;;  %s109_s19 = sshll.u32 %s2898_s18, 4  ;;  %s3010_s19 = int_to_ptr.vmem [resolvable:$true] %s109_s19 }
   0xe   : > { %s3022_s21 = sadd.s32 1, %s2896_s12   ;;  %s47_s22 = sadd.s32 1, %s2892_s11 }
   0xf   : > { %s5654_s17 = scalar_select %p3006_p8, 1, 0 }
  0x10   : > { %p2659_p9 = pneg %p3006_p8  ;;  %s44_s23 = ssub.s32 %s2896_s12, %s3022_s21 }
  0x11   : > { %s2768_s26 = scalar_lea.hbm %s5443_s0, 3328 }
  0x12   : > { %p3017_p11 = pnand %p2659_p9, %p5446_p1  ;;  %p2769_p12 = scmp.ne.s32.totalorder %s5443_s0, %s2768_s26 }
  0x13   : > { %p2775_p5 = scmp.lt.u32.totalorder %s2768_s26, %s5443_s0 }
  0x14   : > { %p2770_p13 = pneg %p3017_p11 }
  0x16   : > { %p2771_p0 = pnand %p2770_p13, %p2769_p12 }
  0x18   : > { %p2772_p3 = pneg %p2771_p0 }
  0x1a   : > { %p2777_p7 = pnand %p2775_p5, %p2772_p3 }
  0x1c   : > { %2780 = shalt.err (!%p2777_p7)
}
  0x1d   : > { %s2781_s3 = scalar_lea.vmem %s3010_s19, 3328  ;;  %p2789_p2 = scmp.lt.s32.totalorder %s3010_s19, %s3010_s19 }
  0x1e   : > { %p2782_p9 = scmp.ne.s32.totalorder %s3010_s19, %s2781_s3  ;;  %p2790_p6 = scmp.lt.s32.totalorder %s2781_s3, %s2781_s3 }
  0x20   : > { %p2784_p10 = pnand %p2782_p9, %p2770_p13  ;;  %p2791_p4 = por %p2790_p6, %p2789_p2 }
  0x22   : > { %p2785_p1 = pneg %p2784_p10 }
  0x24   : > { %p2792_p8 = pnand %p2791_p4, %p2785_p1 }
  0x26   : > { %2795 = shalt.err (!%p2792_p8)
}
  0x27   : > { %s2899_s4 = smov 256   ;;  %s2900_s5 = smov 16  }
  0x28   : > { %2662 = dma.hbm_to_vmem [thread:$0]  (!%p3017_p11), %s5443_s0, 3328, %s3010_s19, [#allocation3], %s2899_s4, %s2899_s4, %s2900_s5  }
  0x29   : > { %p45_p2 = scmp.eq.s32.totalorder %s44_s23, 0  ;;  %p54_p1 = scmp.ne.s32.totalorder %s2892_s11, %s2888_s10 }
  0x2a   : > { %p55_p4 = scmp.eq.s32.totalorder %s2896_s12, 0  ;;  %p2672_p6 = scmp.lt.s32.totalorder %s2896_s12, 2 }
  0x2b   : > { %s3053_s8 = scalar_select %p45_p2, %s2892_s11, %s47_s22  }
  0x2c   : > { %p56_p8 = por %p55_p4, %p54_p1  ;;  %p5656_p10 = scmp.eq.s32.totalorder %s2987_s13, 1 }
  0x2d   : > { %s123_s18 = sand.u32 1, %s2892_s11   ;;  %s2649_s24 = sshll.u32 %s2896_s12, 7 }
  0x2e   : > { %p3057_p12 = por %p5656_p10, %p54_p1  ;;  %s2635_s25 = sshll.u32 %s123_s18, 3 }
  0x2f   : > { %s3066_s27 = scalar_lea.hbm %s5444_s1, %s2649_s24  ;;  %s127_s19 = scalar_lea.vmem [#allocation5], %s2635_s25 }
  0x30   : > { %s135_s22 = sshll.u32 %s127_s19, 4  ;;  %p3068_p11 = pnand %p2672_p6, %p56_p8  ;;  %s3072_s22 = int_to_ptr.vmem [resolvable:$true] %s135_s22 }
  0x31   : > { %s124_s28 = scalar_lea.sflag [#allocation6], %s123_s18  ;;  %s2796_s29 = scalar_lea.hbm %s3066_s27, 128 }
  0x32   : > { %p2797_p13 = scmp.ne.s32.totalorder %s3066_s27, %s2796_s29  ;;  %p2798_p0 = pneg %p3068_p11 }
  0x33   : > { %s2801_s4 = scalar_lea.hbm %s5444_s1, 256  ;;  %p2802_p7 = scmp.lt.u32.totalorder %s3066_s27, %s5444_s1 }
  0x34   : > { %p2799_p3 = pnand %p2798_p0, %p2797_p13  ;;  %p2803_p9 = scmp.lt.u32.totalorder %s2801_s4, %s2796_s29 }
  0x35   : > { %p2805_p1 = scmp.lt.u32.totalorder %s2796_s29, %s3066_s27 }
  0x36   : > { %p2800_p5 = pneg %p2799_p3  ;;  %p2804_p2 = por %p2803_p9, %p2802_p7 }
  0x38   : > { %p2806_p4 = por %p2805_p1, %p2804_p2 }
  0x3a   : > { %p2807_p6 = pnand %p2806_p4, %p2800_p5 }
  0x3c   : > { %2810 = shalt.err (!%p2807_p6)
}
  0x3d   : > { %s2811_s7 = scalar_lea.vmem %s3072_s22, 128  ;;  %s2901_s18 = smov [#allocation5]  }
  0x3e   : > { %p2812_p8 = scmp.ne.s32.totalorder %s3072_s22, %s2811_s7  ;;  %s2816_s24 = sshll.u32 %s2901_s18, 4  ;;  %s2817_s24 = int_to_ptr.vmem [resolvable:$false] %s2816_s24 }
  0x3f   : > { %s2818_s25 = scalar_lea.vmem %s2817_s24, 256  ;;  %p2819_p3 = scmp.lt.s32.totalorder %s3072_s22, %s2817_s24 }
  0x40   : > { %p2814_p10 = pnand %p2812_p8, %p2798_p0  ;;  %p2820_p7 = scmp.lt.s32.totalorder %s2818_s25, %s2811_s7 }
  0x42   : > { %p2815_p13 = pneg %p2814_p10  ;;  %p2821_p9 = por %p2820_p7, %p2819_p3 }
  0x44   : > { %p2822_p2 = pnand %p2821_p9, %p2815_p13 }
  0x46   : > { %2825 = shalt.err (!%p2822_p2)
}
  0x47   : > { %2666 = dma.hbm_to_vmem [thread:$0]  (!%p3068_p11), %s3066_s27, 128, %s3072_s22, %s124_s28  }
  0x48   : > { %p5659_p5 = scmp.ne.s32.totalorder %s5654_s17, 0 }
  0x4a   : > { %144 = sbr.rel (%p5659_p5) target bundleno = 672 (0x2a0), region = 28 }
  0x51   : > { %p5660_p0 = scmp.eq.s32.totalorder %s2987_s13, 0 }
  0x53   : > { %2871 = dma.done.wait (%p5660_p0), [#allocation3], 3328   ;;  %p5661_p1 = pmov %p5660_p0 }
  0x54   : > { %s3106_s20 = sand.u32 1, %s2888_s10   ;;  %p5662_p11 = scmp.ne.s32.totalorder %s5652_s15, 0 }
  0x55   : > { %2873 = vsyncadd (%p5661_p1), [#allocation3], 4294963968  ;;  %s5449_s26 = sshll.u32 %s3106_s20, 3  ;;  %s151_s19 = scalar_lea.sflag [#allocation6], %s3106_s20 }
  0x56   : > { %s3112_s27 = scalar_lea.vmem [#allocation5], %s5449_s26 }
  0x57   : > { %2875 = dma.done.wait (%p5662_p11), %s151_s19, 128  }
  0x58   : > { %2877 = vsyncadd (%p5662_p11), %s151_s19, 4294967168  ;;  %vm179_vm0 = vcmask 1043456   ;;  %v3119_v0 = vld [vmem:[%s3112_s27] sm:$0xff]  ;;  %s2902_s15 = smov 50   ;;  %s2903_s17 = smov 51  }
  0x59   : > { %v180_v1 = vsel %vm179_vm0, %v3119_v0, 0.0  ;;  %v3125_v2 = vcombine.high %v3119_v0, %v3119_v0  ;;  %s2904_s22 = smov 49   ;;  %s2905_s23 = smov 48   ;;  %v197_v47 = vsel %vm179_vm0, %v3119_v0, -inf }
  0x5a   : > { %v181_v3 = vrot.slane %v180_v1, 4  ;;  %s2906_s28 = smov 47   ;;  %s2907_s29 = smov 46   ;;  %v198_v49 = vrot.slane %v197_v47, 4 }
  0x5b   : > { %v187_v4 = vsel %vm179_vm0, %v3125_v2, 0.0  ;;  %s2908_s30 = smov 45   ;;  %s2909_s3 = smov 35   ;;  %v204_v44 = vsel %vm179_vm0, %v3125_v2, -inf }
  0x5c   : > { %v182_v5 = vadd.f32 %v181_v3, %v180_v1  ;;  %v188_v6 = vrot.slane %v187_v4, 4  ;;  %s2910_s4 = smov 34   ;;  %s2911_s5 = smov 33   ;;  %v205_v48 = vrot.slane %v204_v44, 4  ;;  %v199_v53 = vmax.f32 %v197_v47, %v198_v49 }
  0x5d   : > { %s2912_s6 = smov 32   ;;  %s2913_s7 = smov 31  }
  0x5e   : > { %v183_v7 = vrot.slane %v182_v5, 2  ;;  %v189_v8 = vadd.f32 %v188_v6, %v187_v4  ;;  %s2914_s18 = smov 30   ;;  %s5450_s24 = smov 29   ;;  %v206_v52 = vmax.f32 %v204_v44, %v205_v48  ;;  %v200_v57 = vrot.slane %v199_v53, 2 }
  0x5f   : > { %s5452_s25 = smov 19   ;;  %s5454_s19 = smov 18   ;;  %v215_v48 = vlaneseq }
  0x60   : > { %v184_v9 = vadd.f32 %v183_v7, %v182_v5  ;;  %v190_v10 = vrot.slane %v189_v8, 2  ;;  %s5456_s26 = smov 17   ;;  %v207_v56 = vrot.slane %v206_v52, 2  ;;  %v201_v61 = vmax.f32 %v199_v53, %v200_v57 }
  0x61   : > { %v223_v53 = vshrl.u32 %v215_v48, 7 }
  0x62   : > { %v185_v11 = vrot.slane %v184_v9, 1  ;;  %v191_v12 = vadd.f32 %v190_v10, %v189_v8  ;;  %v208_v60 = vmax.f32 %v206_v52, %v207_v56  ;;  %v202_v1 = vrot.slane %v201_v61, 1 }
  0x64   : > { %v186_v13 = vadd.f32 %v185_v11, %v184_v9  ;;  %v192_v14 = vrot.slane %v191_v12, 1  ;;  %v209_v0 = vrot.slane %v208_v60, 1  ;;  %v3407_v5 = vmax.f32 %v201_v61, %v202_v1  ;;  %v3475_v1 = vld [vmem:[#allocation2 + $0x1] ss:$8 sm:$0x3] }
  0x65   : > { %v3471_v61 = vsub.s32 1, %v223_v53 }
  0x66   : > { %v3129_v15 = vmul.f32 0.25, %v186_v13  ;;  %v193_v16 = vadd.f32 %v192_v14, %v191_v12  ;;  %v3403_v4 = vmax.f32 %v208_v60, %v209_v0  ;;  %v3469_v60 = vsub.s32 0, %v223_v53 }
  0x67   : > { %v3473_v0 = vand.u32 127, %v215_v48 }
  0x68   : > { %236 = vrot.lane.b32.xlu1 %v3129_v15, %s2902_s15  ;;  %211 = vrot.lane.b32.xlu0 %v3129_v15, %s2903_s17  ;;  %v3135_v17 = vmul.f32 0.25, %v193_v16 }
  0x69   : > { %vm240_vm1 = vcmp.lt.s32.totalorder %v3473_v0, 50  ;;  %vm264_vm2 = vcmp.lt.s32.totalorder %v3473_v0, 49  ;;  %vm288_vm3 = vcmp.lt.s32.totalorder %v3473_v0, 48  ;;  %vm312_vm4 = vcmp.lt.s32.totalorder %v3473_v0, 47 }
  0x6a   : > { %vm336_vm5 = vcmp.lt.s32.totalorder %v3473_v0, 46  ;;  %vm360_vm6 = vcmp.lt.s32.totalorder %v3473_v0, 45  ;;  %vm217_vm7 = vcmp.lt.s32.totalorder %v3473_v0, 51  ;;  %vm5616_vm8 = vcmp.lt.s32.totalorder %v3473_v0, 35 }
  0x6b   : > { %vm5615_vm9 = vcmp.lt.s32.totalorder %v3473_v0, 34  ;;  %vm5590_vm10 = vcmp.lt.s32.totalorder %v3473_v0, 33  ;;  %vm5587_vm11 = vcmp.lt.s32.totalorder %v3473_v0, 32  ;;  %vm5588_vm12 = vcmp.lt.s32.totalorder %v3473_v0, 31 }
  0x6c   : > { %260 = vrot.lane.b32.xlu0 %v3129_v15, %s2904_s22  ;;  %238 = vrot.lane.b32.xlu1 %v3135_v17, %s2902_s15  ;;  %vm5589_vm13 = vcmp.lt.s32.totalorder %v3473_v0, 30  ;;  %vm5591_vm14 = vcmp.lt.s32.totalorder %v3473_v0, 29  ;;  %vm5592_vm15 = vcmp.lt.s32.totalorder %v3473_v0, 19  ;;  %vm5593_vm0 = vcmp.lt.s32.totalorder %v3473_v0, 18 }
  0x70   : > { %284 = vrot.lane.b32.xlu0 %v3129_v15, %s2905_s23  ;;  %262 = vrot.lane.b32.xlu1 %v3135_v17, %s2904_s22 }
  0x74   : > { %308 = vrot.lane.b32.xlu0 %v3129_v15, %s2906_s28  ;;  %286 = vrot.lane.b32.xlu1 %v3135_v17, %s2905_s23 }
  0x78   : > { %332 = vrot.lane.b32.xlu0 %v3129_v15, %s2907_s29  ;;  %310 = vrot.lane.b32.xlu1 %v3135_v17, %s2906_s28 }
  0x7c   : > { %356 = vrot.lane.b32.xlu0 %v3129_v15, %s2908_s30  ;;  %334 = vrot.lane.b32.xlu1 %v3135_v17, %s2907_s29 }
  0x80   : > { %358 = vrot.lane.b32.xlu1 %v3135_v17, %s2908_s30  ;;  %213 = vrot.lane.b32.xlu0 %v3135_v17, %s2903_s17 }
  0x84   : > { %382 = vrot.lane.b32.xlu1 %v3135_v17, %s2909_s3  ;;  %380 = vrot.lane.b32.xlu0 %v3129_v15, %s2909_s3 }
  0x88   : > { %406 = vrot.lane.b32.xlu1 %v3135_v17, %s2910_s4  ;;  %404 = vrot.lane.b32.xlu0 %v3129_v15, %s2910_s4 }
  0x8c   : > { %430 = vrot.lane.b32.xlu1 %v3135_v17, %s2911_s5  ;;  %428 = vrot.lane.b32.xlu0 %v3129_v15, %s2911_s5 }
  0x90   : > { %454 = vrot.lane.b32.xlu1 %v3135_v17, %s2912_s6  ;;  %452 = vrot.lane.b32.xlu0 %v3129_v15, %s2912_s6 }
  0x94   : > { %478 = vrot.lane.b32.xlu1 %v3135_v17, %s2913_s7  ;;  %476 = vrot.lane.b32.xlu0 %v3129_v15, %s2913_s7 }
  0x98   : > { %502 = vrot.lane.b32.xlu1 %v3135_v17, %s2914_s18  ;;  %500 = vrot.lane.b32.xlu0 %v3129_v15, %s2914_s18 }
  0x9c   : > { %526 = vrot.lane.b32.xlu1 %v3135_v17, %s5450_s24  ;;  %524 = vrot.lane.b32.xlu0 %v3129_v15, %s5450_s24  ;;  %s5458_s24 = smov 16  }
  0xa0   : > { %550 = vrot.lane.b32.xlu1 %v3135_v17, %s5452_s25  ;;  %548 = vrot.lane.b32.xlu0 %v3129_v15, %s5452_s25  ;;  %s5460_s25 = smov 15  }
  0xa4   : > { %574 = vrot.lane.b32.xlu1 %v3135_v17, %s5454_s19  ;;  %572 = vrot.lane.b32.xlu0 %v3129_v15, %s5454_s19  ;;  %s5462_s19 = smov 14  }
  0xa8   : > { %598 = vrot.lane.b32.xlu1 %v3135_v17, %s5456_s26  ;;  %596 = vrot.lane.b32.xlu0 %v3129_v15, %s5456_s26  ;;  %s5464_s26 = smov 13  }
  0xac   : > { %622 = vrot.lane.b32.xlu1 %v3135_v17, %s5458_s24  ;;  %620 = vrot.lane.b32.xlu0 %v3129_v15, %s5458_s24  ;;  %s5466_s24 = smov 3  }
  0xb0   : > { %646 = vrot.lane.b32.xlu1 %v3135_v17, %s5460_s25  ;;  %644 = vrot.lane.b32.xlu0 %v3129_v15, %s5460_s25  ;;  %s5468_s25 = smov 2  }
  0xb4   : > { %670 = vrot.lane.b32.xlu1 %v3135_v17, %s5462_s19  ;;  %668 = vrot.lane.b32.xlu0 %v3129_v15, %s5462_s19  ;;  %s5470_s19 = smov 1  }
  0xb8   : > { %694 = vrot.lane.b32.xlu1 %v3135_v17, %s5464_s26  ;;  %692 = vrot.lane.b32.xlu0 %v3129_v15, %s5464_s26  ;;  %s5472_s26 = smov 127  }
  0xbc   : > { %718 = vrot.lane.b32.xlu1 %v3135_v17, %s5466_s24  ;;  %716 = vrot.lane.b32.xlu0 %v3129_v15, %s5466_s24  ;;  %s5474_s24 = smov 126  }
  0xc0   : > { %742 = vrot.lane.b32.xlu1 %v3135_v17, %s5468_s25  ;;  %740 = vrot.lane.b32.xlu0 %v3129_v15, %s5468_s25  ;;  %s2928_s25 = smov 125  }
  0xc4   : > { %766 = vrot.lane.b32.xlu1 %v3135_v17, %s5470_s19  ;;  %764 = vrot.lane.b32.xlu0 %v3129_v15, %s5470_s19  ;;  %s5476_s19 = smov 115  }
  0xc8   : > { %807 = vrot.lane.b32.xlu1 %v3135_v17, %s5472_s26  ;;  %805 = vrot.lane.b32.xlu0 %v3129_v15, %s5472_s26  ;;  %s5478_s26 = smov 114  }
  0xcc   : > { %831 = vrot.lane.b32.xlu1 %v3135_v17, %s5474_s24  ;;  %829 = vrot.lane.b32.xlu0 %v3129_v15, %s5474_s24  ;;  %s5480_s24 = smov 113  }
  0xd0   : > { %855 = vrot.lane.b32.xlu1 %v3135_v17, %s2928_s25  ;;  %853 = vrot.lane.b32.xlu0 %v3129_v15, %s2928_s25 }
  0xd4   : > { %879 = vrot.lane.b32.xlu1 %v3135_v17, %s5476_s19  ;;  %877 = vrot.lane.b32.xlu0 %v3129_v15, %s5476_s19  ;;  %s5482_s19 = smov 112  }
  0xd8   : > { %903 = vrot.lane.b32.xlu1 %v3135_v17, %s5478_s26  ;;  %901 = vrot.lane.b32.xlu0 %v3129_v15, %s5478_s26  ;;  %s5484_s26 = smov 111  }
  0xda   : > { %v3249_v18 = vpop.permute.xlu1 %236  ;;  %v3251_v19 = vpop.permute.xlu0 %211 }
  0xdc   : > { %927 = vrot.lane.b32.xlu1 %v3135_v17, %s5480_s24  ;;  %925 = vrot.lane.b32.xlu0 %v3129_v15, %s5480_s24  ;;  %s5486_s24 = smov 110  }
  0xde   : > { %v3257_v20 = vpop.permute.xlu0 %260  ;;  %v3259_v21 = vpop.permute.xlu1 %238 }
  0xe0   : > { %951 = vrot.lane.b32.xlu1 %v3135_v17, %s5482_s19  ;;  %949 = vrot.lane.b32.xlu0 %v3129_v15, %s5482_s19  ;;  %s5488_s19 = smov 109  }
  0xe2   : > { %v3265_v22 = vpop.permute.xlu0 %284  ;;  %v3267_v23 = vpop.permute.xlu1 %262 }
  0xe4   : > { %975 = vrot.lane.b32.xlu1 %v3135_v17, %s5484_s26  ;;  %973 = vrot.lane.b32.xlu0 %v3129_v15, %s5484_s26  ;;  %s5490_s26 = smov 99  }
  0xe6   : > { %v3273_v24 = vpop.permute.xlu0 %308  ;;  %v3275_v25 = vpop.permute.xlu1 %286 }
  0xe8   : > { %999 = vrot.lane.b32.xlu1 %v3135_v17, %s5486_s24  ;;  %997 = vrot.lane.b32.xlu0 %v3129_v15, %s5486_s24  ;;  %s5492_s24 = smov 98  }
  0xea   : > { %v3281_v26 = vpop.permute.xlu0 %332  ;;  %v3283_v27 = vpop.permute.xlu1 %310 }
  0xec   : > { %1023 = vrot.lane.b32.xlu1 %v3135_v17, %s5488_s19  ;;  %1021 = vrot.lane.b32.xlu0 %v3129_v15, %s5488_s19  ;;  %s5494_s19 = smov 97  }
  0xee   : > { %v3289_v28 = vpop.permute.xlu0 %356  ;;  %v3291_v29 = vpop.permute.xlu1 %334 }
  0xf0   : > { %1047 = vrot.lane.b32.xlu1 %v3135_v17, %s5490_s26  ;;  %1045 = vrot.lane.b32.xlu0 %v3129_v15, %s5490_s26  ;;  %s5496_s26 = smov 96  }
  0xf2   : > { %v3297_v30 = vpop.permute.xlu1 %358  ;;  %v3299_v31 = vpop.permute.xlu0 %213 }
  0xf4   : > { %1071 = vrot.lane.b32.xlu1 %v3135_v17, %s5492_s24  ;;  %1069 = vrot.lane.b32.xlu0 %v3129_v15, %s5492_s24  ;;  %s5498_s24 = smov 95  }
  0xf6   : > { %v3305_v32 = vpop.permute.xlu1 %382  ;;  %v3307_v33 = vpop.permute.xlu0 %380 }
  0xf8   : > { %1095 = vrot.lane.b32.xlu1 %v3135_v17, %s5494_s19  ;;  %1093 = vrot.lane.b32.xlu0 %v3129_v15, %s5494_s19  ;;  %s5504_s19 = smov 94  }
  0xfa   : > { %v3313_v34 = vpop.permute.xlu1 %406  ;;  %v3315_v35 = vpop.permute.xlu0 %404 }
  0xfc   : > { %1119 = vrot.lane.b32.xlu1 %v3135_v17, %s5496_s26  ;;  %1117 = vrot.lane.b32.xlu0 %v3129_v15, %s5496_s26  ;;  %s5500_s26 = smov 93  }
  0xfe   : > { %v3321_v36 = vpop.permute.xlu1 %430  ;;  %v3323_v37 = vpop.permute.xlu0 %428 }
 0x100   : > { %1143 = vrot.lane.b32.xlu1 %v3135_v17, %s5498_s24  ;;  %1141 = vrot.lane.b32.xlu0 %v3129_v15, %s5498_s24  ;;  %s5502_s24 = smov 83  }
 0x102   : > { %v3329_v38 = vpop.permute.xlu1 %454  ;;  %v3331_v39 = vpop.permute.xlu0 %452 }
 0x104   : > { %1167 = vrot.lane.b32.xlu1 %v3135_v17, %s5504_s19  ;;  %1165 = vrot.lane.b32.xlu0 %v3129_v15, %s5504_s19  ;;  %s5510_s19 = smov 80  }
 0x106   : > { %v3337_v40 = vpop.permute.xlu1 %478  ;;  %v3339_v41 = vpop.permute.xlu0 %476 }
 0x108   : > { %1191 = vrot.lane.b32.xlu1 %v3135_v17, %s5500_s26  ;;  %1189 = vrot.lane.b32.xlu0 %v3129_v15, %s5500_s26  ;;  %s5506_s26 = smov 82  }
 0x10a   : > { %v3345_v42 = vpop.permute.xlu1 %502  ;;  %v3347_v43 = vpop.permute.xlu0 %500 }
 0x10c   : > { %1215 = vrot.lane.b32.xlu1 %v3135_v17, %s5502_s24  ;;  %1213 = vrot.lane.b32.xlu0 %v3129_v15, %s5502_s24  ;;  %s5508_s24 = smov 81  }
 0x10e   : > { %v3355_v45 = vpop.permute.xlu1 %526  ;;  %v3357_v46 = vpop.permute.xlu0 %524 }
 0x110   : > { %1239 = vrot.lane.b32.xlu1 %v3135_v17, %s5506_s26  ;;  %1237 = vrot.lane.b32.xlu0 %v3129_v15, %s5506_s26  ;;  %s2947_s26 = smov 79  }
 0x112   : > { %v3365_v50 = vpop.permute.xlu1 %550  ;;  %v3367_v51 = vpop.permute.xlu0 %548 }
 0x113   : > { %5663 = vst [vmem:[#allocation11_spill] sm:$0xff] %v3367_v51 }
 0x114   : > { %1263 = vrot.lane.b32.xlu1 %v3135_v17, %s5508_s24  ;;  %1261 = vrot.lane.b32.xlu0 %v3129_v15, %s5508_s24  ;;  %s2948_s24 = smov 78  }
 0x116   : > { %v3373_v54 = vpop.permute.xlu1 %574  ;;  %v3375_v55 = vpop.permute.xlu0 %572 }
 0x117   : > { %5664 = vst [vmem:[#allocation12_spill] sm:$0xff] %v3373_v54  ;;  %5665 = vst [vmem:[#allocation13_spill] sm:$0xff] %v3375_v55 }
 0x118   : > { %1287 = vrot.lane.b32.xlu1 %v3135_v17, %s5510_s19  ;;  %1285 = vrot.lane.b32.xlu0 %v3129_v15, %s5510_s19  ;;  %s2949_s19 = smov 77  }
 0x11a   : > { %v3381_v58 = vpop.permute.xlu1 %598  ;;  %v3383_v59 = vpop.permute.xlu0 %596 }
 0x11b   : > { %5666 = vst [vmem:[#allocation14_spill] sm:$0xff] %v3381_v58  ;;  %5667 = vst [vmem:[#allocation15_spill] sm:$0xff] %v3383_v59  ;;  %v3595_v58 = vld [vmem:[#allocation2 + $0x23] ss:$8 sm:$0x3] }
 0x11c   : > { %1311 = vrot.lane.b32.xlu1 %v3135_v17, %s2947_s26  ;;  %1309 = vrot.lane.b32.xlu0 %v3129_v15, %s2947_s26  ;;  %5698 = vst [vmem:[#allocation46_spill] sm:$0xff] %v3595_v58  ;;  %v3648_v58 = vld [vmem:[#allocation2 + $0x32] ss:$8 sm:$0x3] }
 0x11d   : > { %5703 = vst [vmem:[#allocation51_spill] sm:$0xff] %v3648_v58 }
 0x11e   : > { %v3389_v62 = vpop.permute.xlu1 %622  ;;  %v3391_v63 = vpop.permute.xlu0 %620 }
 0x11f   : > { %5668 = vst [vmem:[#allocation16_spill] sm:$0xff] %v3389_v62  ;;  %5669 = vst [vmem:[#allocation17_spill] sm:$0xff] %v3391_v63  ;;  %v3579_v63 = vld [vmem:[#allocation2 + $0x20] ss:$8 sm:$0x3] }
 0x120   : > { %1335 = vrot.lane.b32.xlu1 %v3135_v17, %s2948_s24  ;;  %1333 = vrot.lane.b32.xlu0 %v3129_v15, %s2948_s24  ;;  %5695 = vst [vmem:[#allocation43_spill] sm:$0xff] %v3579_v63  ;;  %v3581_v62 = vld [vmem:[#allocation2 + $0x21] ss:$8 sm:$0x3] }
 0x121   : > { %5696 = vst [vmem:[#allocation44_spill] sm:$0xff] %v3581_v62  ;;  %v3635_v62 = vld [vmem:[#allocation2 + $0x31] ss:$8 sm:$0x3] }
 0x122   : > { %v3397_v2 = vpop.permute.xlu1 %646  ;;  %v3399_v3 = vpop.permute.xlu0 %644 }
 0x123   : > { %5670 = vst [vmem:[#allocation18_spill] sm:$0xff] %v3397_v2  ;;  %5671 = vst [vmem:[#allocation19_spill] sm:$0xff] %v3399_v3  ;;  %v3553_v3 = vld [vmem:[#allocation2 + $0x15] ss:$8 sm:$0x3] }
 0x124   : > { %1359 = vrot.lane.b32.xlu1 %v3135_v17, %s2949_s19  ;;  %1357 = vrot.lane.b32.xlu0 %v3129_v15, %s2949_s19  ;;  %5692 = vst [vmem:[#allocation40_spill] sm:$0xff] %v3553_v3  ;;  %v3555_v2 = vld [vmem:[#allocation2 + $0x16] ss:$8 sm:$0x3] }
 0x125   : > { %5693 = vst [vmem:[#allocation41_spill] sm:$0xff] %v3555_v2  ;;  %v3608_v3 = vld [vmem:[#allocation2 + $0x25] ss:$8 sm:$0x3] }
 0x126   : > { %v3409_v6 = vpop.permute.xlu1 %670  ;;  %v3411_v7 = vpop.permute.xlu0 %668  ;;  %5702 = vst [vmem:[#allocation50_spill] sm:$0xff] %v3608_v3 }
 0x127   : > { %5672 = vst [vmem:[#allocation20_spill] sm:$0xff] %v3409_v6  ;;  %5673 = vst [vmem:[#allocation21_spill] sm:$0xff] %v3411_v7 }
 0x128   : > { %1383 = vrot.lane.b32.xlu1 %v3403_v4, %s2903_s17  ;;  %1381 = vrot.lane.b32.xlu0 %v3407_v5, %s2903_s17  ;;  %s5729_s17 = smov 19  }
 0x12a   : > { %v3417_v8 = vpop.permute.xlu1 %694  ;;  %v3419_v9 = vpop.permute.xlu0 %692 }
 0x12b   : > { %5674 = vst [vmem:[#allocation22_spill] sm:$0xff] %v3417_v8  ;;  %5675 = vst [vmem:[#allocation23_spill] sm:$0xff] %v3419_v9  ;;  %v3539_v8 = vld [vmem:[#allocation2 + $0x14] ss:$8 sm:$0x3] }
 0x12c   : > { %1406 = vrot.lane.b32.xlu1 %v3403_v4, %s2902_s15  ;;  %1404 = vrot.lane.b32.xlu0 %v3407_v5, %s2902_s15  ;;  %v3606_v9 = vld [vmem:[#allocation2 + $0x24] ss:$8 sm:$0x3]  ;;  %s5723_s15 = smov 29  }
 0x12d   : > { %5701 = vst [vmem:[#allocation49_spill] sm:$0xff] %v3606_v9  ;;  %v3697_v9 = vld [vmem:[#allocation2 + $0x40] ss:$8 sm:$0x3] }
 0x12e   : > { %v3425_v10 = vpop.permute.xlu1 %718  ;;  %v3427_v11 = vpop.permute.xlu0 %716  ;;  %5711 = vst [vmem:[#allocation59_spill] sm:$0xff] %v3697_v9 }
 0x12f   : > { %5676 = vst [vmem:[#allocation24_spill] sm:$0xff] %v3425_v10  ;;  %5677 = vst [vmem:[#allocation25_spill] sm:$0xff] %v3427_v11  ;;  %v3511_v11 = vld [vmem:[#allocation2 + $0x10] ss:$8 sm:$0x3] }
 0x130   : > { %1429 = vrot.lane.b32.xlu1 %v3403_v4, %s2904_s22  ;;  %1427 = vrot.lane.b32.xlu0 %v3407_v5, %s2904_s22  ;;  %v3525_v10 = vld [vmem:[#allocation2 + $0x12] ss:$8 sm:$0x3]  ;;  %s5737_s22 = smov 18  }
 0x132   : > { %v3433_v12 = vpop.permute.xlu1 %742  ;;  %v3435_v13 = vpop.permute.xlu0 %740 }
 0x133   : > { %5678 = vst [vmem:[#allocation26_spill] sm:$0xff] %v3433_v12  ;;  %5679 = vst [vmem:[#allocation27_spill] sm:$0xff] %v3435_v13  ;;  %v789_v12 = vld [vmem:[#allocation2 + $0x30] ss:$8 sm:$0x3] }
 0x134   : > { %1452 = vrot.lane.b32.xlu1 %v3403_v4, %s2905_s23  ;;  %1450 = vrot.lane.b32.xlu0 %v3407_v5, %s2905_s23  ;;  %v3593_v13 = vld [vmem:[#allocation2 + $0x22] ss:$8 sm:$0x3]  ;;  %v798_v2 = vrot.slane %v789_v12, %v3471_v61  ;;  %s5742_s23 = smov 17  }
 0x135   : > { %5697 = vst [vmem:[#allocation45_spill] sm:$0xff] %v3593_v13  ;;  %v3650_v13 = vld [vmem:[#allocation2 + $0x33] ss:$8 sm:$0x3] }
 0x136   : > { %v3441_v14 = vpop.permute.xlu1 %766  ;;  %v3443_v16 = vpop.permute.xlu0 %764  ;;  %5704 = vst [vmem:[#allocation52_spill] sm:$0xff] %v3650_v13  ;;  %v3668_v3 = vmul.f32 %v798_v2, %v3135_v17  ;;  %v3711_v13 = vld [vmem:[#allocation2 + $0x41] ss:$8 sm:$0x3] }
 0x137   : > { %5680 = vst [vmem:[#allocation28_spill] sm:$0xff] %v3441_v14  ;;  %5681 = vst [vmem:[#allocation29_spill] sm:$0xff] %v3443_v16  ;;  %v3497_v16 = vld [vmem:[#allocation2 + $0x6] ss:$8 sm:$0x3] }
 0x138   : > { %1475 = vrot.lane.b32.xlu1 %v3403_v4, %s2906_s28  ;;  %1473 = vrot.lane.b32.xlu0 %v3407_v5, %s2906_s28  ;;  %v3499_v14 = vld [vmem:[#allocation2] ss:$8 sm:$0x3]  ;;  %5714 = vst [vmem:[#allocation62_spill] sm:$0xff] %v3711_v13  ;;  %v5720_v13 = vrot.slane %v3475_v1, %v3471_v61  ;;  %s5750_s28 = smov 16  }
 0x139   : > { %v3740_v17 = vld [vmem:[#allocation2 + $0x43] ss:$8 sm:$0x3] }
 0x13a   : > { %v3449_v44 = vpop.permute.xlu1 %807  ;;  %v3451_v47 = vpop.permute.xlu0 %805  ;;  %5715 = vst [vmem:[#allocation63_spill] sm:$0xff] %v3740_v17 }
 0x13b   : > { %5682 = vst [vmem:[#allocation30_spill] sm:$0xff] %v3449_v44  ;;  %5683 = vst [vmem:[#allocation31_spill] sm:$0xff] %v3451_v47  ;;  %v3509_v47 = vld [vmem:[#allocation2 + $0x7] ss:$8 sm:$0x3]  ;;  %v794_v44 = vrot.slane %v789_v12, %v3469_v60 }
 0x13c   : > { %1498 = vrot.lane.b32.xlu1 %v3403_v4, %s2907_s29  ;;  %1496 = vrot.lane.b32.xlu0 %v3407_v5, %s2907_s29  ;;  %v3665_v12 = vld [vmem:[#allocation2 + $0x34] ss:$8 sm:$0x3]  ;;  %s5759_s29 = smov 15  }
 0x13d   : > { %v3663_v59 = vmul.f32 %v794_v44, %v3129_v15  ;;  %5707 = vst [vmem:[#allocation55_spill] sm:$0xff] %v3665_v12  ;;  %v3680_v44 = vld [vmem:[#allocation2 + $0x36] ss:$8 sm:$0x3] }
 0x13e   : > { %v3457_v49 = vpop.permute.xlu1 %831  ;;  %v3459_v52 = vpop.permute.xlu0 %829  ;;  %5709 = vst [vmem:[#allocation57_spill] sm:$0xff] %v3680_v44  ;;  %v5717_v44 = vrot.slane %v3475_v1, %v3469_v60 }
 0x13f   : > { %5684 = vst [vmem:[#allocation32_spill] sm:$0xff] %v3457_v49  ;;  %5685 = vst [vmem:[#allocation33_spill] sm:$0xff] %v3459_v52  ;;  %v3479_v52 = vld [vmem:[#allocation2 + $0x2] ss:$8 sm:$0x3] }
 0x140   : > { %1521 = vrot.lane.b32.xlu1 %v3403_v4, %s2908_s30  ;;  %1519 = vrot.lane.b32.xlu0 %v3407_v5, %s2908_s30  ;;  %v3481_v49 = vld [vmem:[#allocation2 + $0x3] ss:$8 sm:$0x3]  ;;  %v5722_v2 = vrot.slane %v3479_v52, %v3471_v61  ;;  %s5773_s30 = smov 14  }
 0x141   : > { %v5725_v1 = vrot.slane %v3481_v49, %v3471_v61 }
 0x142   : > { %v3465_v56 = vpop.permute.xlu1 %855  ;;  %v3467_v57 = vpop.permute.xlu0 %853 }
 0x143   : > { %5686 = vst [vmem:[#allocation34_spill] sm:$0xff] %v3465_v56  ;;  %5687 = vst [vmem:[#allocation35_spill] sm:$0xff] %v3467_v57  ;;  %v3485_v56 = vld [vmem:[#allocation2 + $0x4] ss:$8 sm:$0x3] }
 0x144   : > { %1544 = vrot.lane.b32.xlu1 %v3403_v4, %s2909_s3  ;;  %1542 = vrot.lane.b32.xlu0 %v3407_v5, %s2909_s3  ;;  %v3487_v57 = vld [vmem:[#allocation2 + $0x5] ss:$8 sm:$0x3]  ;;  %s5784_s3 = smov 13  }
 0x146   : > { %v3489_v53 = vpop.permute.xlu1 %879  ;;  %v3491_v48 = vpop.permute.xlu0 %877 }
 0x147   : > { %5688 = vst [vmem:[#allocation36_spill] sm:$0xff] %v3489_v53  ;;  %5689 = vst [vmem:[#allocation37_spill] sm:$0xff] %v3491_v48  ;;  %v3523_v48 = vld [vmem:[#allocation2 + $0x11] ss:$8 sm:$0x3] }
 0x148   : > { %1567 = vrot.lane.b32.xlu1 %v3403_v4, %s2910_s4  ;;  %1565 = vrot.lane.b32.xlu0 %v3407_v5, %s2910_s4  ;;  %v3537_v53 = vld [vmem:[#allocation2 + $0x13] ss:$8 sm:$0x3]  ;;  %s5801_s4 = smov 3  }
 0x14a   : > { %v3541_v7 = vpop.permute.xlu1 %903  ;;  %v3543_v6 = vpop.permute.xlu0 %901 }
 0x14b   : > { %5690 = vst [vmem:[#allocation38_spill] sm:$0xff] %v3541_v7  ;;  %5691 = vst [vmem:[#allocation39_spill] sm:$0xff] %v3543_v6  ;;  %v3566_v7 = vld [vmem:[#allocation2 + $0x17] ss:$8 sm:$0x3] }
 0x14c   : > { %5694 = vst [vmem:[#allocation42_spill] sm:$0xff] %v3566_v7  ;;  %1590 = vrot.lane.b32.xlu1 %v3403_v4, %s2911_s5  ;;  %1588 = vrot.lane.b32.xlu0 %v3407_v5, %s2911_s5  ;;  %v3620_v7 = vld [vmem:[#allocation2 + $0x26] ss:$8 sm:$0x3]  ;;  %s5809_s5 = smov 2  }
 0x14d   : > { %v3633_v6 = vld [vmem:[#allocation2 + $0x27] ss:$8 sm:$0x3] }
 0x14e   : > { %v3597_v55 = vpop.permute.xlu1 %927  ;;  %v3599_v54 = vpop.permute.xlu0 %925 }
 0x14f   : > { %5699 = vst [vmem:[#allocation47_spill] sm:$0xff] %v3597_v55  ;;  %5700 = vst [vmem:[#allocation48_spill] sm:$0xff] %v3599_v54  ;;  %v3682_v54 = vld [vmem:[#allocation2 + $0x37] ss:$8 sm:$0x3] }
 0x150   : > { %1613 = vrot.lane.b32.xlu1 %v3403_v4, %s2912_s6  ;;  %1611 = vrot.lane.b32.xlu0 %v3407_v5, %s2912_s6  ;;  %5710 = vst [vmem:[#allocation58_spill] sm:$0xff] %v3682_v54  ;;  %v3754_v54 = vld [vmem:[#allocation2 + $0x44] ss:$8 sm:$0x3]  ;;  %s5824_s6 = smov 1  }
 0x151   : > { %5716 = vst [vmem:[#allocation64_spill] sm:$0xff] %v3754_v54  ;;  %v5727_v54 = vrot.slane %v3487_v57, %v3469_v60 }
 0x152   : > { %v3652_v63 = vpop.permute.xlu1 %951  ;;  %v3654_v51 = vpop.permute.xlu0 %949 }
 0x153   : > { %5705 = vst [vmem:[#allocation53_spill] sm:$0xff] %v3652_v63  ;;  %5706 = vst [vmem:[#allocation54_spill] sm:$0xff] %v3654_v51  ;;  %v3670_v63 = vld [vmem:[#allocation2 + $0x35] ss:$8 sm:$0x3]  ;;  %v242_v51 = vsel %vm240_vm1, %v3259_v21, %v3249_v18 }
 0x154   : > { %5708 = vst [vmem:[#allocation56_spill] sm:$0xff] %v3670_v63  ;;  %1636 = vrot.lane.b32.xlu1 %v3403_v4, %s2913_s7  ;;  %1634 = vrot.lane.b32.xlu0 %v3407_v5, %s2913_s7  ;;  %v3723_v63 = vld [vmem:[#allocation2 + $0x42] ss:$8 sm:$0x3]  ;;  %v256_v12 = vmul.f32 %v5717_v44, %v242_v51  ;;  %v5721_v51 = vrot.slane %v3479_v52, %v3469_v60  ;;  %s5836_s7 = smov 127  }
 0x155   : > { %v5724_v52 = vrot.slane %v3481_v49, %v3469_v60  ;;  %v5728_v49 = vrot.slane %v3487_v57, %v3471_v61 }
 0x156   : > { %v3707_v58 = vpop.permute.xlu1 %975  ;;  %v3709_v15 = vpop.permute.xlu0 %973 }
 0x157   : > { %5712 = vst [vmem:[#allocation60_spill] sm:$0xff] %v3707_v58  ;;  %5713 = vst [vmem:[#allocation61_spill] sm:$0xff] %v3709_v15  ;;  %v241_v15 = vsel %vm240_vm1, %v3249_v18, %v3259_v21  ;;  %v266_v58 = vsel %vm264_vm2, %v3267_v23, %v3257_v20  ;;  %v265_v18 = vsel %vm264_vm2, %v3257_v20, %v3267_v23 }
 0x158   : > { %1659 = vrot.lane.b32.xlu1 %v3403_v4, %s2914_s18  ;;  %1657 = vrot.lane.b32.xlu0 %v3407_v5, %s2914_s18  ;;  %v290_v20 = vsel %vm288_vm3, %v3275_v25, %v3265_v22  ;;  %v257_v9 = vmul.f32 %v5720_v13, %v241_v15  ;;  %v280_v44 = vmul.f32 %v5721_v51, %v266_v58  ;;  %v3797_v15 = vld [vmem:[#allocation2 + $0x45] ss:$8 sm:$0x3]  ;;  %s5852_s18 = smov 126  }
 0x159   : > { %v281_v55 = vmul.f32 %v5722_v2, %v265_v18  ;;  %v289_v13 = vsel %vm288_vm3, %v3265_v22, %v3275_v25  ;;  %v314_v58 = vsel %vm312_vm4, %v3283_v27, %v3273_v24  ;;  %v304_v2 = vmul.f32 %v5724_v52, %v290_v20 }
 0x15a   : > { %v3763_v23 = vpop.permute.xlu1 %999  ;;  %v3765_v21 = vpop.permute.xlu0 %997  ;;  %v337_v22 = vsel %vm336_vm5, %v3281_v26, %v3291_v29  ;;  %v338_v25 = vsel %vm336_vm5, %v3291_v29, %v3281_v26  ;;  %v361_v20 = vsel %vm360_vm6, %v3289_v28, %v3297_v30  ;;  %v362_v51 = vsel %vm360_vm6, %v3297_v30, %v3289_v28 }
 0x15b   : > { %5718 = vst [vmem:[#allocation65_spill] sm:$0xff] %v3763_v23  ;;  %5719 = vst [vmem:[#allocation66_spill] sm:$0xff] %v3765_v21  ;;  %v218_v26 = vsel %vm217_vm7, %v3251_v19, %v3299_v31  ;;  %v219_v29 = vsel %vm217_vm7, %v3299_v31, %v3251_v19  ;;  %v305_v28 = vmul.f32 %v5725_v1, %v289_v13  ;;  %v3848_v31 = vld [vmem:[#allocation2 + $0x46] ss:$8 sm:$0x3] }
 0x15c   : > { %1682 = vrot.lane.b32.xlu1 %v3403_v4, %s5723_s15  ;;  %1680 = vrot.lane.b32.xlu0 %v3407_v5, %s5723_s15  ;;  %v313_v30 = vsel %vm312_vm4, %v3273_v24, %v3283_v27  ;;  %v5726_v21 = vrot.slane %v3485_v56, %v3469_v60  ;;  %v352_v17 = vmul.f32 %v5727_v54, %v338_v25  ;;  %v3882_v25 = vld [vmem:[#allocation2 + $0x47] ss:$8 sm:$0x3]  ;;  %s5880_s15 = smov 114  }
 0x15d   : > { %v353_v13 = vmul.f32 %v5728_v49, %v337_v22  ;;  %v385_v24 = vsel %vm5616_vm8, %v3307_v33, %v3305_v32  ;;  %v386_v27 = vsel %vm5616_vm8, %v3305_v32, %v3307_v33  ;;  %v5730_v54 = vrot.slane %v3497_v16, %v3469_v60 }
 0x15e   : > { %v3832_v52 = vpop.permute.xlu1 %1023  ;;  %v3834_v18 = vpop.permute.xlu0 %1021  ;;  %v328_v23 = vmul.f32 %v5726_v21, %v314_v58  ;;  %v5731_v21 = vrot.slane %v3497_v16, %v3471_v61  ;;  %v5732_v1 = vrot.slane %v3499_v14, %v3469_v60  ;;  %v5733_v32 = vrot.slane %v3499_v14, %v3471_v61 }
 0x15f   : > { %v376_v57 = vmul.f32 %v5730_v54, %v362_v51  ;;  %v5734_v51 = vrot.slane %v3485_v56, %v3471_v61  ;;  %v5735_v54 = vrot.slane %v3509_v47, %v3469_v60  ;;  %v5736_v56 = vrot.slane %v3509_v47, %v3471_v61  ;;  %v5789_v47 = vld [vmem:[#allocation23_spill] sm:$0xff] }
 0x160   : > { %1705 = vrot.lane.b32.xlu1 %v3403_v4, %s5729_s17  ;;  %v377_v58 = vmul.f32 %v5731_v21, %v361_v20  ;;  %v232_v22 = vmul.f32 %v5732_v1, %v219_v29  ;;  %v233_v33 = vmul.f32 %v5733_v32, %v218_v26  ;;  %1703 = vrot.lane.b32.xlu0 %v3407_v5, %s5729_s17  ;;  %vm5635_vm8 = vcmp.lt.s32.totalorder %v3473_v0, 113  ;;  %s5887_s17 = smov 113  }
 0x161   : > { %v329_v16 = vmul.f32 %v5734_v51, %v313_v30  ;;  %v400_v21 = vmul.f32 %v5735_v54, %v386_v27  ;;  %v401_v30 = vmul.f32 %v5736_v56, %v385_v24  ;;  %v409_v1 = vsel %vm5615_vm9, %v3315_v35, %v3313_v34  ;;  %v3918_v27 = vld [vmem:[#allocation2 + $0x50] ss:$8 sm:$0x3] }
 0x162   : > { %v3887_v20 = vpop.permute.xlu1 %1047  ;;  %v3889_v49 = vpop.permute.xlu0 %1045  ;;  %v410_v32 = vsel %vm5615_vm9, %v3313_v34, %v3315_v35  ;;  %v354_v51 = vadd.f32 %v352_v17, %v256_v12  ;;  %v355_v26 = vadd.f32 %v353_v13, %v257_v9  ;;  %v378_v54 = vadd.f32 %v376_v57, %v280_v44  ;;  %v3922_v34 = vld [vmem:[#allocation2 + $0x51] ss:$8 sm:$0x3] }
 0x163   : > { %v379_v56 = vadd.f32 %v377_v58, %v281_v55  ;;  %v330_v14 = vadd.f32 %v328_v23, %v232_v22  ;;  %v331_v29 = vadd.f32 %v329_v16, %v233_v33  ;;  %5738 = vst [vmem:[#allocation67_spill] sm:$0xff] %v3922_v34  ;;  %v5739_v35 = vrot.slane %v3511_v11, %v3469_v60  ;;  %v3947_v33 = vld [vmem:[#allocation2 + $0x52] ss:$8 sm:$0x3]  ;;  %v5779_v22 = vld [vmem:[#allocation18_spill] sm:$0xff] }
 0x164   : > { %1728 = vrot.lane.b32.xlu1 %v3403_v4, %s5737_s22  ;;  %1726 = vrot.lane.b32.xlu0 %v3407_v5, %s5737_s22  ;;  %v5740_v12 = vrot.slane %v3511_v11, %v3471_v61  ;;  %v433_v55 = vsel %vm5590_vm10, %v3323_v37, %v3321_v36  ;;  %v434_v23 = vsel %vm5590_vm10, %v3321_v36, %v3323_v37  ;;  %vm5596_vm10 = vcmp.lt.s32.totalorder %v3473_v0, 14  ;;  %v5780_v11 = vld [vmem:[#allocation19_spill] sm:$0xff]  ;;  %s5890_s22 = smov 112  }
 0x165   : > { %v424_v9 = vmul.f32 %v5739_v35, %v410_v32  ;;  %v402_v13 = vadd.f32 %v400_v21, %v304_v2  ;;  %v403_v57 = vadd.f32 %v401_v30, %v305_v28  ;;  %5741 = vst [vmem:[#allocation68_spill] sm:$0xff] %v3947_v33  ;;  %v457_v36 = vsel %vm5587_vm11, %v3331_v39, %v3329_v38 }
 0x166   : > { %v425_v17 = vmul.f32 %v5740_v12, %v409_v1  ;;  %v3939_v44 = vpop.permute.xlu1 %1071  ;;  %v3941_v58 = vpop.permute.xlu0 %1069  ;;  %v458_v37 = vsel %vm5587_vm11, %v3329_v38, %v3331_v39  ;;  %v5743_v16 = vrot.slane %v3523_v48, %v3469_v60  ;;  %v5744_v30 = vrot.slane %v3523_v48, %v3471_v61  ;;  %v4056_v48 = vld [vmem:[#allocation2 + $0x55] ss:$8 sm:$0x3] }
 0x167   : > { %v481_v38 = vsel %vm5588_vm12, %v3339_v41, %v3337_v40  ;;  %v482_v39 = vsel %vm5588_vm12, %v3337_v40, %v3339_v41  ;;  %vm5614_vm11 = vcmp.lt.s32.totalorder %v3473_v0, 17  ;;  %v426_v32 = vadd.f32 %v424_v9, %v330_v14 }
 0x168   : > { %1751 = vrot.lane.b32.xlu1 %v3403_v4, %s5742_s23  ;;  %v448_v21 = vmul.f32 %v5743_v16, %v434_v23  ;;  %v449_v1 = vmul.f32 %v5744_v30, %v433_v55  ;;  %1749 = vrot.lane.b32.xlu0 %v3407_v5, %s5742_s23  ;;  %v427_v35 = vadd.f32 %v425_v17, %v331_v29  ;;  %v3986_v23 = vld [vmem:[#allocation2 + $0x53] ss:$8 sm:$0x3]  ;;  %vm5594_vm12 = vcmp.lt.s32.totalorder %v3473_v0, 16  ;;  %s5907_s23 = smov 111  }
 0x169   : > { %5745 = vst [vmem:[#allocation69_spill] sm:$0xff] %v3986_v23  ;;  %v5746_v40 = vrot.slane %v3525_v10, %v3469_v60  ;;  %v5747_v16 = vrot.slane %v3525_v10, %v3471_v61  ;;  %v505_v29 = vsel %vm5589_vm13, %v3347_v43, %v3345_v42  ;;  %v506_v14 = vsel %vm5589_vm13, %v3345_v42, %v3347_v43 }
 0x16a   : > { %v3980_v12 = vpop.permute.xlu1 %1095  ;;  %v4003_v9 = vpop.permute.xlu0 %1093  ;;  %v5748_v17 = vrot.slane %v3537_v53, %v3469_v60  ;;  %v5749_v10 = vrot.slane %v3537_v53, %v3471_v61  ;;  %v530_v42 = vsel %vm5591_vm14, %v3355_v45, %v3357_v46  ;;  %vm5595_vm13 = vcmp.lt.s32.totalorder %v3473_v0, 15 }
 0x16b   : > { %v472_v41 = vmul.f32 %v5746_v40, %v458_v37  ;;  %v473_v30 = vmul.f32 %v5747_v16, %v457_v36  ;;  %v529_v40 = vsel %vm5591_vm14, %v3357_v46, %v3355_v45  ;;  %v450_v43 = vadd.f32 %v448_v21, %v354_v51  ;;  %v4029_v16 = vld [vmem:[#allocation2 + $0x54] ss:$8 sm:$0x3] }
 0x16c   : > { %v496_v37 = vmul.f32 %v5748_v17, %v482_v39  ;;  %v497_v36 = vmul.f32 %v5749_v10, %v481_v38  ;;  %1774 = vrot.lane.b32.xlu1 %v3403_v4, %s5750_s28  ;;  %v451_v39 = vadd.f32 %v449_v1, %v355_v26  ;;  %1772 = vrot.lane.b32.xlu0 %v3407_v5, %s5750_s28  ;;  %v5754_v21 = vld [vmem:[#allocation11_spill] sm:$0xff]  ;;  %vm5613_vm14 = vcmp.lt.s32.totalorder %v3473_v0, 13  ;;  %s5914_s28 = smov 110  }
 0x16d   : > { %5751 = vst [vmem:[#allocation70_spill] sm:$0xff] %v4029_v16  ;;  %v5752_v45 = vrot.slane %v3539_v8, %v3469_v60  ;;  %v5753_v26 = vrot.slane %v3539_v8, %v3471_v61  ;;  %v553_v1 = vsel %vm5592_vm15, %v5754_v21, %v3365_v50  ;;  %v554_v17 = vsel %vm5592_vm15, %v3365_v50, %v5754_v21 }
 0x16e   : > { %v4046_v10 = vpop.permute.xlu1 %1119  ;;  %v474_v38 = vadd.f32 %v472_v41, %v378_v54  ;;  %v4054_v55 = vpop.permute.xlu0 %1117  ;;  %5758 = vst [vmem:[#allocation11_spill] sm:$0xff] %v4056_v48  ;;  %v498_v28 = vadd.f32 %v496_v37, %v402_v13  ;;  %v499_v50 = vadd.f32 %v497_v36, %v403_v57  ;;  %v4064_v41 = vld [vmem:[#allocation2 + $0x56] ss:$8 sm:$0x3]  ;;  %v5765_v37 = vld [vmem:[#allocation13_spill] sm:$0xff]  ;;  %vm5619_vm15 = vcmp.lt.s32.totalorder %v3473_v0, 3 }
 0x16f   : > { %v520_v46 = vmul.f32 %v5752_v45, %v506_v14  ;;  %v521_v51 = vmul.f32 %v5753_v26, %v505_v29  ;;  %v475_v14 = vadd.f32 %v473_v30, %v379_v56  ;;  %v5755_v45 = vld [vmem:[#allocation40_spill] sm:$0xff]  ;;  %v5761_v30 = vld [vmem:[#allocation41_spill] sm:$0xff]  ;;  %vm5638_vm9 = vcmp.lt.s32.totalorder %v3473_v0, 114 }
 0x170   : > { %v5756_v8 = vrot.slane %v5755_v45, %v3469_v60  ;;  %v5757_v26 = vrot.slane %v5755_v45, %v3471_v61  ;;  %1797 = vrot.lane.b32.xlu1 %v3403_v4, %s5759_s29  ;;  %5760 = vst [vmem:[#allocation40_spill] sm:$0xff] %v4064_v41  ;;  %v5763_v21 = vrot.slane %v5761_v30, %v3471_v61  ;;  %v5764_v57 = vld [vmem:[#allocation12_spill] sm:$0xff]  ;;  %v4197_v41 = vld [vmem:[#allocation2 + $0x63] ss:$8 sm:$0x3] }
 0x171   : > { %v577_v36 = vsel %vm5593_vm0, %v5765_v37, %v5764_v57  ;;  %v578_v45 = vsel %vm5593_vm0, %v5764_v57, %v5765_v37  ;;  %1795 = vrot.lane.b32.xlu0 %v3407_v5, %s5759_s29  ;;  %vm5617_vm0 = vcmp.lt.s32.totalorder %v3473_v0, 2  ;;  %s5927_s29 = smov 109  }
 0x172   : > { %v544_v29 = vmul.f32 %v5756_v8, %v530_v42  ;;  %v545_v53 = vmul.f32 %v5757_v26, %v529_v40  ;;  %v5762_v40 = vrot.slane %v5761_v30, %v3469_v60  ;;  %v569_v13 = vmul.f32 %v5763_v21, %v553_v1  ;;  %v4091_v57 = vpop.permute.xlu0 %1141 }
 0x173   : > { %v522_v8 = vadd.f32 %v520_v46, %v426_v32  ;;  %v523_v26 = vadd.f32 %v521_v51, %v427_v35  ;;  %v4097_v46 = vld [vmem:[#allocation2 + $0x60] ss:$8 sm:$0x3] }
 0x174   : > { %v568_v42 = vmul.f32 %v5762_v40, %v554_v17  ;;  %v4082_v17 = vpop.permute.xlu1 %1143  ;;  %v4088_v40 = vld [vmem:[#allocation2 + $0x57] ss:$8 sm:$0x3]  ;;  %v546_v21 = vadd.f32 %v544_v29, %v450_v43  ;;  %v547_v56 = vadd.f32 %v545_v53, %v451_v39  ;;  %5767 = vst [vmem:[#allocation12_spill] sm:$0xff] %v4097_v46  ;;  %v5768_v51 = vld [vmem:[#allocation42_spill] sm:$0xff]  ;;  %1820 = vrot.lane.b32.xlu1 %v3403_v4, %s5773_s30 }
 0x175   : > { %5766 = vst [vmem:[#allocation41_spill] sm:$0xff] %v4088_v40  ;;  %v5769_v37 = vrot.slane %v5768_v51, %v3469_v60  ;;  %v5770_v43 = vrot.slane %v5768_v51, %v3471_v61  ;;  %v5771_v53 = vld [vmem:[#allocation14_spill] sm:$0xff]  ;;  %v5772_v29 = vld [vmem:[#allocation15_spill] sm:$0xff]  ;;  %v571_v54 = vadd.f32 %v569_v13, %v475_v14  ;;  %1818 = vrot.lane.b32.xlu0 %v3407_v5, %s5773_s30  ;;  %v5774_v51 = vld [vmem:[#allocation16_spill] sm:$0xff]  ;;  %s5934_s30 = smov 99  }
 0x176   : > { %v601_v1 = vsel %vm5614_vm11, %v5772_v29, %v5771_v53  ;;  %v602_v35 = vsel %vm5614_vm11, %v5771_v53, %v5772_v29  ;;  %v570_v32 = vadd.f32 %v568_v42, %v474_v38  ;;  %v5776_v53 = vld [vmem:[#allocation43_spill] sm:$0xff]  ;;  %v4151_v13 = vpop.permute.xlu0 %1165  ;;  %v4153_v42 = vld [vmem:[#allocation2 + $0x61] ss:$8 sm:$0x3]  ;;  %5794 = vst [vmem:[#allocation14_spill] sm:$0xff] %v4197_v41  ;;  %vm5639_vm11 = vcmp.lt.s32.totalorder %v3473_v0, 115 }
 0x177   : > { %v592_v30 = vmul.f32 %v5769_v37, %v578_v45  ;;  %v593_v39 = vmul.f32 %v5770_v43, %v577_v36  ;;  %v5775_v37 = vld [vmem:[#allocation17_spill] sm:$0xff]  ;;  %v5777_v29 = vrot.slane %v5776_v53, %v3469_v60  ;;  %v5778_v36 = vrot.slane %v5776_v53, %v3471_v61  ;;  %5781 = vst [vmem:[#allocation13_spill] sm:$0xff] %v4153_v42  ;;  %v5782_v53 = vld [vmem:[#allocation20_spill] sm:$0xff]  ;;  %v5795_v46 = vld [vmem:[#allocation46_spill] sm:$0xff] }
 0x178   : > { %v625_v43 = vsel %vm5594_vm12, %v5775_v37, %v5774_v51  ;;  %v626_v38 = vsel %vm5594_vm12, %v5774_v51, %v5775_v37  ;;  %v4130_v14 = vpop.permute.xlu1 %1167  ;;  %v649_v51 = vsel %vm5595_vm13, %v5780_v11, %v5779_v22  ;;  %v650_v37 = vsel %vm5595_vm13, %v5779_v22, %v5780_v11  ;;  %1843 = vrot.lane.b32.xlu1 %v3403_v4, %s5784_s3  ;;  %v5785_v11 = vld [vmem:[#allocation44_spill] sm:$0xff] }
 0x179   : > { %v616_v45 = vmul.f32 %v5777_v29, %v602_v35  ;;  %v617_v2 = vmul.f32 %v5778_v36, %v601_v1  ;;  %vm5618_vm12 = vcmp.lt.s32.totalorder %v3473_v0, 1  ;;  %v594_v35 = vadd.f32 %v592_v30, %v498_v28  ;;  %v5783_v1 = vld [vmem:[#allocation21_spill] sm:$0xff]  ;;  %1841 = vrot.lane.b32.xlu0 %v3407_v5, %s5784_s3  ;;  %s5941_s3 = smov 98  }
 0x17a   : > { %v595_v29 = vadd.f32 %v593_v39, %v499_v50  ;;  %v673_v36 = vsel %vm5596_vm10, %v5783_v1, %v5782_v53  ;;  %v674_v24 = vsel %vm5596_vm10, %v5782_v53, %v5783_v1  ;;  %vm5630_vm13 = vcmp.lt.s32.totalorder %v3473_v0, 127  ;;  %v5788_v39 = vld [vmem:[#allocation22_spill] sm:$0xff]  ;;  %v5791_v1 = vld [vmem:[#allocation45_spill] sm:$0xff] }
 0x17b   : > { %v5786_v22 = vrot.slane %v5785_v11, %v3469_v60  ;;  %v5787_v50 = vrot.slane %v5785_v11, %v3471_v61  ;;  %v697_v19 = vsel %vm5613_vm14, %v5789_v47, %v5788_v39  ;;  %v698_v53 = vsel %vm5613_vm14, %v5788_v39, %v5789_v47 }
 0x17c   : > { %vm5631_vm10 = vcmp.lt.s32.totalorder %v3473_v0, 126  ;;  %v4191_v40 = vpop.permute.xlu1 %1191  ;;  %v618_v23 = vadd.f32 %v616_v45, %v522_v8  ;;  %v619_v48 = vadd.f32 %v617_v2, %v523_v26  ;;  %v5796_v16 = vrot.slane %v5795_v46, %v3469_v60  ;;  %1866 = vrot.lane.b32.xlu1 %v3403_v4, %s5801_s4 }
 0x17d   : > { %v640_v28 = vmul.f32 %v5786_v22, %v626_v38  ;;  %v641_v30 = vmul.f32 %v5787_v50, %v625_v43  ;;  %v4183_v38 = vld [vmem:[#allocation2 + $0x62] ss:$8 sm:$0x3]  ;;  %v5792_v43 = vrot.slane %v5791_v1, %v3469_v60  ;;  %v5793_v22 = vrot.slane %v5791_v1, %v3471_v61  ;;  %1864 = vrot.lane.b32.xlu0 %v3407_v5, %s5801_s4  ;;  %s5947_s4 = smov 97  }
 0x17e   : > { %5790 = vst [vmem:[#allocation42_spill] sm:$0xff] %v4183_v38  ;;  %v5797_v1 = vrot.slane %v5795_v46, %v3471_v61  ;;  %vm5632_vm14 = vcmp.lt.s32.totalorder %v3473_v0, 125  ;;  %v5808_v46 = vld [vmem:[#allocation27_spill] sm:$0xff]  ;;  %v5825_v41 = vrot.slane %v3633_v6, %v3469_v60  ;;  %v5826_v38 = vrot.slane %v3633_v6, %v3471_v61 }
 0x17f   : > { %v664_v11 = vmul.f32 %v5792_v43, %v650_v37  ;;  %v665_v50 = vmul.f32 %v5793_v22, %v649_v51  ;;  %v688_v37 = vmul.f32 %v5796_v16, %v674_v24  ;;  %v4205_v43 = vpop.permute.xlu0 %1189  ;;  %v5798_v22 = vld [vmem:[#allocation49_spill] sm:$0xff]  ;;  %v642_v8 = vadd.f32 %v640_v28, %v546_v21 }
 0x180   : > { %v689_v51 = vmul.f32 %v5797_v1, %v673_v36  ;;  %v5799_v47 = vrot.slane %v5798_v22, %v3469_v60  ;;  %v5800_v39 = vrot.slane %v5798_v22, %v3471_v61  ;;  %v4219_v16 = vld [vmem:[#allocation2 + $0x64] ss:$8 sm:$0x3]  ;;  %v643_v26 = vadd.f32 %v641_v30, %v547_v56  ;;  %v4238_v28 = vpop.permute.xlu1 %1215  ;;  %v4240_v30 = vld [vmem:[#allocation2 + $0x65] ss:$8 sm:$0x3]  ;;  %1889 = vrot.lane.b32.xlu1 %v3403_v4, %s5809_s5 }
 0x181   : > { %5802 = vst [vmem:[#allocation15_spill] sm:$0xff] %v4219_v16  ;;  %v666_v45 = vadd.f32 %v664_v11, %v570_v32  ;;  %v667_v36 = vadd.f32 %v665_v50, %v571_v54  ;;  %5805 = vst [vmem:[#allocation16_spill] sm:$0xff] %v4240_v30  ;;  %v4249_v50 = vld [vmem:[#allocation2 + $0x66] ss:$8 sm:$0x3]  ;;  %1887 = vrot.lane.b32.xlu0 %v3407_v5, %s5809_s5  ;;  %s5950_s5 = smov 96  }
 0x182   : > { %v712_v33 = vmul.f32 %v5799_v47, %v698_v53  ;;  %v713_v42 = vmul.f32 %v5800_v39, %v697_v19  ;;  %v5803_v53 = vld [vmem:[#allocation24_spill] sm:$0xff]  ;;  %v5804_v47 = vld [vmem:[#allocation25_spill] sm:$0xff]  ;;  %v690_v39 = vadd.f32 %v688_v37, %v594_v35  ;;  %v691_v1 = vadd.f32 %v689_v51, %v595_v29  ;;  %5806 = vst [vmem:[#allocation17_spill] sm:$0xff] %v4249_v50  ;;  %v5810_v37 = vld [vmem:[#allocation50_spill] sm:$0xff] }
 0x183   : > { %v721_v56 = vsel %vm5619_vm15, %v5804_v47, %v5803_v53  ;;  %v722_v21 = vsel %vm5619_vm15, %v5803_v53, %v5804_v47  ;;  %v4243_v54 = vpop.permute.xlu0 %1213  ;;  %v5807_v47 = vld [vmem:[#allocation26_spill] sm:$0xff]  ;;  %v5811_v51 = vrot.slane %v5810_v37, %v3469_v60  ;;  %vm5647_vm15 = vcmp.lt.s32.totalorder %v3473_v0, 110 }
 0x184   : > { %v714_v22 = vadd.f32 %v712_v33, %v618_v23  ;;  %v715_v53 = vadd.f32 %v713_v42, %v619_v48  ;;  %v745_v35 = vsel %vm5617_vm0, %v5808_v46, %v5807_v47  ;;  %v746_v29 = vsel %vm5617_vm0, %v5807_v47, %v5808_v46  ;;  %v5813_v46 = vld [vmem:[#allocation28_spill] sm:$0xff]  ;;  %v5814_v47 = vld [vmem:[#allocation29_spill] sm:$0xff]  ;;  %v5818_v11 = vld [vmem:[#allocation30_spill] sm:$0xff]  ;;  %1912 = vrot.lane.b32.xlu1 %v3403_v4, %s5824_s6 }
 0x185   : > { %v736_v19 = vmul.f32 %v5811_v51, %v722_v21  ;;  %v5812_v33 = vrot.slane %v5810_v37, %v3471_v61  ;;  %v769_v2 = vsel %vm5618_vm12, %v5814_v47, %v5813_v46  ;;  %v770_v21 = vsel %vm5618_vm12, %v5813_v46, %v5814_v47  ;;  %v5819_v46 = vld [vmem:[#allocation31_spill] sm:$0xff]  ;;  %1910 = vrot.lane.b32.xlu0 %v3407_v5, %s5824_s6  ;;  %s5953_s6 = smov 95  }
 0x186   : > { %vm5640_vm0 = vcmp.lt.s32.totalorder %v3473_v0, 112  ;;  %v5817_v23 = vrot.slane %v3620_v7, %v3471_v61  ;;  %v810_v47 = vsel %vm5630_vm13, %v5819_v46, %v5818_v11  ;;  %v811_v37 = vsel %vm5630_vm13, %v5818_v11, %v5819_v46 }
 0x187   : > { %v737_v48 = vmul.f32 %v5812_v33, %v721_v56  ;;  %v4282_v56 = vpop.permute.xlu1 %1239  ;;  %v5816_v33 = vrot.slane %v3620_v7, %v3469_v60  ;;  %vm5641_vm12 = vcmp.lt.s32.totalorder %v3473_v0, 111  ;;  %v4304_v51 = vpop.permute.xlu0 %1237  ;;  %v5822_v7 = vld [vmem:[#allocation32_spill] sm:$0xff]  ;;  %v803_v11 = vadd.f32 %v3663_v59, %v714_v22  ;;  %v5829_v22 = vld [vmem:[#allocation51_spill] sm:$0xff] }
 0x188   : > { %5815 = vst [vmem:[#allocation43_spill] sm:$0xff] %v4282_v56  ;;  %v761_v24 = vmul.f32 %v5817_v23, %v745_v35  ;;  %5820 = vst [vmem:[#allocation18_spill] sm:$0xff] %v4304_v51  ;;  %v5823_v35 = vld [vmem:[#allocation33_spill] sm:$0xff]  ;;  %v804_v46 = vadd.f32 %v3668_v3, %v715_v53  ;;  %v738_v32 = vadd.f32 %v736_v19, %v642_v8  ;;  %vm5646_vm13 = vcmp.lt.s32.totalorder %v3473_v0, 109  ;;  %v5849_v51 = vld [vmem:[#allocation56_spill] sm:$0xff] }
 0x189   : > { %v760_v42 = vmul.f32 %v5816_v33, %v746_v29  ;;  %v4306_v29 = vld [vmem:[#allocation2 + $0x67] ss:$8 sm:$0x3]  ;;  %v834_v23 = vsel %vm5631_vm10, %v5823_v35, %v5822_v7  ;;  %v835_v33 = vsel %vm5631_vm10, %v5822_v7, %v5823_v35  ;;  %v739_v50 = vadd.f32 %v737_v48, %v643_v26  ;;  %v5833_v7 = vld [vmem:[#allocation35_spill] sm:$0xff]  ;;  %1952 = vrot.lane.b32.xlu1 %v3403_v4, %s5836_s7 }
 0x18a   : > { %5821 = vst [vmem:[#allocation19_spill] sm:$0xff] %v4306_v29  ;;  %v784_v30 = vmul.f32 %v5825_v41, %v770_v21  ;;  %v785_v16 = vmul.f32 %v5826_v38, %v769_v2  ;;  %v5827_v59 = vrot.slane %v3635_v62, %v3469_v60  ;;  %v5828_v8 = vrot.slane %v3635_v62, %v3471_v61 }
 0x18b   : > { %v4335_v19 = vpop.permute.xlu1 %1263  ;;  %v762_v38 = vadd.f32 %v760_v42, %v666_v45  ;;  %v763_v2 = vadd.f32 %v761_v24, %v667_v36  ;;  %v5830_v53 = vrot.slane %v5829_v22, %v3469_v60  ;;  %v5831_v21 = vrot.slane %v5829_v22, %v3471_v61  ;;  %v4347_v62 = vpop.permute.xlu0 %1261  ;;  %v5834_v45 = vld [vmem:[#allocation36_spill] sm:$0xff]  ;;  %v5835_v36 = vld [vmem:[#allocation37_spill] sm:$0xff]  ;;  %v5838_v22 = vld [vmem:[#allocation39_spill] sm:$0xff]  ;;  %1950 = vrot.lane.b32.xlu0 %v3407_v5, %s5836_s7  ;;  %s5956_s7 = smov 94  }
 0x18c   : > { %v825_v3 = vmul.f32 %v5827_v59, %v810_v47  ;;  %v826_v26 = vmul.f32 %v5828_v8, %v811_v37  ;;  %v5832_v37 = vld [vmem:[#allocation34_spill] sm:$0xff]  ;;  %v882_v42 = vsel %vm5639_vm11, %v5835_v36, %v5834_v45  ;;  %vm5648_vm10 = vcmp.lt.s32.totalorder %v3473_v0, 99 }
 0x18d   : > { %v849_v48 = vmul.f32 %v5830_v53, %v834_v23  ;;  %v850_v47 = vmul.f32 %v5831_v21, %v835_v33  ;;  %v858_v35 = vsel %vm5632_vm14, %v5833_v7, %v5832_v37  ;;  %v859_v24 = vsel %vm5632_vm14, %v5832_v37, %v5833_v7  ;;  %v5837_v8 = vld [vmem:[#allocation38_spill] sm:$0xff]  ;;  %1975 = vrot.lane.b32.xlu1 %v3403_v4, %s5852_s18 }
 0x18e   : > { %v883_v23 = vsel %vm5639_vm11, %v5834_v45, %v5835_v36  ;;  %v786_v33 = vadd.f32 %v784_v30, %v690_v39  ;;  %v787_v59 = vadd.f32 %v785_v16, %v691_v1  ;;  %v906_v53 = vsel %vm5638_vm9, %v5838_v22, %v5837_v8  ;;  %v5839_v45 = vld [vmem:[#allocation47_spill] sm:$0xff]  ;;  %v5840_v30 = vld [vmem:[#allocation48_spill] sm:$0xff] }
 0x18f   : > { %v907_v21 = vsel %vm5638_vm9, %v5837_v8, %v5838_v22  ;;  %vm5650_vm14 = vcmp.lt.s32.totalorder %v3473_v0, 98  ;;  %v827_v37 = vadd.f32 %v825_v3, %v738_v32  ;;  %v828_v7 = vadd.f32 %v826_v26, %v739_v50  ;;  %v4387_v1 = vpop.permute.xlu1 %1287  ;;  %v5842_v36 = vld [vmem:[#allocation52_spill] sm:$0xff]  ;;  %v5845_v3 = vld [vmem:[#allocation55_spill] sm:$0xff]  ;;  %1973 = vrot.lane.b32.xlu0 %v3407_v5, %s5852_s18  ;;  %s5959_s18 = smov 93  }
 0x190   : > { %v930_v16 = vsel %vm5635_vm8, %v5840_v30, %v5839_v45  ;;  %v931_v39 = vsel %vm5635_vm8, %v5839_v45, %v5840_v30  ;;  %5841 = vst [vmem:[#allocation20_spill] sm:$0xff] %v4387_v1  ;;  %v5843_v8 = vrot.slane %v5842_v36, %v3469_v60  ;;  %v5844_v32 = vrot.slane %v5842_v36, %v3471_v61  ;;  %v4402_v45 = vpop.permute.xlu0 %1285 }
 0x191   : > { %v5846_v26 = vrot.slane %v5845_v3, %v3469_v60  ;;  %v5847_v41 = vrot.slane %v5845_v3, %v3471_v61  ;;  %vm5649_vm8 = vcmp.lt.s32.totalorder %v3473_v0, 97  ;;  %5848 = vst [vmem:[#allocation21_spill] sm:$0xff] %v4402_v45  ;;  %v851_v30 = vadd.f32 %v849_v48, %v762_v38  ;;  %v5857_v48 = vld [vmem:[#allocation54_spill] sm:$0xff]  ;;  %v5860_v3 = vld [vmem:[#allocation65_spill] sm:$0xff]  ;;  %1998 = vrot.lane.b32.xlu1 %v3403_v4, %s2928_s25 }
 0x192   : > { %v873_v22 = vmul.f32 %v5843_v8, %v858_v35  ;;  %v874_v50 = vmul.f32 %v5844_v32, %v859_v24  ;;  %v852_v1 = vadd.f32 %v850_v47, %v763_v2  ;;  %v5850_v35 = vrot.slane %v5849_v51, %v3469_v60  ;;  %v5856_v2 = vld [vmem:[#allocation53_spill] sm:$0xff] }
 0x193   : > { %v897_v6 = vmul.f32 %v5846_v26, %v882_v42  ;;  %v898_v29 = vmul.f32 %v5847_v41, %v883_v23  ;;  %v5851_v24 = vrot.slane %v5849_v51, %v3471_v61  ;;  %v5853_v42 = vld [vmem:[#allocation57_spill] sm:$0xff]  ;;  %v954_v47 = vsel %vm5640_vm0, %v5857_v48, %v5856_v2  ;;  %v5861_v26 = vld [vmem:[#allocation66_spill] sm:$0xff]  ;;  %1996 = vrot.lane.b32.xlu0 %v3407_v5, %s2928_s25  ;;  %s5873_s25 = smov 115  }
 0x194   : > { %v921_v8 = vmul.f32 %v5850_v35, %v906_v53  ;;  %v5854_v41 = vrot.slane %v5853_v42, %v3469_v60  ;;  %v5855_v32 = vrot.slane %v5853_v42, %v3471_v61  ;;  %v955_v51 = vsel %vm5640_vm0, %v5856_v2, %v5857_v48  ;;  %v5858_v53 = vld [vmem:[#allocation60_spill] sm:$0xff]  ;;  %v4447_v42 = vpop.permute.xlu1 %1311 }
 0x195   : > { %v922_v36 = vmul.f32 %v5851_v24, %v907_v21  ;;  %vm1121_vm9 = vcmp.lt.s32.totalorder %v3473_v0, 96  ;;  %vm5651_vm11 = vcmp.lt.s32.totalorder %v3473_v0, 77  ;;  %v5859_v21 = vld [vmem:[#allocation61_spill] sm:$0xff]  ;;  %v1002_v35 = vsel %vm5647_vm15, %v5861_v26, %v5860_v3  ;;  %2021 = vrot.lane.b32.xlu1 %v3403_v4, %s5873_s25 }
 0x196   : > { %v945_v23 = vmul.f32 %v5854_v41, %v930_v16  ;;  %v946_v38 = vmul.f32 %v5855_v32, %v931_v39  ;;  %v978_v16 = vsel %vm5641_vm12, %v5859_v21, %v5858_v53  ;;  %v979_v39 = vsel %vm5641_vm12, %v5858_v53, %v5859_v21  ;;  %v4450_v53 = vpop.permute.xlu0 %1309  ;;  %v5862_v21 = vld [vmem:[#allocation58_spill] sm:$0xff] }
 0x197   : > { %v1003_v24 = vsel %vm5647_vm15, %v5860_v3, %v5861_v26  ;;  %vm1145_vm0 = vcmp.lt.s32.totalorder %v3473_v0, 95  ;;  %v875_v41 = vadd.f32 %v873_v22, %v786_v33  ;;  %v876_v32 = vadd.f32 %v874_v50, %v787_v59  ;;  %v5868_v22 = vld [vmem:[#allocation62_spill] sm:$0xff]  ;;  %2019 = vrot.lane.b32.xlu0 %v3407_v5, %s5873_s25  ;;  %s5962_s25 = smov 83  }
 0x198   : > { %v899_v2 = vadd.f32 %v897_v6, %v803_v11  ;;  %v900_v48 = vadd.f32 %v898_v29, %v804_v46  ;;  %vm1169_vm12 = vcmp.lt.s32.totalorder %v3473_v0, 94  ;;  %v5863_v45 = vrot.slane %v5862_v21, %v3469_v60  ;;  %v5865_v11 = vld [vmem:[#allocation59_spill] sm:$0xff] }
 0x199   : > { %v5864_v34 = vrot.slane %v5862_v21, %v3471_v61  ;;  %v1026_v33 = vsel %vm5646_vm13, %v3834_v18, %v3832_v52  ;;  %v1027_v29 = vsel %vm5646_vm13, %v3832_v52, %v3834_v18  ;;  %v5866_v46 = vrot.slane %v5865_v11, %v3469_v60  ;;  %2044 = vrot.lane.b32.xlu1 %v3403_v4, %s5880_s15 }
 0x19a   : > { %v969_v56 = vmul.f32 %v5863_v45, %v954_v47  ;;  %v5869_v50 = vrot.slane %v5868_v22, %v3469_v60  ;;  %v5870_v47 = vrot.slane %v5868_v22, %v3471_v61  ;;  %v923_v18 = vadd.f32 %v921_v8, %v827_v37 }
 0x19b   : > { %v970_v3 = vmul.f32 %v5864_v34, %v955_v51  ;;  %v993_v6 = vmul.f32 %v5866_v46, %v978_v16  ;;  %v5867_v34 = vrot.slane %v5865_v11, %v3471_v61  ;;  %v924_v52 = vadd.f32 %v922_v36, %v828_v7  ;;  %v4482_v16 = vpop.permute.xlu1 %1335  ;;  %v4500_v7 = vpop.permute.xlu0 %1333  ;;  %2042 = vrot.lane.b32.xlu0 %v3407_v5, %s5880_s15  ;;  %s5965_s15 = smov 82  }
 0x19c   : > { %v1017_v45 = vmul.f32 %v5869_v50, %v1002_v35  ;;  %v1018_v51 = vmul.f32 %v5870_v47, %v1003_v24  ;;  %v947_v26 = vadd.f32 %v945_v23, %v851_v30  ;;  %v948_v21 = vadd.f32 %v946_v38, %v852_v1  ;;  %v5874_v23 = vld [vmem:[#allocation63_spill] sm:$0xff] }
 0x19d   : > { %v994_v59 = vmul.f32 %v5867_v34, %v979_v39  ;;  %v5871_v39 = vrot.slane %v3723_v63, %v3469_v60  ;;  %v5872_v35 = vrot.slane %v3723_v63, %v3471_v61  ;;  %v1050_v24 = vsel %vm5648_vm10, %v3889_v49, %v3887_v20  ;;  %2067 = vrot.lane.b32.xlu1 %v3403_v4, %s5887_s17 }
 0x19e   : > { %v1051_v37 = vsel %vm5648_vm10, %v3887_v20, %v3889_v49  ;;  %vm1193_vm13 = vcmp.lt.s32.totalorder %v3473_v0, 93  ;;  %vm1217_vm15 = vcmp.lt.s32.totalorder %v3473_v0, 83  ;;  %v971_v1 = vadd.f32 %v969_v56, %v875_v41 }
 0x19f   : > { %v1041_v11 = vmul.f32 %v5871_v39, %v1026_v33  ;;  %v1042_v46 = vmul.f32 %v5872_v35, %v1027_v29  ;;  %v972_v30 = vadd.f32 %v970_v3, %v876_v32  ;;  %v1074_v63 = vsel %vm5650_vm14, %v3941_v58, %v3939_v44  ;;  %v5877_v29 = vld [vmem:[#allocation64_spill] sm:$0xff]  ;;  %v1358_v50 = vpop.permute.xlu0 %1357  ;;  %2065 = vrot.lane.b32.xlu0 %v3407_v5, %s5887_s17  ;;  %s5968_s17 = smov 81  }
 0x1a0   : > { %v1075_v8 = vsel %vm5650_vm14, %v3939_v44, %v3941_v58  ;;  %vm1265_vm10 = vcmp.lt.s32.totalorder %v3473_v0, 81  ;;  %v995_v20 = vadd.f32 %v993_v6, %v899_v2  ;;  %v996_v49 = vadd.f32 %v994_v59, %v900_v48  ;;  %v1360_v48 = vpop.permute.xlu1 %1359 }
 0x1a1   : > { %v1019_v36 = vadd.f32 %v1017_v45, %v923_v18  ;;  %v1020_v56 = vadd.f32 %v1018_v51, %v924_v52  ;;  %v5875_v38 = vrot.slane %v5874_v23, %v3469_v60  ;;  %v5876_v32 = vrot.slane %v5874_v23, %v3471_v61  ;;  %2090 = vrot.lane.b32.xlu1 %v3403_v4, %s5890_s22 }
 0x1a2   : > { %v1098_v58 = vsel %vm5649_vm8, %v4003_v9, %v3980_v12  ;;  %v1099_v2 = vsel %vm5649_vm8, %v3980_v12, %v4003_v9  ;;  %v1043_v3 = vadd.f32 %v1041_v11, %v947_v26  ;;  %v1044_v33 = vadd.f32 %v1042_v46, %v948_v21 }
 0x1a3   : > { %v1065_v41 = vmul.f32 %v5875_v38, %v1050_v24  ;;  %v1066_v44 = vmul.f32 %v5876_v32, %v1051_v37  ;;  %v5878_v6 = vrot.slane %v5877_v29, %v3469_v60  ;;  %v5879_v59 = vrot.slane %v5877_v29, %v3471_v61  ;;  %2088 = vrot.lane.b32.xlu0 %v3407_v5, %s5890_s22  ;;  %s5971_s22 = smov 80  }
 0x1a4   : > { %v1122_v45 = vsel %vm1121_vm9, %v4054_v55, %v4046_v10  ;;  %v1123_v12 = vsel %vm1121_vm9, %v4046_v10, %v4054_v55  ;;  %vm1241_vm8 = vcmp.lt.s32.totalorder %v3473_v0, 82  ;;  %vm1289_vm14 = vcmp.lt.s32.totalorder %v3473_v0, 80  ;;  %v1384_v35 = vpop.permute.xlu1 %1383 }
 0x1a5   : > { %v1089_v34 = vmul.f32 %v5878_v6, %v1074_v63  ;;  %v1090_v22 = vmul.f32 %v5879_v59, %v1075_v8  ;;  %v1362_v9 = vsel %vm5651_vm11, %v1358_v50, %v1360_v48  ;;  %v1363_v47 = vsel %vm5651_vm11, %v1360_v48, %v1358_v50  ;;  %2113 = vrot.lane.b32.xlu1 %v3403_v4, %s5907_s23 }
 0x1a6   : > { %v5881_v51 = vrot.slane %v3797_v15, %v3469_v60  ;;  %v5882_v55 = vrot.slane %v3797_v15, %v3471_v61  ;;  %v1146_v52 = vsel %vm1145_vm0, %v4091_v57, %v4082_v17  ;;  %v1147_v26 = vsel %vm1145_vm0, %v4082_v17, %v4091_v57 }
 0x1a7   : > { %v1067_v21 = vadd.f32 %v1065_v41, %v971_v1  ;;  %v1068_v39 = vadd.f32 %v1066_v44, %v972_v30  ;;  %v1170_v15 = vsel %vm1169_vm12, %v4151_v13, %v4130_v14  ;;  %v1171_v11 = vsel %vm1169_vm12, %v4130_v14, %v4151_v13  ;;  %v1382_v30 = vpop.permute.xlu0 %1381  ;;  %2111 = vrot.lane.b32.xlu0 %v3407_v5, %s5907_s23 }
 0x1a8   : > { %v1113_v18 = vmul.f32 %v5881_v51, %v1098_v58  ;;  %v1114_v10 = vmul.f32 %v5882_v55, %v1099_v2  ;;  %v1091_v46 = vadd.f32 %v1089_v34, %v995_v20  ;;  %v1092_v24 = vadd.f32 %v1090_v22, %v996_v49  ;;  %v1407_v58 = vpop.permute.xlu1 %1406  ;;  %v5894_v22 = vld [vmem:[#allocation68_spill] sm:$0xff] }
 0x1a9   : > { %v5883_v17 = vrot.slane %v3848_v31, %v3469_v60  ;;  %v5884_v37 = vrot.slane %v3848_v31, %v3471_v61  ;;  %v5885_v63 = vrot.slane %v3882_v25, %v3469_v60  ;;  %v5886_v23 = vrot.slane %v3882_v25, %v3471_v61  ;;  %2136 = vrot.lane.b32.xlu1 %v3403_v4, %s5914_s28 }
 0x1aa   : > { %vm1313_vm11 = vcmp.lt.s32.totalorder %v3473_v0, 79  ;;  %v4590_v13 = vsel %vm217_vm7, %v1382_v30, %v1384_v35  ;;  %v4594_v20 = vsel %vm217_vm7, %v1384_v35, %v1382_v30  ;;  %v1115_v31 = vadd.f32 %v1113_v18, %v1019_v36  ;;  %v5901_v35 = vld [vmem:[#allocation18_spill] sm:$0xff] }
 0x1ab   : > { %v1137_v57 = vmul.f32 %v5883_v17, %v1122_v45  ;;  %v1138_v1 = vmul.f32 %v5884_v37, %v1123_v12  ;;  %v1161_v8 = vmul.f32 %v5885_v63, %v1146_v52  ;;  %v1162_v14 = vmul.f32 %v5886_v23, %v1147_v26  ;;  %v5904_v63 = vld [vmem:[#allocation12_spill] sm:$0xff]  ;;  %2134 = vrot.lane.b32.xlu0 %v3407_v5, %s5914_s28 }
 0x1ac   : > { %v1116_v49 = vadd.f32 %v1114_v10, %v1020_v56  ;;  %v5888_v38 = vrot.slane %v3918_v27, %v3469_v60  ;;  %v5889_v41 = vrot.slane %v3918_v27, %v3471_v61  ;;  %v1194_v44 = vsel %vm1193_vm13, %v4205_v43, %v4191_v40  ;;  %v5897_v10 = vld [vmem:[#allocation70_spill] sm:$0xff] }
 0x1ad   : > { %v1195_v36 = vsel %vm1193_vm13, %v4191_v40, %v4205_v43  ;;  %v1218_v56 = vsel %vm1217_vm15, %v4243_v54, %v4238_v28  ;;  %v1219_v27 = vsel %vm1217_vm15, %v4238_v28, %v4243_v54  ;;  %v1139_v2 = vadd.f32 %v1137_v57, %v1043_v3  ;;  %v1405_v43 = vpop.permute.xlu0 %1404  ;;  %v5891_v3 = vld [vmem:[#allocation67_spill] sm:$0xff]  ;;  %v5903_v57 = vld [vmem:[#allocation21_spill] sm:$0xff]  ;;  %2159 = vrot.lane.b32.xlu1 %v3403_v4, %s5927_s29 }
 0x1ae   : > { %v1185_v25 = vmul.f32 %v5888_v38, %v1170_v15  ;;  %v1186_v32 = vmul.f32 %v5889_v41, %v1171_v11  ;;  %v1140_v48 = vadd.f32 %v1138_v1, %v1044_v33  ;;  %v1266_v29 = vsel %vm1265_vm10, %v4347_v62, %v4335_v19  ;;  %v1430_v15 = vpop.permute.xlu1 %1429  ;;  %v5900_v11 = vld [vmem:[#allocation43_spill] sm:$0xff] }
 0x1af   : > { %v1267_v40 = vsel %vm1265_vm10, %v4335_v19, %v4347_v62  ;;  %v4630_v6 = vadd.f32 %v1161_v8, %v1067_v21  ;;  %v4632_v34 = vadd.f32 %v1162_v14, %v1068_v39  ;;  %vm1337_vm7 = vcmp.lt.s32.totalorder %v3473_v0, 78  ;;  %2157 = vrot.lane.b32.xlu0 %v3407_v5, %s5927_s29 }
 0x1b0   : > { %v1408_v28 = vsel %vm240_vm1, %v1405_v43, %v1407_v58  ;;  %v1409_v54 = vsel %vm240_vm1, %v1407_v58, %v1405_v43  ;;  %v5892_v33 = vrot.slane %v5891_v3, %v3469_v60  ;;  %v5893_v62 = vrot.slane %v5891_v3, %v3471_v61 }
 0x1b1   : > { %v5895_v50 = vrot.slane %v5894_v22, %v3469_v60  ;;  %v5896_v12 = vrot.slane %v5894_v22, %v3471_v61  ;;  %v1187_v18 = vadd.f32 %v1185_v25, %v1091_v46  ;;  %v1188_v55 = vadd.f32 %v1186_v32, %v1092_v24  ;;  %v5902_v24 = vld [vmem:[#allocation20_spill] sm:$0xff]  ;;  %v1428_v30 = vpop.permute.xlu0 %1427  ;;  %2182 = vrot.lane.b32.xlu1 %v3403_v4, %s5934_s30 }
 0x1b2   : > { %v1209_v19 = vmul.f32 %v5892_v33, %v1194_v44  ;;  %v1210_v59 = vmul.f32 %v5893_v62, %v1195_v36  ;;  %v5898_v52 = vrot.slane %v5897_v10, %v3469_v60  ;;  %v5899_v21 = vrot.slane %v5897_v10, %v3471_v61  ;;  %v1453_v3 = vpop.permute.xlu1 %1452  ;;  %v5911_v33 = vld [vmem:[#allocation69_spill] sm:$0xff]  ;;  %v5918_v10 = vld [vmem:[#allocation15_spill] sm:$0xff] }
 0x1b3   : > { %v1233_v45 = vmul.f32 %v5895_v50, %v1218_v56  ;;  %v1234_v51 = vmul.f32 %v5896_v12, %v1219_v27  ;;  %v1242_v17 = vsel %vm1241_vm8, %v5901_v35, %v5900_v11  ;;  %v1243_v46 = vsel %vm1241_vm8, %v5900_v11, %v5901_v35  ;;  %v5921_v35 = vld [vmem:[#allocation40_spill] sm:$0xff]  ;;  %2180 = vrot.lane.b32.xlu0 %v3407_v5, %s5934_s30 }
 0x1b4   : > { %v1281_v26 = vmul.f32 %v5898_v52, %v1266_v29  ;;  %v1282_v39 = vmul.f32 %v5899_v21, %v1267_v40  ;;  %v1290_v37 = vsel %vm1289_vm14, %v5903_v57, %v5902_v24  ;;  %v1291_v1 = vsel %vm1289_vm14, %v5902_v24, %v5903_v57 }
 0x1b5   : > { %v5905_v8 = vrot.slane %v5904_v63, %v3469_v60  ;;  %v5906_v14 = vrot.slane %v5904_v63, %v3471_v61  ;;  %v4685_v25 = vsel %vm264_vm2, %v1428_v30, %v1430_v15  ;;  %v1432_v41 = vsel %vm264_vm2, %v1430_v15, %v1428_v30  ;;  %2205 = vrot.lane.b32.xlu1 %v3403_v4, %s5941_s3 }
 0x1b6   : > { %v1211_v32 = vadd.f32 %v1209_v19, %v1115_v31  ;;  %v1212_v44 = vadd.f32 %v1210_v59, %v1116_v49  ;;  %v1235_v36 = vadd.f32 %v1233_v45, %v1139_v2  ;;  %v1236_v56 = vadd.f32 %v1234_v51, %v1140_v48  ;;  %v1451_v59 = vpop.permute.xlu0 %1450  ;;  %v5915_v51 = vld [vmem:[#allocation13_spill] sm:$0xff]  ;;  %v1476_v24 = vpop.permute.xlu1 %1475 }
 0x1b7   : > { %v1377_v23 = vmul.f32 %v5905_v8, %v1362_v9  ;;  %v1378_v38 = vmul.f32 %v5906_v14, %v1363_v47  ;;  %v1283_v9 = vadd.f32 %v1281_v26, %v1187_v18  ;;  %v1284_v27 = vadd.f32 %v1282_v39, %v1188_v55  ;;  %v5908_v47 = vld [vmem:[#allocation11_spill] sm:$0xff]  ;;  %v5924_v8 = vld [vmem:[#allocation42_spill] sm:$0xff]  ;;  %2203 = vrot.lane.b32.xlu0 %v3407_v5, %s5941_s3  ;;  %s2535_s3 = scalar_lea.sflag [#allocation4], %s3106_s20 }
 0x1b8   : > { %v5909_v58 = vrot.slane %v5908_v47, %v3469_v60  ;;  %v5910_v40 = vrot.slane %v5908_v47, %v3471_v61  ;;  %v5912_v31 = vrot.slane %v5911_v33, %v3469_v60  ;;  %v5913_v2 = vrot.slane %v5911_v33, %v3471_v61 }
 0x1b9   : > { %v1314_v19 = vsel %vm1313_vm11, %v4450_v53, %v4447_v42  ;;  %v1315_v62 = vsel %vm1313_vm11, %v4447_v42, %v4450_v53  ;;  %v1379_v22 = vadd.f32 %v1377_v23, %v1283_v9  ;;  %v1380_v50 = vadd.f32 %v1378_v38, %v1284_v27  ;;  %v5928_v27 = vld [vmem:[#allocation16_spill] sm:$0xff]  ;;  %2228 = vrot.lane.b32.xlu1 %v3403_v4, %s5947_s4 }
 0x1ba   : > { %v1305_v29 = vmul.f32 %v5909_v58, %v1290_v37  ;;  %v1306_v43 = vmul.f32 %v5910_v40, %v1291_v1  ;;  %v1257_v49 = vmul.f32 %v5912_v31, %v1242_v17  ;;  %v1258_v48 = vmul.f32 %v5913_v2, %v1243_v46  ;;  %v1474_v63 = vpop.permute.xlu0 %1473  ;;  %v1499_v33 = vpop.permute.xlu1 %1498  ;;  %v5931_v31 = vld [vmem:[#allocation41_spill] sm:$0xff] }
 0x1bb   : > { %v1454_v45 = vsel %vm288_vm3, %v1451_v59, %v1453_v3  ;;  %v1455_v12 = vsel %vm288_vm3, %v1453_v3, %v1451_v59  ;;  %v5916_v18 = vrot.slane %v5915_v51, %v3469_v60  ;;  %v5917_v42 = vrot.slane %v5915_v51, %v3471_v61  ;;  %2226 = vrot.lane.b32.xlu0 %v3407_v5, %s5947_s4 }
 0x1bc   : > { %v5919_v52 = vrot.slane %v5918_v10, %v3469_v60  ;;  %v5920_v21 = vrot.slane %v5918_v10, %v3471_v61  ;;  %v1307_v15 = vadd.f32 %v1305_v29, %v1211_v32  ;;  %v1308_v11 = vadd.f32 %v1306_v43, %v1212_v44 }
 0x1bd   : > { %v1400_v55 = vmul.f32 %v5916_v18, %v4594_v20  ;;  %v1401_v53 = vmul.f32 %v5917_v42, %v4590_v13  ;;  %v5922_v20 = vrot.slane %v5921_v35, %v3469_v60  ;;  %v5923_v13 = vrot.slane %v5921_v35, %v3471_v61  ;;  %2251 = vrot.lane.b32.xlu1 %v3403_v4, %s5950_s5 }
 0x1be   : > { %v1469_v26 = vmul.f32 %v5919_v52, %v1455_v12  ;;  %v1470_v39 = vmul.f32 %v5920_v21, %v1454_v45  ;;  %v1338_v57 = vsel %vm1337_vm7, %v4500_v7, %v4482_v16  ;;  %v1339_v37 = vsel %vm1337_vm7, %v4482_v16, %v4500_v7  ;;  %v1497_v45 = vpop.permute.xlu0 %1496  ;;  %v1522_v21 = vpop.permute.xlu1 %1521 }
 0x1bf   : > { %v1329_v17 = vmul.f32 %v5922_v20, %v1314_v19  ;;  %v1330_v46 = vmul.f32 %v5923_v13, %v1315_v62  ;;  %v5925_v23 = vrot.slane %v5924_v8, %v3469_v60  ;;  %v5926_v38 = vrot.slane %v5924_v8, %v3471_v61  ;;  %2249 = vrot.lane.b32.xlu0 %v3407_v5, %s5950_s5 }
 0x1c0   : > { %v4749_v1 = vadd.f32 %v1469_v26, %v1379_v22  ;;  %v4751_v30 = vadd.f32 %v1470_v39, %v1380_v50  ;;  %v1477_v44 = vsel %vm312_vm4, %v1474_v63, %v1476_v24  ;;  %v1478_v9 = vsel %vm312_vm4, %v1476_v24, %v1474_v63  ;;  %v1549_v26 = vld [vmem:[#allocation2 + $0x70] ss:$8 sm:$0x3] }
 0x1c1   : > { %v1423_v14 = vmul.f32 %v5925_v23, %v1409_v54  ;;  %v1424_v32 = vmul.f32 %v5926_v38, %v1408_v28  ;;  %v1402_v16 = vadd.f32 %v1400_v55, %v1307_v15  ;;  %v1403_v7 = vadd.f32 %v1401_v53, %v1308_v11  ;;  %v5938_v55 = vld [vmem:[#allocation17_spill] sm:$0xff]  ;;  %v1572_v38 = vld [vmem:[#allocation2 + $0x71] ss:$8 sm:$0x3]  ;;  %2274 = vrot.lane.b32.xlu1 %v3403_v4, %s5953_s6 }
 0x1c2   : > { %v5929_v47 = vrot.slane %v5928_v27, %v3469_v60  ;;  %v5930_v54 = vrot.slane %v5928_v27, %v3471_v61  ;;  %v1259_v28 = vadd.f32 %v1257_v49, %v4630_v6  ;;  %v1260_v40 = vadd.f32 %v1258_v48, %v4632_v34  ;;  %v1520_v35 = vpop.permute.xlu0 %1519 }
 0x1c3   : > { %v1331_v43 = vadd.f32 %v1329_v17, %v1235_v36  ;;  %v1332_v3 = vadd.f32 %v1330_v46, %v1236_v56  ;;  %v5932_v2 = vrot.slane %v5931_v31, %v3469_v60  ;;  %v5933_v62 = vrot.slane %v5931_v31, %v3471_v61  ;;  %v5935_v36 = vld [vmem:[#allocation14_spill] sm:$0xff]  ;;  %2272 = vrot.lane.b32.xlu0 %v3407_v5, %s5953_s6 }
 0x1c4   : > { %v1492_v58 = vmul.f32 %v5929_v47, %v1478_v9  ;;  %v1493_v29 = vmul.f32 %v5930_v54, %v1477_v44  ;;  %v1500_v6 = vsel %vm336_vm5, %v1497_v45, %v1499_v33  ;;  %v1501_v34 = vsel %vm336_vm5, %v1499_v33, %v1497_v45 }
 0x1c5   : > { %v1353_v19 = vmul.f32 %v5932_v2, %v1338_v57  ;;  %v1354_v59 = vmul.f32 %v5933_v62, %v1339_v37  ;;  %v1425_v12 = vadd.f32 %v1423_v14, %v1331_v43  ;;  %v1426_v51 = vadd.f32 %v1424_v32, %v1332_v3  ;;  %v5942_v57 = vld [vmem:[#allocation19_spill] sm:$0xff]  ;;  %v1545_v14 = vpop.permute.xlu1 %1544  ;;  %2297 = vrot.lane.b32.xlu1 %v3403_v4, %s5956_s7 }
 0x1c6   : > { %v1494_v22 = vadd.f32 %v1492_v58, %v1402_v16  ;;  %v1495_v50 = vadd.f32 %v1493_v29, %v1403_v7  ;;  %v5936_v56 = vrot.slane %v5935_v36, %v3469_v60  ;;  %v5937_v48 = vrot.slane %v5935_v36, %v3471_v61  ;;  %v1543_v9 = vpop.permute.xlu0 %1542 }
 0x1c7   : > { %v5939_v42 = vrot.slane %v5938_v55, %v3469_v60  ;;  %v5940_v10 = vrot.slane %v5938_v55, %v3471_v61  ;;  %v1355_v39 = vadd.f32 %v1353_v19, %v1259_v28  ;;  %v1524_v20 = vsel %vm360_vm6, %v1522_v21, %v1520_v35  ;;  %v1595_v28 = vld [vmem:[#allocation2 + $0x72] ss:$8 sm:$0x3]  ;;  %2295 = vrot.lane.b32.xlu0 %v3407_v5, %s5956_s7 }
 0x1c8   : > { %v1446_v49 = vmul.f32 %v5936_v56, %v1432_v41  ;;  %v1447_v18 = vmul.f32 %v5937_v48, %v4685_v25  ;;  %v1356_v41 = vadd.f32 %v1354_v59, %v1260_v40  ;;  %v1523_v25 = vsel %vm360_vm6, %v1520_v35, %v1522_v21  ;;  %v1618_v59 = vld [vmem:[#allocation2 + $0x73] ss:$8 sm:$0x3]  ;;  %v1641_v48 = vld [vmem:[#allocation2 + $0x74] ss:$8 sm:$0x3] }
 0x1c9   : > { %v1515_v53 = vmul.f32 %v5939_v42, %v1501_v34  ;;  %v1516_v52 = vmul.f32 %v5940_v10, %v1500_v6  ;;  %v1554_v17 = vrot.slane %v1549_v26, %v3469_v60  ;;  %v1558_v13 = vrot.slane %v1549_v26, %v3471_v61  ;;  %v1568_v29 = vpop.permute.xlu1 %1567  ;;  %2320 = vrot.lane.b32.xlu1 %v3403_v4, %s5959_s18 }
 0x1ca   : > { %v1448_v46 = vadd.f32 %v1446_v49, %v1355_v39  ;;  %v1449_v24 = vadd.f32 %v1447_v18, %v1356_v41  ;;  %v5943_v37 = vrot.slane %v5942_v57, %v3469_v60  ;;  %v5944_v8 = vrot.slane %v5942_v57, %v3471_v61  ;;  %v1566_v3 = vpop.permute.xlu0 %1565 }
 0x1cb   : > { %v1517_v15 = vadd.f32 %v1515_v53, %v1425_v12  ;;  %v1518_v11 = vadd.f32 %v1516_v52, %v1426_v51  ;;  %vm5945_vm1 = vcmp.lt.s32.totalorder %v3473_v0, 35  ;;  %v1577_v58 = vrot.slane %v1572_v38, %v3469_v60  ;;  %2318 = vrot.lane.b32.xlu0 %v3407_v5, %s5959_s18 }
 0x1cc   : > { %v1538_v63 = vmul.f32 %v5943_v37, %v1524_v20  ;;  %v1539_v23 = vmul.f32 %v5944_v8, %v1523_v25  ;;  %v1546_v16 = vsel %vm5945_vm1, %v1543_v9, %v1545_v14  ;;  %vm5946_vm2 = vmmov %vm5945_vm1  ;;  %v1581_v54 = vrot.slane %v1572_v38, %v3471_v61 }
 0x1cd   : > { %v1547_v7 = vsel %vm5946_vm2, %v1545_v14, %v1543_v9  ;;  %v1562_v47 = vmul.f32 %v1558_v13, %v1546_v16  ;;  %vm5948_vm3 = vcmp.lt.s32.totalorder %v3473_v0, 34  ;;  %v1600_v62 = vrot.slane %v1595_v28, %v3469_v60  ;;  %2343 = vrot.lane.b32.xlu1 %v3403_v4, %s5962_s25 }
 0x1ce   : > { %v1540_v32 = vadd.f32 %v1538_v63, %v1448_v46  ;;  %v1541_v44 = vadd.f32 %v1539_v23, %v1449_v24  ;;  %v1561_v27 = vmul.f32 %v1554_v17, %v1547_v7  ;;  %v1569_v33 = vsel %vm5948_vm3, %v1566_v3, %v1568_v29  ;;  %vm5949_vm4 = vmmov %vm5948_vm3  ;;  %v1589_v51 = vpop.permute.xlu0 %1588  ;;  %v1687_v63 = vld [vmem:[#allocation2 + $0x76] ss:$8 sm:$0x3] }
 0x1cf   : > { %v1564_v43 = vadd.f32 %v1562_v47, %v4751_v30  ;;  %v1570_v31 = vsel %vm5949_vm4, %v1568_v29, %v1566_v3  ;;  %v1585_v19 = vmul.f32 %v1581_v54, %v1569_v33  ;;  %v1591_v30 = vpop.permute.xlu1 %1590  ;;  %vm5951_vm5 = vcmp.lt.s32.totalorder %v3473_v0, 33  ;;  %2341 = vrot.lane.b32.xlu0 %v3407_v5, %s5962_s25  ;;  %v1710_v47 = vld [vmem:[#allocation2 + $0x77] ss:$8 sm:$0x3] }
 0x1d0   : > { %v1563_v40 = vadd.f32 %v1561_v27, %v4749_v1  ;;  %v1584_v2 = vmul.f32 %v1577_v58, %v1570_v31  ;;  %v1604_v1 = vrot.slane %v1595_v28, %v3471_v61  ;;  %v1592_v6 = vsel %vm5951_vm5, %v1589_v51, %v1591_v30  ;;  %vm5952_vm6 = vmmov %vm5951_vm5 }
 0x1d1   : > { %v1587_v12 = vadd.f32 %v1585_v19, %v1495_v50  ;;  %v1593_v34 = vsel %vm5952_vm6, %v1591_v30, %v1589_v51  ;;  %v1623_v49 = vrot.slane %v1618_v59, %v3469_v60  ;;  %vm5954_vm1 = vcmp.lt.s32.totalorder %v3473_v0, 32  ;;  %2366 = vrot.lane.b32.xlu1 %v3403_v4, %s5965_s15  ;;  %v1733_v19 = vld [vmem:[#allocation2 + $0x80] ss:$8 sm:$0x3] }
 0x1d2   : > { %v1586_v45 = vadd.f32 %v1584_v2, %v1494_v22  ;;  %v1607_v36 = vmul.f32 %v1600_v62, %v1593_v34  ;;  %v1608_v56 = vmul.f32 %v1604_v1, %v1592_v6  ;;  %v1627_v22 = vrot.slane %v1618_v59, %v3471_v61  ;;  %v1612_v42 = vpop.permute.xlu0 %1611  ;;  %vm5955_vm2 = vmmov %vm5954_vm1 }
 0x1d3   : > { %v1614_v50 = vpop.permute.xlu1 %1613  ;;  %v1646_v21 = vrot.slane %v1641_v48, %v3469_v60  ;;  %v1650_v39 = vrot.slane %v1641_v48, %v3471_v61  ;;  %vm5957_vm3 = vcmp.lt.s32.totalorder %v3473_v0, 31  ;;  %vm5960_vm5 = vcmp.lt.s32.totalorder %v3473_v0, 30  ;;  %2364 = vrot.lane.b32.xlu0 %v3407_v5, %s5965_s15 }
 0x1d4   : > { %v1609_v18 = vadd.f32 %v1607_v36, %v1517_v15  ;;  %v1610_v55 = vadd.f32 %v1608_v56, %v1518_v11  ;;  %v1615_v53 = vsel %vm5954_vm1, %v1612_v42, %v1614_v50  ;;  %v1616_v10 = vsel %vm5955_vm2, %v1614_v50, %v1612_v42  ;;  %v1664_v15 = vld [vmem:[#allocation2 + $0x75] ss:$8 sm:$0x3]  ;;  %vm5958_vm4 = vmmov %vm5957_vm3  ;;  %v1756_v56 = vld [vmem:[#allocation2 + $0x81] ss:$8 sm:$0x3] }
 0x1d5   : > { %v1630_v52 = vmul.f32 %v1623_v49, %v1616_v10  ;;  %v1631_v26 = vmul.f32 %v1627_v22, %v1615_v53  ;;  %v1669_v24 = vrot.slane %v1664_v15, %v3469_v60  ;;  %v1673_v57 = vrot.slane %v1664_v15, %v3471_v61  ;;  %vm5961_vm6 = vmmov %vm5960_vm5  ;;  %2389 = vrot.lane.b32.xlu1 %v3403_v4, %s5968_s17 }
 0x1d6   : > { %v1635_v25 = vpop.permute.xlu0 %1634  ;;  %v1692_v16 = vrot.slane %v1687_v63, %v3469_v60  ;;  %v1696_v7 = vrot.slane %v1687_v63, %v3471_v61  ;;  %vm5963_vm1 = vcmp.lt.s32.totalorder %v3473_v0, 29  ;;  %v1715_v33 = vrot.slane %v1710_v47, %v3469_v60 }
 0x1d7   : > { %v1637_v41 = vpop.permute.xlu1 %1636  ;;  %v1632_v11 = vadd.f32 %v1630_v52, %v1540_v32  ;;  %v1633_v35 = vadd.f32 %v1631_v26, %v1541_v44  ;;  %vm5964_vm2 = vmmov %vm5963_vm1  ;;  %v1719_v31 = vrot.slane %v1710_v47, %v3471_v61  ;;  %2387 = vrot.lane.b32.xlu0 %v3407_v5, %s5968_s17  ;;  %v1738_v6 = vrot.slane %v1733_v19, %v3469_v60  ;;  %v1779_v26 = vld [vmem:[#allocation2 + $0x82] ss:$8 sm:$0x3] }
 0x1d8   : > { %v1638_v20 = vsel %vm5957_vm3, %v1635_v25, %v1637_v41  ;;  %v1639_v17 = vsel %vm5958_vm4, %v1637_v41, %v1635_v25  ;;  %vm5966_vm3 = vcmp.lt.s32.totalorder %v3473_v0, 19  ;;  %v1742_v34 = vrot.slane %v1733_v19, %v3471_v61 }
 0x1d9   : > { %v1653_v13 = vmul.f32 %v1646_v21, %v1639_v17  ;;  %v1654_v46 = vmul.f32 %v1650_v39, %v1638_v20  ;;  %vm5967_vm4 = vmmov %vm5966_vm3  ;;  %2412 = vrot.lane.b32.xlu1 %v3403_v4, %s5971_s22  ;;  %v1761_v53 = vrot.slane %v1756_v56, %v3469_v60  ;;  %v1765_v10 = vrot.slane %v1756_v56, %v3471_v61 }
 0x1da   : > { %v1658_v14 = vpop.permute.xlu0 %1657  ;;  %v1784_v20 = vrot.slane %v1779_v26, %v3469_v60  ;;  %v1788_v17 = vrot.slane %v1779_v26, %v3471_v61 }
 0x1db   : > { %v1660_v37 = vpop.permute.xlu1 %1659  ;;  %v1655_v8 = vadd.f32 %v1653_v13, %v1563_v40  ;;  %v1656_v23 = vadd.f32 %v1654_v46, %v1564_v43  ;;  %2410 = vrot.lane.b32.xlu0 %v3407_v5, %s5971_s22  ;;  %v1802_v46 = vld [vmem:[#allocation2 + $0x83] ss:$8 sm:$0x3] }
 0x1dc   : > { %v1661_v38 = vsel %vm5960_vm5, %v1658_v14, %v1660_v37  ;;  %v1662_v32 = vsel %vm5961_vm6, %v1660_v37, %v1658_v14  ;;  %vm5969_vm5 = vcmp.lt.s32.totalorder %v3473_v0, 18 }
 0x1dd   : > { %v1676_v44 = vmul.f32 %v1669_v24, %v1662_v32  ;;  %v1677_v9 = vmul.f32 %v1673_v57, %v1661_v38  ;;  %vm5970_vm6 = vmmov %vm5969_vm5  ;;  %2435 = vrot.lane.b32.xlu1 %v3403_v4, %s2947_s26  ;;  %v1807_v38 = vrot.slane %v1802_v46, %v3469_v60  ;;  %v1811_v32 = vrot.slane %v1802_v46, %v3471_v61 }
 0x1de   : > { %v1681_v29 = vpop.permute.xlu0 %1680 }
 0x1df   : > { %v1683_v27 = vpop.permute.xlu1 %1682  ;;  %v1678_v58 = vadd.f32 %v1676_v44, %v1586_v45  ;;  %v1679_v54 = vadd.f32 %v1677_v9, %v1587_v12  ;;  %2433 = vrot.lane.b32.xlu0 %v3407_v5, %s2947_s26  ;;  %v1825_v9 = vld [vmem:[#allocation2 + $0x84] ss:$8 sm:$0x3]  ;;  %s2650_s26 = sshll.u32 %s2987_s13, 7  ;;  %s2950_s13 = smov [#allocation7]  }
 0x1e0   : > { %v1684_v28 = vsel %vm5963_vm1, %v1681_v29, %v1683_v27  ;;  %v1685_v40 = vsel %vm5964_vm2, %v1683_v27, %v1681_v29  ;;  %vm5972_vm1 = vcmp.lt.s32.totalorder %v3473_v0, 17  ;;  %s5399_s30 = scalar_lea.hbm %s5445_s2, %s2650_s26 }
 0x1e1   : > { %v1699_v43 = vmul.f32 %v1692_v16, %v1685_v40  ;;  %v1700_v3 = vmul.f32 %v1696_v7, %v1684_v28  ;;  %vm5973_vm2 = vmmov %vm5972_vm1  ;;  %2458 = vrot.lane.b32.xlu1 %v3403_v4, %s2948_s24  ;;  %v1830_v28 = vrot.slane %v1825_v9, %v3469_v60  ;;  %v1834_v40 = vrot.slane %v1825_v9, %v3471_v61 }
 0x1e2   : > { %v1704_v30 = vpop.permute.xlu0 %1703 }
 0x1e3   : > { %v1706_v2 = vpop.permute.xlu1 %1705  ;;  %v1701_v62 = vadd.f32 %v1699_v43, %v1609_v18  ;;  %v1702_v1 = vadd.f32 %v1700_v3, %v1610_v55  ;;  %2456 = vrot.lane.b32.xlu0 %v3407_v5, %s2948_s24  ;;  %v1848_v3 = vld [vmem:[#allocation2 + $0x85] ss:$8 sm:$0x3]  ;;  %s6041_s24 = sshll.u32 %s3106_s20, 3 }
 0x1e4   : > { %v1707_v59 = vsel %vm5966_vm3, %v1704_v30, %v1706_v2  ;;  %v1708_v45 = vsel %vm5967_vm4, %v1706_v2, %v1704_v30  ;;  %vm5974_vm3 = vcmp.lt.s32.totalorder %v3473_v0, 16 }
 0x1e5   : > { %v1722_v12 = vmul.f32 %v1715_v33, %v1708_v45  ;;  %v1723_v51 = vmul.f32 %v1719_v31, %v1707_v59  ;;  %vm5975_vm4 = vmmov %vm5974_vm3  ;;  %2481 = vrot.lane.b32.xlu1 %v3403_v4, %s2949_s19  ;;  %v1853_v59 = vrot.slane %v1848_v3, %v3469_v60  ;;  %v1857_v45 = vrot.slane %v1848_v3, %v3471_v61 }
 0x1e6   : > { %v1727_v50 = vpop.permute.xlu0 %1726 }
 0x1e7   : > { %v1729_v36 = vpop.permute.xlu1 %1728  ;;  %v1724_v49 = vadd.f32 %v1722_v12, %v1632_v11  ;;  %v1725_v22 = vadd.f32 %v1723_v51, %v1633_v35  ;;  %2479 = vrot.lane.b32.xlu0 %v3407_v5, %s2949_s19  ;;  %v1871_v51 = vld [vmem:[#allocation2 + $0x86] ss:$8 sm:$0x3]  ;;  %s174_s19 = scalar_lea.vmem [#allocation7], %s6041_s24 }
 0x1e8   : > { %v1730_v48 = vsel %vm5969_vm5, %v1727_v50, %v1729_v36  ;;  %v1731_v18 = vsel %vm5970_vm6, %v1729_v36, %v1727_v50  ;;  %vm5976_vm5 = vcmp.lt.s32.totalorder %v3473_v0, 15  ;;  %s2549_s23 = sshll.u32 %s174_s19, 4  ;;  %s5401_s23 = int_to_ptr.vmem [resolvable:$true] %s2549_s23 }
 0x1e9   : > { %v1745_v55 = vmul.f32 %v1738_v6, %v1731_v18  ;;  %v1746_v42 = vmul.f32 %v1742_v34, %v1730_v48  ;;  %vm5977_vm6 = vmmov %vm5976_vm5  ;;  %v1876_v48 = vrot.slane %v1871_v51, %v3469_v60  ;;  %v1880_v18 = vrot.slane %v1871_v51, %v3471_v61  ;;  %s2826_s4 = scalar_lea.vmem %s5401_s23, 128 }
 0x1ea   : > { %v1750_v41 = vpop.permute.xlu0 %1749  ;;  %p2827_p4 = scmp.ne.s32.totalorder %s5401_s23, %s2826_s4 }
 0x1eb   : > { %v1752_v52 = vpop.permute.xlu1 %1751  ;;  %v1747_v21 = vadd.f32 %v1745_v55, %v1655_v8  ;;  %v1748_v39 = vadd.f32 %v1746_v42, %v1656_v23  ;;  %v1894_v42 = vld [vmem:[#allocation2 + $0x87] ss:$8 sm:$0x3] }
 0x1ec   : > { %v1753_v15 = vsel %vm5972_vm1, %v1750_v41, %v1752_v52  ;;  %v1754_v11 = vsel %vm5973_vm2, %v1752_v52, %v1750_v41  ;;  %vm5978_vm1 = vcmp.lt.s32.totalorder %v3473_v0, 14  ;;  %p2828_p6 = pnand %p2827_p4, %p3057_p12 }
 0x1ed   : > { %v1768_v35 = vmul.f32 %v1761_v53, %v1754_v11  ;;  %v1769_v25 = vmul.f32 %v1765_v10, %v1753_v15  ;;  %vm5979_vm2 = vmmov %vm5978_vm1  ;;  %v1899_v15 = vrot.slane %v1894_v42, %v3469_v60  ;;  %v1903_v11 = vrot.slane %v1894_v42, %v3471_v61 }
 0x1ee   : > { %v1773_v37 = vpop.permute.xlu0 %1772  ;;  %p2829_p8 = pneg %p2828_p6 }
 0x1ef   : > { %v1775_v13 = vpop.permute.xlu1 %1774  ;;  %v1770_v24 = vadd.f32 %v1768_v35, %v1678_v58  ;;  %v1771_v57 = vadd.f32 %v1769_v25, %v1679_v54  ;;  %v1917_v25 = vld [vmem:[#allocation2 + $0x90] ss:$8 sm:$0x3] }
 0x1f0   : > { %v1776_v63 = vsel %vm5974_vm3, %v1773_v37, %v1775_v13  ;;  %v1777_v8 = vsel %vm5975_vm4, %v1775_v13, %v1773_v37  ;;  %vm5980_vm3 = vcmp.lt.s32.totalorder %v3473_v0, 13 }
 0x1f1   : > { %v1791_v23 = vmul.f32 %v1784_v20, %v1777_v8  ;;  %v1792_v14 = vmul.f32 %v1788_v17, %v1776_v63  ;;  %vm5981_vm4 = vmmov %vm5980_vm3  ;;  %v1922_v63 = vrot.slane %v1917_v25, %v3469_v60  ;;  %v1926_v8 = vrot.slane %v1917_v25, %v3471_v61 }
 0x1f2   : > { %v1796_v27 = vpop.permute.xlu0 %1795 }
 0x1f3   : > { %v1798_v44 = vpop.permute.xlu1 %1797  ;;  %v1793_v16 = vadd.f32 %v1791_v23, %v1701_v62  ;;  %v1794_v7 = vadd.f32 %v1792_v14, %v1702_v1  ;;  %v1957_v14 = vld [vmem:[#allocation2 + $0x92] ss:$8 sm:$0x3] }
 0x1f4   : > { %v1799_v47 = vsel %vm5976_vm5, %v1796_v27, %v1798_v44  ;;  %v1800_v58 = vsel %vm5977_vm6, %v1798_v44, %v1796_v27  ;;  %vm5982_vm5 = vcmp.lt.s32.totalorder %v3473_v0, 3 }
 0x1f5   : > { %v1814_v54 = vmul.f32 %v1807_v38, %v1800_v58  ;;  %v1815_v29 = vmul.f32 %v1811_v32, %v1799_v47  ;;  %vm5983_vm6 = vmmov %vm5982_vm5  ;;  %v1962_v47 = vrot.slane %v1957_v14, %v3469_v60  ;;  %v1966_v58 = vrot.slane %v1957_v14, %v3471_v61 }
 0x1f6   : > { %v1819_v2 = vpop.permute.xlu0 %1818 }
 0x1f7   : > { %v1821_v43 = vpop.permute.xlu1 %1820  ;;  %v1816_v33 = vadd.f32 %v1814_v54, %v1724_v49  ;;  %v1817_v31 = vadd.f32 %v1815_v29, %v1725_v22  ;;  %v1980_v29 = vld [vmem:[#allocation2 + $0x93] ss:$8 sm:$0x3] }
 0x1f8   : > { %v1822_v19 = vsel %vm5978_vm1, %v1819_v2, %v1821_v43  ;;  %v1823_v62 = vsel %vm5979_vm2, %v1821_v43, %v1819_v2  ;;  %vm5984_vm1 = vcmp.lt.s32.totalorder %v3473_v0, 2 }
 0x1f9   : > { %v1837_v1 = vmul.f32 %v1830_v28, %v1823_v62  ;;  %v1838_v30 = vmul.f32 %v1834_v40, %v1822_v19  ;;  %vm5985_vm2 = vmmov %vm5984_vm1  ;;  %v1985_v19 = vrot.slane %v1980_v29, %v3469_v60  ;;  %v1989_v62 = vrot.slane %v1980_v29, %v3471_v61 }
 0x1fa   : > { %v1842_v36 = vpop.permute.xlu0 %1841 }
 0x1fb   : > { %v1844_v12 = vpop.permute.xlu1 %1843  ;;  %v1839_v6 = vadd.f32 %v1837_v1, %v1747_v21  ;;  %v1840_v34 = vadd.f32 %v1838_v30, %v1748_v39  ;;  %v1934_v1 = vld [vmem:[#allocation2 + $0x91] ss:$8 sm:$0x3] }
 0x1fc   : > { %v1845_v56 = vsel %vm5980_vm3, %v1842_v36, %v1844_v12  ;;  %v1846_v49 = vsel %vm5981_vm4, %v1844_v12, %v1842_v36  ;;  %vm5986_vm3 = vcmp.lt.s32.totalorder %v3473_v0, 1  ;;  %v1939_v36 = vrot.slane %v1934_v1, %v3469_v60 }
 0x1fd   : > { %v1860_v22 = vmul.f32 %v1853_v59, %v1846_v49  ;;  %v1861_v50 = vmul.f32 %v1857_v45, %v1845_v56  ;;  %vm5987_vm4 = vmmov %vm5986_vm3  ;;  %v2003_v59 = vld [vmem:[#allocation2 + $0x94] ss:$8 sm:$0x3]  ;;  %v1943_v56 = vrot.slane %v1934_v1, %v3471_v61 }
 0x1fe   : > { %v1865_v52 = vpop.permute.xlu0 %1864 }
 0x1ff   : > { %v1867_v55 = vpop.permute.xlu1 %1866  ;;  %v4952_v53 = vadd.f32 %v1860_v22, %v1770_v24  ;;  %v4954_v10 = vadd.f32 %v1861_v50, %v1771_v57  ;;  %v2008_v50 = vrot.slane %v2003_v59, %v3469_v60 }
 0x200   : > { %v1868_v26 = vsel %vm5982_vm5, %v1865_v52, %v1867_v55  ;;  %v1869_v21 = vsel %vm5983_vm6, %v1867_v55, %v1865_v52  ;;  %vm5988_vm5 = vcmp.lt.s32.totalorder %v3473_v0, 127  ;;  %v2026_v55 = vld [vmem:[#allocation2 + $0x95] ss:$8 sm:$0x3] }
 0x201   : > { %v1883_v39 = vmul.f32 %v1876_v48, %v1869_v21  ;;  %v1884_v41 = vmul.f32 %v1880_v18, %v1868_v26  ;;  %vm5989_vm6 = vmmov %vm5988_vm5  ;;  %v2012_v48 = vrot.slane %v2003_v59, %v3471_v61  ;;  %v2031_v25 = vrot.slane %v2026_v55, %v3469_v60 }
 0x202   : > { %v1888_v13 = vpop.permute.xlu0 %1887 }
 0x203   : > { %v1890_v35 = vpop.permute.xlu1 %1889  ;;  %v1885_v20 = vadd.f32 %v1883_v39, %v1793_v16  ;;  %v1886_v17 = vadd.f32 %v1884_v41, %v1794_v7  ;;  %v1946_v41 = vmul.f32 %v1939_v36, %v3407_v5 }
 0x204   : > { %v1891_v46 = vsel %vm5984_vm1, %v1888_v13, %v1890_v35  ;;  %v1892_v24 = vsel %vm5985_vm2, %v1890_v35, %v1888_v13  ;;  %vm5990_vm1 = vcmp.lt.s32.totalorder %v3473_v0, 126 }
 0x205   : > { %v1906_v57 = vmul.f32 %v1899_v15, %v1892_v24  ;;  %v1907_v37 = vmul.f32 %v1903_v11, %v1891_v46  ;;  %vm5991_vm2 = vmmov %vm5990_vm1  ;;  %v1947_v15 = vmul.f32 %v1943_v56, %v3403_v4 }
 0x206   : > { %v1911_v44 = vpop.permute.xlu0 %1910 }
 0x207   : > { %v1913_v23 = vpop.permute.xlu1 %1912  ;;  %v1908_v38 = vadd.f32 %v1906_v57, %v1816_v33  ;;  %v1909_v32 = vadd.f32 %v1907_v37, %v1817_v31 }
 0x208   : > { %v1914_v9 = vsel %vm5986_vm3, %v1911_v44, %v1913_v23  ;;  %v1915_v16 = vsel %vm5987_vm4, %v1913_v23, %v1911_v44  ;;  %vm5992_vm3 = vcmp.lt.s32.totalorder %v3473_v0, 125  ;;  %v1949_v23 = vadd.f32 %v1947_v15, %v4954_v10  ;;  %v2072_v44 = vld [vmem:[#allocation2 + $0x97] ss:$8 sm:$0x3] }
 0x209   : > { %v1929_v7 = vmul.f32 %v1922_v63, %v1915_v16  ;;  %v1930_v27 = vmul.f32 %v1926_v8, %v1914_v9  ;;  %vm5993_vm4 = vmmov %vm5992_vm3  ;;  %v1948_v8 = vadd.f32 %v1946_v41, %v4952_v53  ;;  %v2077_v53 = vrot.slane %v2072_v44, %v3469_v60  ;;  %v5070_v41 = vld [vmem:[#allocation2 + $0xa3] ss:$8 sm:$0x3]  ;;  %v5072_v15 = vld [vmem:[#allocation2 + $0xa4] ss:$8 sm:$0x3] }
 0x20a   : > { %v1951_v43 = vpop.permute.xlu0 %1950  ;;  %v2081_v10 = vrot.slane %v2072_v44, %v3471_v61 }
 0x20b   : > { %v1953_v54 = vpop.permute.xlu1 %1952  ;;  %v1931_v28 = vadd.f32 %v1929_v7, %v1839_v6  ;;  %v1932_v40 = vadd.f32 %v1930_v27, %v1840_v34 }
 0x20c   : > { %v1954_v3 = vsel %vm5988_vm5, %v1951_v43, %v1953_v54  ;;  %v1955_v33 = vsel %vm5989_vm6, %v1953_v54, %v1951_v43  ;;  %vm5994_vm5 = vcmp.lt.s32.totalorder %v3473_v0, 115 }
 0x20d   : > { %v1969_v31 = vmul.f32 %v1962_v47, %v1954_v3  ;;  %v1970_v2 = vmul.f32 %v1966_v58, %v1955_v33  ;;  %vm5995_vm6 = vmmov %vm5994_vm5 }
 0x20e   : > { %v1974_v51 = vpop.permute.xlu0 %1973 }
 0x20f   : > { %v1976_v30 = vpop.permute.xlu1 %1975  ;;  %v1971_v45 = vadd.f32 %v1969_v31, %v1885_v20  ;;  %v1972_v12 = vadd.f32 %v1970_v2, %v1886_v17  ;;  %v2035_v20 = vrot.slane %v2026_v55, %v3471_v61  ;;  %v2049_v17 = vld [vmem:[#allocation2 + $0x96] ss:$8 sm:$0x3] }
 0x210   : > { %v1977_v6 = vsel %vm5990_vm1, %v1974_v51, %v1976_v30  ;;  %v1978_v34 = vsel %vm5991_vm2, %v1976_v30, %v1974_v51  ;;  %v2054_v4 = vrot.slane %v2049_v17, %v3469_v60  ;;  %v2058_v63 = vrot.slane %v2049_v17, %v3471_v61 }
 0x211   : > { %v1992_v49 = vmul.f32 %v1985_v19, %v1977_v6  ;;  %v1993_v22 = vmul.f32 %v1989_v62, %v1978_v34  ;;  %vm5996_vm1 = vcmp.lt.s32.totalorder %v3473_v0, 114 }
 0x212   : > { %v1997_v26 = vpop.permute.xlu0 %1996  ;;  %vm5997_vm2 = vmmov %vm5996_vm1 }
 0x213   : > { %v1999_v18 = vpop.permute.xlu1 %1998  ;;  %v1994_v42 = vadd.f32 %v1992_v49, %v1908_v38  ;;  %v1995_v52 = vadd.f32 %v1993_v22, %v1909_v32 }
 0x214   : > { %v2000_v21 = vsel %vm5992_vm3, %v1997_v26, %v1999_v18  ;;  %v2001_v39 = vsel %vm5993_vm4, %v1999_v18, %v1997_v26  ;;  %vm5998_vm3 = vcmp.lt.s32.totalorder %v3473_v0, 113  ;;  %v5064_v26 = vld [vmem:[#allocation2 + $0xa1] ss:$8 sm:$0x3] }
 0x215   : > { %v2015_v11 = vmul.f32 %v2008_v50, %v2000_v21  ;;  %v2016_v35 = vmul.f32 %v2012_v48, %v2001_v39  ;;  %vm5999_vm4 = vmmov %vm5998_vm3  ;;  %v5068_v39 = vld [vmem:[#allocation2 + $0xa2] ss:$8 sm:$0x3]  ;;  %v2127_v17 = vrot.slane %v5064_v26, %v3471_v61 }
 0x216   : > { %v2020_v57 = vpop.permute.xlu0 %2019 }
 0x217   : > { %v2022_v13 = vpop.permute.xlu1 %2021  ;;  %v4996_v46 = vadd.f32 %v2015_v11, %v1931_v28  ;;  %v4998_v24 = vadd.f32 %v2016_v35, %v1932_v40  ;;  %v5074_v11 = vld [vmem:[#allocation2 + $0xa5] ss:$8 sm:$0x3] }
 0x218   : > { %v2023_v37 = vsel %vm5994_vm5, %v2020_v57, %v2022_v13  ;;  %v2024_v5 = vsel %vm5995_vm6, %v2022_v13, %v2020_v57  ;;  %v5082_v13 = vld [vmem:[#allocation2 + $0xa6] ss:$8 sm:$0x3]  ;;  %v5084_v57 = vld [vmem:[#allocation2 + $0xa7] ss:$8 sm:$0x3] }
 0x219   : > { %v2038_v14 = vmul.f32 %v2031_v25, %v2023_v37  ;;  %v2039_v38 = vmul.f32 %v2035_v20, %v2024_v5  ;;  %v2123_v20 = vrot.slane %v5064_v26, %v3469_v60  ;;  %v2146_v5 = vrot.slane %v5068_v39, %v3469_v60  ;;  %v5134_v26 = vld [vmem:[#allocation2 + $0xb5] ss:$8 sm:$0x3] }
 0x21a   : > { %v2043_v7 = vpop.permute.xlu0 %2042  ;;  %vm6000_vm5 = vcmp.lt.s32.totalorder %v3473_v0, 112 }
 0x21b   : > { %v2045_v32 = vpop.permute.xlu1 %2044  ;;  %v5008_v9 = vadd.f32 %v2038_v14, %v1948_v8  ;;  %v5010_v16 = vadd.f32 %v2039_v38, %v1949_v23  ;;  %v2173_v8 = vrot.slane %v5070_v41, %v3471_v61  ;;  %v5096_v23 = vld [vmem:[#allocation2 + $0xb0] ss:$8 sm:$0x3]  ;;  %v5098_v14 = vld [vmem:[#allocation2 + $0xb1] ss:$8 sm:$0x3]  ;;  %vm6001_vm6 = vmmov %vm6000_vm5 }
 0x21c   : > { %v2046_v27 = vsel %vm5996_vm1, %v2043_v7, %v2045_v32  ;;  %v2047_v47 = vsel %vm5997_vm2, %v2045_v32, %v2043_v7  ;;  %vm6002_vm1 = vcmp.lt.s32.totalorder %v3473_v0, 111 }
 0x21d   : > { %v2061_v58 = vmul.f32 %v2054_v4, %v2046_v27  ;;  %v2062_v54 = vmul.f32 %v2058_v63, %v2047_v47  ;;  %v2150_v4 = vrot.slane %v5068_v39, %v3471_v61  ;;  %v2169_v63 = vrot.slane %v5070_v41, %v3469_v60  ;;  %v5110_v47 = vld [vmem:[#allocation2 + $0xb2] ss:$8 sm:$0x3]  ;;  %vm6003_vm2 = vmmov %vm6002_vm1 }
 0x21e   : > { %v2066_v43 = vpop.permute.xlu0 %2065 }
 0x21f   : > { %v2068_v29 = vpop.permute.xlu1 %2067  ;;  %v5018_v28 = vadd.f32 %v2061_v58, %v1971_v45  ;;  %v5020_v40 = vadd.f32 %v2062_v54, %v1972_v12  ;;  %v5112_v58 = vld [vmem:[#allocation2 + $0xb3] ss:$8 sm:$0x3] }
 0x220   : > { %v2069_v3 = vsel %vm5998_vm3, %v2066_v43, %v2068_v29  ;;  %v2070_v33 = vsel %vm5999_vm4, %v2068_v29, %v2066_v43  ;;  %v5122_v43 = vld [vmem:[#allocation2 + $0xb4] ss:$8 sm:$0x3]  ;;  %v5146_v29 = vld [vmem:[#allocation2 + $0xb6] ss:$8 sm:$0x3] }
 0x221   : > { %v2084_v31 = vmul.f32 %v2077_v53, %v2069_v3  ;;  %v2085_v2 = vmul.f32 %v2081_v10, %v2070_v33  ;;  %vm6004_vm3 = vcmp.lt.s32.totalorder %v3473_v0, 110 }
 0x222   : > { %v5032_v30 = vpop.permute.xlu0 %2088  ;;  %vm6005_vm4 = vmmov %vm6004_vm3 }
 0x223   : > { %v5026_v19 = vpop.permute.xlu1 %2090  ;;  %v5028_v62 = vadd.f32 %v2084_v31, %v1994_v42  ;;  %v5030_v1 = vadd.f32 %v2085_v2, %v1995_v52  ;;  %v2095_v52 = vld [vmem:[#allocation2 + $0xa0] ss:$8 sm:$0x3]  ;;  %v5148_v2 = vld [vmem:[#allocation2 + $0xb7] ss:$8 sm:$0x3] }
 0x224   : > { %v2100_v35 = vrot.slane %v2095_v52, %v3469_v60  ;;  %v2104_v25 = vrot.slane %v2095_v52, %v3471_v61  ;;  %v2092_v39 = vsel %vm6000_vm5, %v5032_v30, %v5026_v19  ;;  %v2093_v41 = vsel %vm6001_vm6, %v5026_v19, %v5032_v30 }
 0x225   : > { %vm6006_vm5 = vcmp.lt.s32.totalorder %v3473_v0, 109 }
 0x226   : > { %v5036_v45 = vpop.permute.xlu0 %2111  ;;  %v2107_v54 = vmul.f32 %v2100_v35, %v2092_v39  ;;  %v2108_v44 = vmul.f32 %v2104_v25, %v2093_v41  ;;  %vm6007_vm6 = vmmov %vm6006_vm5 }
 0x227   : > { %v5034_v59 = vpop.permute.xlu1 %2113 }
 0x228   : > { %v2115_v10 = vsel %vm6002_vm1, %v5036_v45, %v5034_v59  ;;  %v2116_v53 = vsel %vm6003_vm2, %v5034_v59, %v5036_v45  ;;  %v5182_v59 = vld [vmem:[#allocation2 + $0xc0] ss:$8 sm:$0x3]  ;;  %v5184_v45 = vld [vmem:[#allocation2 + $0xc1] ss:$8 sm:$0x3] }
 0x229   : > { %v2130_v31 = vmul.f32 %v2123_v20, %v2115_v10  ;;  %v2131_v32 = vmul.f32 %v2127_v17, %v2116_v53  ;;  %v2468_v25 = vrot.slane %v5182_v59, %v3469_v60  ;;  %v2472_v39 = vrot.slane %v5182_v59, %v3471_v61 }
 0x22a   : > { %v5040_v51 = vpop.permute.xlu0 %2134  ;;  %vm6008_vm1 = vcmp.lt.s32.totalorder %v3473_v0, 99 }
 0x22b   : > { %v5038_v12 = vpop.permute.xlu1 %2136  ;;  %vm6009_vm2 = vmmov %vm6008_vm1 }
 0x22c   : > { %v2138_v19 = vsel %vm6004_vm3, %v5040_v51, %v5038_v12  ;;  %v2139_v33 = vsel %vm6005_vm4, %v5038_v12, %v5040_v51  ;;  %v2491_v12 = vrot.slane %v5184_v45, %v3469_v60  ;;  %vm6010_vm3 = vcmp.lt.s32.totalorder %v3473_v0, 98 }
 0x22d   : > { %v2153_v20 = vmul.f32 %v2146_v5, %v2138_v19  ;;  %v2154_v17 = vmul.f32 %v2150_v4, %v2139_v33  ;;  %vm6011_vm4 = vmmov %vm6010_vm3  ;;  %v2109_v19 = vadd.f32 %v2107_v54, %v4996_v46  ;;  %v2110_v51 = vadd.f32 %v2108_v44, %v4998_v24 }
 0x22e   : > { %v5044_v34 = vpop.permute.xlu0 %2157  ;;  %v6016_v24 = vrot.slane %v5074_v11, %v3469_v60 }
 0x22f   : > { %v5042_v6 = vpop.permute.xlu1 %2159 }
 0x230   : > { %v2161_v7 = vsel %vm6006_vm5, %v5044_v34, %v5042_v6  ;;  %v2162_v35 = vsel %vm6007_vm6, %v5042_v6, %v5044_v34  ;;  %vm6014_vm5 = vcmp.lt.s32.totalorder %v3473_v0, 97 }
 0x231   : > { %v2176_v10 = vmul.f32 %v2169_v63, %v2161_v7  ;;  %v2177_v41 = vmul.f32 %v2173_v8, %v2162_v35  ;;  %v6012_v63 = vrot.slane %v5072_v15, %v3469_v60  ;;  %v6013_v7 = vrot.slane %v5072_v15, %v3471_v61  ;;  %vm6015_vm6 = vmmov %vm6014_vm5 }
 0x232   : > { %v5048_v56 = vpop.permute.xlu0 %2180 }
 0x233   : > { %v5046_v36 = vpop.permute.xlu1 %2182  ;;  %v2178_v54 = vadd.f32 %v2176_v10, %v5028_v62  ;;  %v6020_v62 = vrot.slane %v5084_v57, %v3469_v60 }
 0x234   : > { %v2184_v53 = vsel %vm6008_vm1, %v5048_v56, %v5046_v36  ;;  %v2185_v6 = vsel %vm6009_vm2, %v5046_v36, %v5048_v56  ;;  %v2132_v36 = vadd.f32 %v2130_v31, %v5008_v9  ;;  %v2133_v56 = vadd.f32 %v2131_v32, %v5010_v16 }
 0x235   : > { %v2199_v8 = vmul.f32 %v6012_v63, %v2184_v53  ;;  %v2200_v35 = vmul.f32 %v6013_v7, %v2185_v6  ;;  %v6017_v16 = vrot.slane %v5074_v11, %v3471_v61  ;;  %v2179_v11 = vadd.f32 %v2177_v41, %v5030_v1 }
 0x236   : > { %v5052_v22 = vpop.permute.xlu0 %2203  ;;  %v6018_v53 = vrot.slane %v5082_v13, %v3469_v60 }
 0x237   : > { %v5050_v49 = vpop.permute.xlu1 %2205  ;;  %v2202_v10 = vadd.f32 %v2200_v35, %v2110_v51 }
 0x238   : > { %v2207_v5 = vsel %vm6010_vm3, %v5052_v22, %v5050_v49  ;;  %v2208_v4 = vsel %vm6011_vm4, %v5050_v49, %v5052_v22 }
 0x239   : > { %v2222_v9 = vmul.f32 %v6016_v24, %v2207_v5  ;;  %v2223_v22 = vmul.f32 %v6017_v16, %v2208_v4  ;;  %v6019_v5 = vrot.slane %v5082_v13, %v3471_v61 }
 0x23a   : > { %v5056_v48 = vpop.permute.xlu0 %2226 }
 0x23b   : > { %v5054_v50 = vpop.permute.xlu1 %2228  ;;  %v2224_v41 = vadd.f32 %v2222_v9, %v2132_v36  ;;  %v2225_v63 = vadd.f32 %v2223_v22, %v2133_v56  ;;  %v6025_v56 = vrot.slane %v5112_v58, %v3471_v61  ;;  %v6026_v9 = vrot.slane %v5096_v23, %v3469_v60 }
 0x23c   : > { %v2230_v49 = vsel %vm6014_vm5, %v5056_v48, %v5054_v50  ;;  %v2231_v46 = vsel %vm6015_vm6, %v5054_v50, %v5056_v48  ;;  %v2155_v50 = vadd.f32 %v2153_v20, %v5018_v28  ;;  %v2156_v48 = vadd.f32 %v2154_v17, %v5020_v40 }
 0x23d   : > { %v2245_v6 = vmul.f32 %v6018_v53, %v2230_v49  ;;  %v2246_v4 = vmul.f32 %v6019_v5, %v2231_v46  ;;  %v2201_v17 = vadd.f32 %v2199_v8, %v2109_v19  ;;  %v6024_v19 = vrot.slane %v5112_v58, %v3469_v60 }
 0x23e   : > { %v5060_v55 = vpop.permute.xlu0 %2249  ;;  %v6027_v22 = vrot.slane %v5096_v23, %v3471_v61  ;;  %v6029_v23 = vrot.slane %v5146_v29, %v3471_v61 }
 0x23f   : > { %v5058_v18 = vpop.permute.xlu1 %2251  ;;  %v2247_v35 = vadd.f32 %v2245_v6, %v2155_v50  ;;  %v2248_v46 = vadd.f32 %v2246_v4, %v2156_v48 }
 0x240   : > { %v2253_v15 = vsel %vm1121_vm9, %v5060_v55, %v5058_v18  ;;  %v2254_v32 = vsel %vm1121_vm9, %v5058_v18, %v5060_v55  ;;  %v6021_v18 = vrot.slane %v5084_v57, %v3471_v61 }
 0x241   : > { %v2268_v1 = vmul.f32 %v6020_v62, %v2253_v15 }
 0x242   : > { %v5066_v21 = vpop.permute.xlu0 %2272  ;;  %v2269_v55 = vmul.f32 %v6021_v18, %v2254_v32  ;;  %v6031_v18 = vrot.slane %v5148_v2, %v3471_v61 }
 0x243   : > { %v5062_v42 = vpop.permute.xlu1 %2274  ;;  %v2270_v24 = vadd.f32 %v2268_v1, %v2178_v54 }
 0x244   : > { %v2277_v57 = vsel %vm1145_vm0, %v5062_v42, %v5066_v21 }
 0x245   : > { %v2292_v15 = vmul.f32 %v6027_v22, %v2277_v57 }
 0x246   : > { %v5100_v38 = vpop.permute.xlu0 %2295 }
 0x247   : > { %v5086_v37 = vpop.permute.xlu1 %2297 }
 0x248   : > { %v2299_v58 = vsel %vm1169_vm12, %v5100_v38, %v5086_v37  ;;  %v2300_v32 = vsel %vm1169_vm12, %v5086_v37, %v5100_v38 }
 0x24a   : > { %v5140_v3 = vpop.permute.xlu0 %2318 }
 0x24b   : > { %v5132_v52 = vpop.permute.xlu1 %2320 }
 0x24c   : > { %v2322_v28 = vsel %vm1193_vm13, %v5140_v3, %v5132_v52  ;;  %v2323_v40 = vsel %vm1193_vm13, %v5132_v52, %v5140_v3  ;;  %v2276_v3 = vsel %vm1145_vm0, %v5066_v21, %v5062_v42  ;;  %v6022_v52 = vrot.slane %v5110_v47, %v3469_v60 }
 0x24d   : > { %v2291_v16 = vmul.f32 %v6026_v9, %v2276_v3 }
 0x24e   : > { %v2342_v27 = vpop.permute.xlu0 %2341  ;;  %v2337_v49 = vmul.f32 %v6022_v52, %v2322_v28 }
 0x24f   : > { %v2344_v30 = vpop.permute.xlu1 %2343 }
 0x250   : > { %v2345_v13 = vsel %vm1217_vm15, %v2342_v27, %v2344_v30  ;;  %v2346_v20 = vsel %vm1217_vm15, %v2344_v30, %v2342_v27  ;;  %v6023_v27 = vrot.slane %v5110_v47, %v3471_v61  ;;  %v2271_v47 = vadd.f32 %v2269_v55, %v2179_v11 }
 0x251   : > { %v2360_v36 = vmul.f32 %v6024_v19, %v2345_v13  ;;  %v2361_v8 = vmul.f32 %v6025_v56, %v2346_v20  ;;  %v2339_v48 = vadd.f32 %v2337_v49, %v2247_v35  ;;  %v6028_v11 = vrot.slane %v5146_v29, %v3469_v60 }
 0x252   : > { %v2365_v33 = vpop.permute.xlu0 %2364  ;;  %v2338_v30 = vmul.f32 %v6023_v27, %v2323_v40  ;;  %v6030_v29 = vrot.slane %v5148_v2, %v3469_v60  ;;  %v6032_v13 = vrot.slane %v5098_v14, %v3469_v60 }
 0x253   : > { %v5218_v34 = vpop.permute.xlu1 %2366  ;;  %v2362_v4 = vadd.f32 %v2360_v36, %v2270_v24  ;;  %v2363_v28 = vadd.f32 %v2361_v8, %v2271_v47  ;;  %v2293_v24 = vadd.f32 %v2291_v16, %v2201_v17  ;;  %v2294_v47 = vadd.f32 %v2292_v15, %v2202_v10 }
 0x254   : > { %v2340_v54 = vadd.f32 %v2338_v30, %v2248_v46  ;;  %v2368_v38 = vsel %vm1241_vm8, %v2365_v33, %v5218_v34  ;;  %v2369_v62 = vsel %vm1241_vm8, %v5218_v34, %v2365_v33  ;;  %v2314_v20 = vmul.f32 %v6032_v13, %v2299_v58 }
 0x255   : > { %vm6038_vm8 = vcmp.lt.s32.totalorder %v3473_v0, 77 }
 0x256   : > { %v2388_v31 = vpop.permute.xlu0 %2387  ;;  %v2316_v9 = vadd.f32 %v2314_v20, %v2224_v41  ;;  %vm6039_vm9 = vmmov %vm6038_vm8 }
 0x257   : > { %v2390_v44 = vpop.permute.xlu1 %2389 }
 0x258   : > { %v2391_v57 = vsel %vm1265_vm10, %v2388_v31, %v2390_v44  ;;  %v2392_v34 = vsel %vm1265_vm10, %v2390_v44, %v2388_v31  ;;  %v6036_v31 = vrot.slane %v5134_v26, %v3469_v60 }
 0x25a   : > { %v2411_v51 = vpop.permute.xlu0 %2410  ;;  %v2406_v8 = vmul.f32 %v6036_v31, %v2391_v57 }
 0x25b   : > { %v2413_v7 = vpop.permute.xlu1 %2412 }
 0x25c   : > { %v2414_v42 = vsel %vm1289_vm14, %v2411_v51, %v2413_v7  ;;  %v2415_v21 = vsel %vm1289_vm14, %v2413_v7, %v2411_v51  ;;  %v6033_v7 = vrot.slane %v5098_v14, %v3471_v61  ;;  %v6034_v51 = vrot.slane %v5122_v43, %v3469_v60 }
 0x25d   : > { %v2429_v53 = vmul.f32 %v6028_v11, %v2414_v42  ;;  %v2430_v6 = vmul.f32 %v6029_v23, %v2415_v21  ;;  %v6035_v14 = vrot.slane %v5122_v43, %v3471_v61  ;;  %v6037_v42 = vrot.slane %v5134_v26, %v3471_v61 }
 0x25e   : > { %v2434_v5 = vpop.permute.xlu0 %2433  ;;  %v2315_v3 = vmul.f32 %v6033_v7, %v2300_v32  ;;  %v2383_v19 = vmul.f32 %v6034_v51, %v2368_v38  ;;  %v2408_v10 = vadd.f32 %v2406_v8, %v2316_v9 }
 0x25f   : > { %v2436_v50 = vpop.permute.xlu1 %2435  ;;  %v2431_v52 = vadd.f32 %v2429_v53, %v2339_v48  ;;  %v2432_v49 = vadd.f32 %v2430_v6, %v2340_v54  ;;  %v2384_v36 = vmul.f32 %v6035_v14, %v2369_v62  ;;  %v2407_v21 = vmul.f32 %v6037_v42, %v2392_v34 }
 0x260   : > { %v2437_v40 = vsel %vm1313_vm11, %v2434_v5, %v2436_v50  ;;  %v2438_v37 = vsel %vm1313_vm11, %v2436_v50, %v2434_v5  ;;  %v2317_v22 = vadd.f32 %v2315_v3, %v2225_v63  ;;  %v2385_v48 = vadd.f32 %v2383_v19, %v2293_v24 }
 0x261   : > { %v2452_v1 = vmul.f32 %v6030_v29, %v2437_v40  ;;  %v2453_v55 = vmul.f32 %v6031_v18, %v2438_v37  ;;  %v2386_v54 = vadd.f32 %v2384_v36, %v2294_v47 }
 0x262   : > { %v2457_v30 = vpop.permute.xlu0 %2456  ;;  %v2409_v41 = vadd.f32 %v2407_v21, %v2317_v22 }
 0x263   : > { %v2459_v33 = vpop.permute.xlu1 %2458  ;;  %v2454_v27 = vadd.f32 %v2452_v1, %v2362_v4  ;;  %v2455_v2 = vadd.f32 %v2453_v55, %v2363_v28  ;;  %v2767_v1 = vld [vmem:[%s3112_s27] sm:$0xff]  ;;  %s2830_s27 = sshll.u32 %s2950_s13, 4  ;;  %s2831_s27 = int_to_ptr.vmem [resolvable:$false] %s2830_s27 }
 0x264   : > { %v2460_v56 = vsel %vm1337_vm7, %v2457_v30, %v2459_v33  ;;  %v2461_v44 = vsel %vm1337_vm7, %v2459_v33, %v2457_v30  ;;  %s2832_s5 = scalar_lea.vmem %s2831_s27, 256  ;;  %p2833_p10 = scmp.lt.s32.totalorder %s5401_s23, %s2831_s27 }
 0x265   : > { %v2504_v35 = vadd.f32 %v2454_v27, %v2431_v52  ;;  %v2505_v46 = vadd.f32 %v2455_v2, %v2432_v49  ;;  %v2475_v58 = vmul.f32 %v2468_v25, %v2460_v56  ;;  %v2476_v32 = vmul.f32 %v2472_v39, %v2461_v44  ;;  %p2834_p13 = scmp.lt.s32.totalorder %s2832_s5, %s2826_s4 }
 0x266   : > { %v2480_v50 = vpop.permute.xlu0 %2479  ;;  %v6040_v25 = vrot.slane %v5184_v45, %v3471_v61 }
 0x267   : > { %v2482_v43 = vpop.permute.xlu1 %2481  ;;  %v2477_v39 = vadd.f32 %v2475_v58, %v2385_v48  ;;  %v2478_v16 = vadd.f32 %v2476_v32, %v2386_v54  ;;  %p2835_p3 = por %p2834_p13, %p2833_p10 }
 0x268   : > { %v2483_v26 = vsel %vm6038_vm8, %v2480_v50, %v2482_v43  ;;  %v2484_v17 = vsel %vm6039_vm9, %v2482_v43, %v2480_v50 }
 0x269   : > { %v2498_v63 = vmul.f32 %v2491_v12, %v2483_v26  ;;  %v2499_v59 = vmul.f32 %v6040_v25, %v2484_v17  ;;  %p2836_p7 = pnand %p2835_p3, %p2829_p8 }
 0x26b   : > { %v2500_v15 = vadd.f32 %v2498_v63, %v2408_v10  ;;  %v2501_v11 = vadd.f32 %v2499_v59, %v2409_v41 }
 0x26d   : > { %v2502_v53 = vadd.f32 %v2500_v15, %v2477_v39  ;;  %v2503_v23 = vadd.f32 %v2501_v11, %v2478_v16 }
 0x26f   : > { %v2506_v6 = vadd.f32 %v2504_v35, %v2502_v53  ;;  %v2507_v0 = vadd.f32 %v2505_v46, %v2503_v23 }
 0x271   : > { %v2642_v5 = vmul.f32 -1.442695, %v2506_v6  ;;  %v2643_v4 = vmul.f32 -1.442695, %v2507_v0 }
 0x273   : > { %2759 = vpow2.f32 %v2642_v5 }
 0x274   : > { %2761 = vpow2.f32 %v2643_v4 }
 0x27d   : > { %v2760_v12 = vpop.eup %2759 }
 0x27e   : > { %v2762_v28 = vpop.eup %2761  ;;  %v2514_v40 = vadd.f32 1.0, %v2760_v12 }
 0x27f   : > { %v2515_v61 = vadd.f32 1.0, %v2762_v28 }
 0x280   : > { %2763 = vrcp.f32 %v2514_v40 }
 0x281   : > { %2765 = vrcp.f32 %v2515_v61 }
 0x28a   : > { %v2764_v45 = vpop.eup %2763 }
 0x28b   : > { %v2766_v37 = vpop.eup %2765  ;;  %v2523_v38 = vrot.slane %v2764_v45, %v3469_v60 }
 0x28c   : > { %v2527_v62 = vrot.slane %v2766_v37, %v3469_v60 }
 0x28e   : > { %v2530_v29 = vcombine.low %v2523_v38, %v2527_v62 }
 0x290   : > { %v2532_v18 = vmul.f32 %v2767_v1, %v2530_v29 }
 0x292   : > { %2533 = vst [vmem:[%s174_s19] sm:$0xff] %v2532_v18 }
 0x293   : > { %2839 = shalt.err (!%p2836_p7)
}
 0x294   : > { %s2840_s20 = scalar_lea.hbm %s5399_s30, 128  ;;  %s2844_s18 = scalar_lea.hbm %s5445_s2, 256 }
 0x295   : > { %p2841_p9 = scmp.ne.s32.totalorder %s5399_s30, %s2840_s20  ;;  %p2845_p0 = scmp.lt.u32.totalorder %s5399_s30, %s5445_s2 }
 0x296   : > { %p2846_p1 = scmp.lt.u32.totalorder %s2844_s18, %s2840_s20  ;;  %p2848_p4 = scmp.lt.u32.totalorder %s2840_s20, %s5399_s30 }
 0x297   : > { %p2842_p2 = pnand %p2841_p9, %p3057_p12 }
 0x298   : > { %p2847_p11 = por %p2846_p1, %p2845_p0 }
 0x299   : > { %p2843_p5 = pneg %p2842_p2 }
 0x29a   : > { %p2849_p6 = por %p2848_p4, %p2847_p11 }
 0x29c   : > { %p2850_p8 = pnand %p2849_p6, %p2843_p5 }
 0x29e   : > { %2853 = shalt.err (!%p2850_p8)
}
 0x29f   : > { %2657 = dma.vmem_to_hbm [thread:$0]  (%p3057_p12), %s5401_s23, 128, %s5399_s30, %s2535_s3  }
 0x2a0 PF: > { %s2561_s17 = sand.u32 1, %s2884_s9   ;;  %p6042_p10 = scmp.ne.s32.totalorder %s5653_s16, 0 }
 0x2a1   : > { %p6043_p13 = scmp.ge.s32.totalorder %s2896_s12, 2  ;;  %s2562_s22 = scalar_lea.sflag [#allocation4], %s2561_s17 }
 0x2a3   : > { %p2668_p3 = pnand %p6043_p13, %p6042_p10 }
 0x2a5   : > { %2879 = dma.done.wait (!%p2668_p3), %s2562_s22, 128  }
 0x2a6   : > { %2881 = vsyncadd (!%p2668_p3), %s2562_s22, 4294967168  ;;  %p16_p7 = scmp.ge.s32.totalorder %s3022_s21, 4   ;;  %s6044_s9 = smov %s2888_s10 }
 0x2a7   : > { %s6045_s10 = smov %s2892_s11  ;;  %s6046_s11 = smov %s3053_s8 }
 0x2a8   : > { %s6047_s12 = smov %s3022_s21  ;;  %18 = sbr.rel (!%p16_p7) target bundleno = 6 (0x6), region = 175 }
 0x2af   :  { %2567 = vsyncpa [#allocation3], 1 }
 0x2b0   :  { %2569 = vsyncpa [#allocation3 + $0x1], 1 }
 0x2b1   :  { %2570 = vsyncpa [#allocation6], 1 }
 0x2b2   :  { %2572 = vsyncpa [#allocation6 + $0x1], 1 }
 0x2b3   :  { %2573 = vsyncpa [#allocation4], 1 }
 0x2b4   :  { %2575 = vsyncpa [#allocation4 + $0x1], 1 }

</bundles_post_ra>
